<compile_context>
chip_gen: v5e
topology: v5e:2x2
jax: 0.10.0
libtpu: 0.0.40
codegen_flags: <defaults>
</compile_context>

<pallas_src>
import jax
import jax.numpy as jnp
from jax.experimental import pallas as pl
from jax.experimental.pallas import tpu as pltpu

BN_EPS = 1e-5
# Scoped-VMEM limit: comfortably above our ~0.3 MiB footprint, and <= the
# 64 MiB physical VMEM of v7x (128 MiB on v5e/v6e).
VMEM_LIMIT_BYTES = 32 * 1024 * 1024


def _round_up(x, m):
    return ((x + m - 1) // m) * m


def _fused_conv_bn_act_kernel(img_ref, w_ref, bias_ref, gamma_ref, beta_ref,
                              out_ref, patch_ref, y_ref):
    """Fully fused: im2col conv (one MXU matmul over all batches) + conv/time
    bias + training-mode BatchNorm (batch stats, centered variance) + ReLU.

    img_ref   : (B, Cin, H, W)      VMEM   NCHW input (no wrapper transpose)
    w_ref     : (Cout, 9*Cin)       VMEM   tap-folded conv weight
    bias_ref  : (Cout, B)           VMEM   conv bias + per-batch time bias
    gamma_ref : (Cout, 1)           VMEM   BN weight
    beta_ref  : (Cout, 1)           VMEM   BN bias
    out_ref   : (B, Cout, HWp)      VMEM   lane-dense output (HWp % 128 == 0)
    patch_ref : (9*Cin, B*HWp)      VMEM scratch (im2col, batches along N)
    y_ref     : (Cout, B*HWp)       VMEM scratch (pre-BN y, resident — no HBM)
    """
    B, Cin, H, W = img_ref.shape
    Cout, HWp = out_ref.shape[1], out_ref.shape[2]
    Ho, Wo = H - 2, W - 2
    HW = Ho * Wo

    # Zero the patch scratch so the padded lanes [HW, HWp) contribute exact
    # zeros through the matmul (cheap one-pass store over a small scratch).
    patch_ref[...] = jnp.zeros_like(patch_ref)

    # im2col with batches folded along the matmul N axis:
    #   patch[(dy*3+dx)*Cin + cin, b*HWp + i*Wo + j] = img[b, cin, i+dy, j+dx]
    # Note: with Wo = W-2 the per-tap slice+reshape is a small relayout; for
    # large images one would pad W to a multiple of 128 (or use pltpu.roll on
    # the lane axis) to keep it lane-aligned.
    for b in range(B):
        x = img_ref[b].astype(jnp.float32)                        # (Cin, H, W)
        for dy in range(3):
            for dx in range(3):
                tap = dy * 3 + dx
                patch_ref[pl.ds(tap * Cin, Cin), pl.ds(b * HWp, HW)] = (
                    x[:, dy:dy + Ho, dx:dx + Wo].reshape(Cin, HW))

    # ONE MXU matmul for all batches: (Cout, 9*Cin) @ (9*Cin, B*HWp).
    acc = jnp.dot(w_ref[...], patch_ref[...],
                  preferred_element_type=jnp.float32)             # (Cout, B*HWp)

    # Validity mask for the padded lanes (they must not enter the BN stats).
    lane = jax.lax.broadcasted_iota(jnp.int32, (Cout, HWp), 1)
    valid = lane < HW
    n = float(B * HW)

    # Pass A: add per-(batch, channel) bias, zero the padded lanes, keep y
    # resident in VMEM, and accumulate the per-channel sum for the BN mean.
    total = jnp.zeros((Cout, 1), jnp.float32)
    for b in range(B):
        yb = acc[:, b * HWp:(b + 1) * HWp] + bias_ref[:, b:b + 1]  # (Cout, HWp)
        yb = jnp.where(valid, yb, 0.0)
        y_ref[:, pl.ds(b * HWp, HWp)] = yb
        total = total + jnp.sum(yb, axis=-1, keepdims=True)
    mean = total / n                                               # (Cout, 1)

    # Pass B: centered (two-pass) variance — numerically robust, y is already
    # resident so this is a cheap VMEM re-read.
    sq = jnp.zeros((Cout, 1), jnp.float32)
    for b in range(B):
        d = jnp.where(valid, y_ref[:, pl.ds(b * HWp, HWp)] - mean, 0.0)
        sq = sq + jnp.sum(d * d, axis=-1, keepdims=True)
    var = sq / n                                                   # biased

    # Fold BN into a single per-channel affine, apply + ReLU, write lane-dense.
    scale = gamma_ref[...] * jax.lax.rsqrt(var + BN_EPS)           # (Cout, 1)
    shift = beta_ref[...] - mean * scale                           # (Cout, 1)
    for b in range(B):
        z = y_ref[:, pl.ds(b * HWp, HWp)] * scale + shift
        out_ref[b] = jnp.maximum(z, 0.0).astype(out_ref.dtype)


def conv_bn_act_time(img_nchw, time_idx, params):
    """img_nchw: (B, Cin, H, W); time_idx: (B,) int32 or None.
    Returns (B, Cout, H-2, W-2), matching ConvBNActTime.forward (training BN)."""
    B, Cin, H, W = img_nchw.shape
    Cout = params["w_img"].shape[0]
    Ho, Wo = H - 2, W - 2
    HW = Ho * Wo
    HWp = _round_up(HW, 128)            # lane-dense spatial extent per batch
    K = 9 * Cin

    # Fold the 3x3 taps into the contraction dim: column = (dy*3+dx)*Cin + cin.
    w_folded = jnp.transpose(params["w_img"], (0, 2, 3, 1)).reshape(Cout, K)
    w_folded = w_folded.astype(jnp.float32)

    # Conv bias + time-conditioned bias, gathered in the wrapper (O(B*Cout)).
    bias = params["b_img"].astype(jnp.float32)[None, :]            # (1, Cout)
    if time_idx is not None:
        t_table = jnp.sum(params["w_time"], axis=(2, 3)).T          # (T, Cout)
        bias = bias + t_table[time_idx.astype(jnp.int32)]           # (B, Cout)
    else:
        bias = jnp.broadcast_to(bias, (B, Cout))
    bias_cb = jnp.transpose(bias, (1, 0)).astype(jnp.float32)       # (Cout, B)

    gamma = params["gamma"].astype(jnp.float32)[:, None]            # (Cout, 1)
    beta = params["beta"].astype(jnp.float32)[:, None]              # (Cout, 1)

    out_padded = pl.pallas_call(
        _fused_conv_bn_act_kernel,
        grid=(1,),
        in_specs=[
            pl.BlockSpec((B, Cin, H, W), lambda i: (0, 0, 0, 0)),
            pl.BlockSpec((Cout, K), lambda i: (0, 0)),
            pl.BlockSpec((Cout, B), lambda i: (0, 0)),
            pl.BlockSpec((Cout, 1), lambda i: (0, 0)),
            pl.BlockSpec((Cout, 1), lambda i: (0, 0)),
        ],
        out_specs=pl.BlockSpec((B, Cout, HWp), lambda i: (0, 0, 0)),
        out_shape=jax.ShapeDtypeStruct((B, Cout, HWp), jnp.float32),
        scratch_shapes=[
            pltpu.VMEM((K, B * HWp), jnp.float32),      # im2col patch
            pltpu.VMEM((Cout, B * HWp), jnp.float32),   # resident pre-BN y
        ],
        compiler_params=pltpu.CompilerParams(
            dimension_semantics=("arbitrary",),
            vmem_limit_bytes=VMEM_LIMIT_BYTES),
    )(img_nchw.astype(jnp.float32), w_folded, bias_cb, gamma, beta)

    # Crop the lane padding and reshape (contiguous) to NCHW at the very end.
    return out_padded[:, :, :HW].reshape(B, Cout, Ho, Wo)


def reference(img_nchw, time_idx, params):
    """Pure-JAX reference mirroring the PyTorch forward (training-mode BN)."""
    x = jax.lax.conv_general_dilated(
        img_nchw, params["w_img"], (1, 1), "VALID",
        dimension_numbers=("NCHW", "OIHW", "NCHW"))
    x = x + params["b_img"][None, :, None, None]
    if time_idx is not None:
        f_time = jnp.sum(params["w_time"][:, time_idx], axis=(-2, -1))  # (Cout, B)
        x = x + jnp.transpose(f_time, (1, 0))[:, :, None, None]
    mean = jnp.mean(x, axis=(0, 2, 3), keepdims=True)
    var = jnp.mean((x - mean) ** 2, axis=(0, 2, 3), keepdims=True)
    xhat = (x - mean) * jax.lax.rsqrt(var + BN_EPS)
    z = xhat * params["gamma"][None, :, None, None] + params["beta"][None, :, None, None]
    return jnp.maximum(z, 0.0)


if __name__ == "__main__":
    B, img_dim, time_dim, out_channels, H, W = 2, 4, 6, 8, 16, 16

    key = jax.random.PRNGKey(0)
    k1, k2, k3, k4, k5, k6 = jax.random.split(key, 6)

    img = jax.random.normal(k1, (B, img_dim, H, W), jnp.float32)
    time_idx = jax.random.randint(k2, (B,), 0, time_dim, jnp.int32)

    params = {
        "w_img": 0.1 * jax.random.normal(k3, (out_channels, img_dim, 3, 3), jnp.float32),
        "b_img": 0.1 * jax.random.normal(k4, (out_channels,), jnp.float32),
        "w_time": 0.1 * jax.random.normal(k5, (out_channels, time_dim, 3, 3), jnp.float32),
        "gamma": 1.0 + 0.1 * jax.random.normal(k6, (out_channels,), jnp.float32),
        "beta": jnp.linspace(-0.1, 0.1, out_channels, dtype=jnp.float32),
    }

    out = jax.jit(conv_bn_act_time)(img, time_idx, params)
    out = jax.block_until_ready(out)

    ref = reference(img, time_idx, params)
    assert out.shape == (B, out_channels, H - 2, W - 2), out.shape
    assert jnp.allclose(out, ref, atol=1e-3, rtol=1e-3), float(jnp.max(jnp.abs(out - ref)))

    print("KERNEL_OK")
</pallas_src>

<mosaic_0001>
module attributes {stable_mosaic.version = 11 : i64} {
  func.func @_fused_conv_bn_act_kernel(%arg0: i32, %arg1: memref<2x4x16x16xf32, #tpu.memory_space<vmem>>, %arg2: memref<8x36xf32, #tpu.memory_space<vmem>>, %arg3: memref<8x2xf32, #tpu.memory_space<vmem>>, %arg4: memref<8x1xf32, #tpu.memory_space<vmem>>, %arg5: memref<8x1xf32, #tpu.memory_space<vmem>>, %arg6: memref<2x8x256xf32, #tpu.memory_space<vmem>>, %arg7: memref<36x512xf32, #tpu.memory_space<vmem>>, %arg8: memref<8x512xf32, #tpu.memory_space<vmem>>) attributes {dimension_semantics = [#tpu.dimension_semantics<arbitrary>], iteration_bounds = array<i64: 1>, scalar_prefetch = 0 : i64, scratch_operands = 2 : i64, tpu.core_type = #tpu.core_type<tc>, window_params = [{pipeline_mode = #tpu.pipeline_mode<synchronous>, transform_indices = @transform_0, window_bounds = array<i64: 2, 4, 16, 16>}, {pipeline_mode = #tpu.pipeline_mode<synchronous>, transform_indices = @transform_1, window_bounds = array<i64: 8, 36>}, {pipeline_mode = #tpu.pipeline_mode<synchronous>, transform_indices = @transform_2, window_bounds = array<i64: 8, 2>}, {pipeline_mode = #tpu.pipeline_mode<synchronous>, transform_indices = @transform_3, window_bounds = array<i64: 8, 1>}, {pipeline_mode = #tpu.pipeline_mode<synchronous>, transform_indices = @transform_4, window_bounds = array<i64: 8, 1>}, {pipeline_mode = #tpu.pipeline_mode<synchronous>, transform_indices = @transform_5, window_bounds = array<i64: 2, 8, 256>}]} {
    %cst = arith.constant 0.000000e+00 : f32
    %0 = vector.broadcast %cst : f32 to vector<36x512xf32>
    %c0 = arith.constant 0 : index
    %c0_0 = arith.constant 0 : index
    %1 = vector.load %arg7[%c0, %c0_0] : memref<36x512xf32, #tpu.memory_space<vmem>>, vector<36x512xf32>
    tpu.vector_store %arg7[%c0, %c0_0], %0 {strides = array<i32>} : memref<36x512xf32, #tpu.memory_space<vmem>>, vector<36x512xf32>,
    %c0_1 = arith.constant 0 : index
    %c0_2 = arith.constant 0 : index
    %c0_3 = arith.constant 0 : index
    %c0_4 = arith.constant 0 : index
    %2 = vector.load %arg1[%c0_1, %c0_2, %c0_3, %c0_4] : memref<2x4x16x16xf32, #tpu.memory_space<vmem>>, vector<1x4x16x16xf32>
    %3 = vector.shape_cast %2 : vector<1x4x16x16xf32> to vector<4x16x16xf32>
    %4 = vector.extract_strided_slice %3 {offsets = [0, 0, 0], sizes = [4, 14, 14], strides = [1, 1, 1]} : vector<4x16x16xf32> to vector<4x14x14xf32>
    %5 = vector.shape_cast %4 : vector<4x14x14xf32> to vector<4x196xf32>
    %c0_5 = arith.constant 0 : index
    %c0_6 = arith.constant 0 : index
    %6 = vector.load %arg7[%c0_5, %c0_6] : memref<36x512xf32, #tpu.memory_space<vmem>>, vector<4x196xf32>
    tpu.vector_store %arg7[%c0_5, %c0_6], %5 {strides = array<i32>} : memref<36x512xf32, #tpu.memory_space<vmem>>, vector<4x196xf32>,
    %7 = vector.extract_strided_slice %3 {offsets = [0, 0, 1], sizes = [4, 14, 14], strides = [1, 1, 1]} : vector<4x16x16xf32> to vector<4x14x14xf32>
    %8 = vector.shape_cast %7 : vector<4x14x14xf32> to vector<4x196xf32>
    %c4 = arith.constant 4 : index
    %c0_7 = arith.constant 0 : index
    %9 = vector.load %arg7[%c4, %c0_7] : memref<36x512xf32, #tpu.memory_space<vmem>>, vector<4x196xf32>
    tpu.vector_store %arg7[%c4, %c0_7], %8 {strides = array<i32>} : memref<36x512xf32, #tpu.memory_space<vmem>>, vector<4x196xf32>,
    %10 = vector.extract_strided_slice %3 {offsets = [0, 0, 2], sizes = [4, 14, 14], strides = [1, 1, 1]} : vector<4x16x16xf32> to vector<4x14x14xf32>
    %11 = vector.shape_cast %10 : vector<4x14x14xf32> to vector<4x196xf32>
    %c8 = arith.constant 8 : index
    %c0_8 = arith.constant 0 : index
    %12 = vector.load %arg7[%c8, %c0_8] : memref<36x512xf32, #tpu.memory_space<vmem>>, vector<4x196xf32>
    tpu.vector_store %arg7[%c8, %c0_8], %11 {strides = array<i32>} : memref<36x512xf32, #tpu.memory_space<vmem>>, vector<4x196xf32>,
    %13 = vector.extract_strided_slice %3 {offsets = [0, 1, 0], sizes = [4, 14, 14], strides = [1, 1, 1]} : vector<4x16x16xf32> to vector<4x14x14xf32>
    %14 = vector.shape_cast %13 : vector<4x14x14xf32> to vector<4x196xf32>
    %c12 = arith.constant 12 : index
    %c0_9 = arith.constant 0 : index
    %15 = vector.load %arg7[%c12, %c0_9] : memref<36x512xf32, #tpu.memory_space<vmem>>, vector<4x196xf32>
    tpu.vector_store %arg7[%c12, %c0_9], %14 {strides = array<i32>} : memref<36x512xf32, #tpu.memory_space<vmem>>, vector<4x196xf32>,
    %16 = vector.extract_strided_slice %3 {offsets = [0, 1, 1], sizes = [4, 14, 14], strides = [1, 1, 1]} : vector<4x16x16xf32> to vector<4x14x14xf32>
    %17 = vector.shape_cast %16 : vector<4x14x14xf32> to vector<4x196xf32>
    %c16 = arith.constant 16 : index
    %c0_10 = arith.constant 0 : index
    %18 = vector.load %arg7[%c16, %c0_10] : memref<36x512xf32, #tpu.memory_space<vmem>>, vector<4x196xf32>
    tpu.vector_store %arg7[%c16, %c0_10], %17 {strides = array<i32>} : memref<36x512xf32, #tpu.memory_space<vmem>>, vector<4x196xf32>,
    %19 = vector.extract_strided_slice %3 {offsets = [0, 1, 2], sizes = [4, 14, 14], strides = [1, 1, 1]} : vector<4x16x16xf32> to vector<4x14x14xf32>
    %20 = vector.shape_cast %19 : vector<4x14x14xf32> to vector<4x196xf32>
    %c20 = arith.constant 20 : index
    %c0_11 = arith.constant 0 : index
    %21 = vector.load %arg7[%c20, %c0_11] : memref<36x512xf32, #tpu.memory_space<vmem>>, vector<4x196xf32>
    tpu.vector_store %arg7[%c20, %c0_11], %20 {strides = array<i32>} : memref<36x512xf32, #tpu.memory_space<vmem>>, vector<4x196xf32>,
    %22 = vector.extract_strided_slice %3 {offsets = [0, 2, 0], sizes = [4, 14, 14], strides = [1, 1, 1]} : vector<4x16x16xf32> to vector<4x14x14xf32>
    %23 = vector.shape_cast %22 : vector<4x14x14xf32> to vector<4x196xf32>
    %c24 = arith.constant 24 : index
    %c0_12 = arith.constant 0 : index
    %24 = vector.load %arg7[%c24, %c0_12] : memref<36x512xf32, #tpu.memory_space<vmem>>, vector<4x196xf32>
    tpu.vector_store %arg7[%c24, %c0_12], %23 {strides = array<i32>} : memref<36x512xf32, #tpu.memory_space<vmem>>, vector<4x196xf32>,
    %25 = vector.extract_strided_slice %3 {offsets = [0, 2, 1], sizes = [4, 14, 14], strides = [1, 1, 1]} : vector<4x16x16xf32> to vector<4x14x14xf32>
    %26 = vector.shape_cast %25 : vector<4x14x14xf32> to vector<4x196xf32>
    %c28 = arith.constant 28 : index
    %c0_13 = arith.constant 0 : index
    %27 = vector.load %arg7[%c28, %c0_13] : memref<36x512xf32, #tpu.memory_space<vmem>>, vector<4x196xf32>
    tpu.vector_store %arg7[%c28, %c0_13], %26 {strides = array<i32>} : memref<36x512xf32, #tpu.memory_space<vmem>>, vector<4x196xf32>,
    %28 = vector.extract_strided_slice %3 {offsets = [0, 2, 2], sizes = [4, 14, 14], strides = [1, 1, 1]} : vector<4x16x16xf32> to vector<4x14x14xf32>
    %29 = vector.shape_cast %28 : vector<4x14x14xf32> to vector<4x196xf32>
    %c32 = arith.constant 32 : index
    %c0_14 = arith.constant 0 : index
    %30 = vector.load %arg7[%c32, %c0_14] : memref<36x512xf32, #tpu.memory_space<vmem>>, vector<4x196xf32>
    tpu.vector_store %arg7[%c32, %c0_14], %29 {strides = array<i32>} : memref<36x512xf32, #tpu.memory_space<vmem>>, vector<4x196xf32>,
    %c1 = arith.constant 1 : index
    %c0_15 = arith.constant 0 : index
    %c0_16 = arith.constant 0 : index
    %c0_17 = arith.constant 0 : index
    %31 = vector.load %arg1[%c1, %c0_15, %c0_16, %c0_17] : memref<2x4x16x16xf32, #tpu.memory_space<vmem>>, vector<1x4x16x16xf32>
    %32 = vector.shape_cast %31 : vector<1x4x16x16xf32> to vector<4x16x16xf32>
    %33 = vector.extract_strided_slice %32 {offsets = [0, 0, 0], sizes = [4, 14, 14], strides = [1, 1, 1]} : vector<4x16x16xf32> to vector<4x14x14xf32>
    %34 = vector.shape_cast %33 : vector<4x14x14xf32> to vector<4x196xf32>
    %c0_18 = arith.constant 0 : index
    %c256 = arith.constant 256 : index
    %35 = vector.load %arg7[%c0_18, %c256] : memref<36x512xf32, #tpu.memory_space<vmem>>, vector<4x196xf32>
    tpu.vector_store %arg7[%c0_18, %c256], %34 {strides = array<i32>} : memref<36x512xf32, #tpu.memory_space<vmem>>, vector<4x196xf32>,
    %36 = vector.extract_strided_slice %32 {offsets = [0, 0, 1], sizes = [4, 14, 14], strides = [1, 1, 1]} : vector<4x16x16xf32> to vector<4x14x14xf32>
    %37 = vector.shape_cast %36 : vector<4x14x14xf32> to vector<4x196xf32>
    %c4_19 = arith.constant 4 : index
    %c256_20 = arith.constant 256 : index
    %38 = vector.load %arg7[%c4_19, %c256_20] : memref<36x512xf32, #tpu.memory_space<vmem>>, vector<4x196xf32>
    tpu.vector_store %arg7[%c4_19, %c256_20], %37 {strides = array<i32>} : memref<36x512xf32, #tpu.memory_space<vmem>>, vector<4x196xf32>,
    %39 = vector.extract_strided_slice %32 {offsets = [0, 0, 2], sizes = [4, 14, 14], strides = [1, 1, 1]} : vector<4x16x16xf32> to vector<4x14x14xf32>
    %40 = vector.shape_cast %39 : vector<4x14x14xf32> to vector<4x196xf32>
    %c8_21 = arith.constant 8 : index
    %c256_22 = arith.constant 256 : index
    %41 = vector.load %arg7[%c8_21, %c256_22] : memref<36x512xf32, #tpu.memory_space<vmem>>, vector<4x196xf32>
    tpu.vector_store %arg7[%c8_21, %c256_22], %40 {strides = array<i32>} : memref<36x512xf32, #tpu.memory_space<vmem>>, vector<4x196xf32>,
    %42 = vector.extract_strided_slice %32 {offsets = [0, 1, 0], sizes = [4, 14, 14], strides = [1, 1, 1]} : vector<4x16x16xf32> to vector<4x14x14xf32>
    %43 = vector.shape_cast %42 : vector<4x14x14xf32> to vector<4x196xf32>
    %c12_23 = arith.constant 12 : index
    %c256_24 = arith.constant 256 : index
    %44 = vector.load %arg7[%c12_23, %c256_24] : memref<36x512xf32, #tpu.memory_space<vmem>>, vector<4x196xf32>
    tpu.vector_store %arg7[%c12_23, %c256_24], %43 {strides = array<i32>} : memref<36x512xf32, #tpu.memory_space<vmem>>, vector<4x196xf32>,
    %45 = vector.extract_strided_slice %32 {offsets = [0, 1, 1], sizes = [4, 14, 14], strides = [1, 1, 1]} : vector<4x16x16xf32> to vector<4x14x14xf32>
    %46 = vector.shape_cast %45 : vector<4x14x14xf32> to vector<4x196xf32>
    %c16_25 = arith.constant 16 : index
    %c256_26 = arith.constant 256 : index
    %47 = vector.load %arg7[%c16_25, %c256_26] : memref<36x512xf32, #tpu.memory_space<vmem>>, vector<4x196xf32>
    tpu.vector_store %arg7[%c16_25, %c256_26], %46 {strides = array<i32>} : memref<36x512xf32, #tpu.memory_space<vmem>>, vector<4x196xf32>,
    %48 = vector.extract_strided_slice %32 {offsets = [0, 1, 2], sizes = [4, 14, 14], strides = [1, 1, 1]} : vector<4x16x16xf32> to vector<4x14x14xf32>
    %49 = vector.shape_cast %48 : vector<4x14x14xf32> to vector<4x196xf32>
    %c20_27 = arith.constant 20 : index
    %c256_28 = arith.constant 256 : index
    %50 = vector.load %arg7[%c20_27, %c256_28] : memref<36x512xf32, #tpu.memory_space<vmem>>, vector<4x196xf32>
    tpu.vector_store %arg7[%c20_27, %c256_28], %49 {strides = array<i32>} : memref<36x512xf32, #tpu.memory_space<vmem>>, vector<4x196xf32>,
    %51 = vector.extract_strided_slice %32 {offsets = [0, 2, 0], sizes = [4, 14, 14], strides = [1, 1, 1]} : vector<4x16x16xf32> to vector<4x14x14xf32>
    %52 = vector.shape_cast %51 : vector<4x14x14xf32> to vector<4x196xf32>
    %c24_29 = arith.constant 24 : index
    %c256_30 = arith.constant 256 : index
    %53 = vector.load %arg7[%c24_29, %c256_30] : memref<36x512xf32, #tpu.memory_space<vmem>>, vector<4x196xf32>
    tpu.vector_store %arg7[%c24_29, %c256_30], %52 {strides = array<i32>} : memref<36x512xf32, #tpu.memory_space<vmem>>, vector<4x196xf32>,
    %54 = vector.extract_strided_slice %32 {offsets = [0, 2, 1], sizes = [4, 14, 14], strides = [1, 1, 1]} : vector<4x16x16xf32> to vector<4x14x14xf32>
    %55 = vector.shape_cast %54 : vector<4x14x14xf32> to vector<4x196xf32>
    %c28_31 = arith.constant 28 : index
    %c256_32 = arith.constant 256 : index
    %56 = vector.load %arg7[%c28_31, %c256_32] : memref<36x512xf32, #tpu.memory_space<vmem>>, vector<4x196xf32>
    tpu.vector_store %arg7[%c28_31, %c256_32], %55 {strides = array<i32>} : memref<36x512xf32, #tpu.memory_space<vmem>>, vector<4x196xf32>,
    %57 = vector.extract_strided_slice %32 {offsets = [0, 2, 2], sizes = [4, 14, 14], strides = [1, 1, 1]} : vector<4x16x16xf32> to vector<4x14x14xf32>
    %58 = vector.shape_cast %57 : vector<4x14x14xf32> to vector<4x196xf32>
    %c32_33 = arith.constant 32 : index
    %c256_34 = arith.constant 256 : index
    %59 = vector.load %arg7[%c32_33, %c256_34] : memref<36x512xf32, #tpu.memory_space<vmem>>, vector<4x196xf32>
    tpu.vector_store %arg7[%c32_33, %c256_34], %58 {strides = array<i32>} : memref<36x512xf32, #tpu.memory_space<vmem>>, vector<4x196xf32>,
    %c0_35 = arith.constant 0 : index
    %c0_36 = arith.constant 0 : index
    %60 = vector.load %arg2[%c0_35, %c0_36] : memref<8x36xf32, #tpu.memory_space<vmem>>, vector<8x36xf32>
    %c0_37 = arith.constant 0 : index
    %c0_38 = arith.constant 0 : index
    %61 = vector.load %arg7[%c0_37, %c0_38] : memref<36x512xf32, #tpu.memory_space<vmem>>, vector<36x512xf32>
    %cst_39 = arith.constant dense<0.000000e+00> : vector<8x512xf32>
    %62 = tpu.matmul %60, %61, %cst_39 {dimension_numbers = #tpu.dot_dimension_numbers<[1], [0], [0], [1], [0, 0, 1, 1], [], []>} : vector<8x36xf32>, vector<36x512xf32>, vector<8x512xf32> -> vector<8x512xf32>
    %63 = tpu.iota {dimensions = array<i32: 1>} : vector<8x256xi32>
    %c196_i32 = arith.constant 196 : i32
    %64 = vector.broadcast %c196_i32 : i32 to vector<8x256xi32>
    %65 = arith.cmpi slt, %63, %64 : vector<8x256xi32>
    %cst_40 = arith.constant 0.000000e+00 : f32
    %66 = vector.broadcast %cst_40 : f32 to vector<8x1xf32>
    %67 = vector.extract_strided_slice %62 {offsets = [0, 0], sizes = [8, 256], strides = [1, 1]} : vector<8x512xf32> to vector<8x256xf32>
    %c0_41 = arith.constant 0 : index
    %c0_42 = arith.constant 0 : index
    %68 = vector.load %arg3[%c0_41, %c0_42] : memref<8x2xf32, #tpu.memory_space<vmem>>, vector<8x1xf32>
    %69 = vector.broadcast %68 : vector<8x1xf32> to vector<8x256xf32>
    %70 = arith.addf %67, %69 : vector<8x256xf32>
    %cst_43 = arith.constant 0.000000e+00 : f32
    %71 = vector.broadcast %cst_43 : f32 to vector<8x256xf32>
    %72 = arith.select %65, %70, %71 : vector<8x256xi1>, vector<8x256xf32>
    %c0_44 = arith.constant 0 : index
    %c0_45 = arith.constant 0 : index
    %73 = vector.load %arg8[%c0_44, %c0_45] : memref<8x512xf32, #tpu.memory_space<vmem>>, vector<8x256xf32>
    tpu.vector_store %arg8[%c0_44, %c0_45], %72 {strides = array<i32>} : memref<8x512xf32, #tpu.memory_space<vmem>>, vector<8x256xf32>,
    %cst_46 = arith.constant dense<0.000000e+00> : vector<8xf32>
    %74 = vector.multi_reduction <add>, %72, %cst_46 [1] : vector<8x256xf32> to vector<8xf32>
    %75 = vector.shape_cast %74 : vector<8xf32> to vector<8x1xf32>
    %76 = arith.addf %66, %75 : vector<8x1xf32>
    %77 = vector.extract_strided_slice %62 {offsets = [0, 256], sizes = [8, 256], strides = [1, 1]} : vector<8x512xf32> to vector<8x256xf32>
    %c0_47 = arith.constant 0 : index
    %c1_48 = arith.constant 1 : index
    %78 = vector.load %arg3[%c0_47, %c1_48] : memref<8x2xf32, #tpu.memory_space<vmem>>, vector<8x1xf32>
    %79 = vector.broadcast %78 : vector<8x1xf32> to vector<8x256xf32>
    %80 = arith.addf %77, %79 : vector<8x256xf32>
    %cst_49 = arith.constant 0.000000e+00 : f32
    %81 = vector.broadcast %cst_49 : f32 to vector<8x256xf32>
    %82 = arith.select %65, %80, %81 : vector<8x256xi1>, vector<8x256xf32>
    %c0_50 = arith.constant 0 : index
    %c256_51 = arith.constant 256 : index
    %83 = vector.load %arg8[%c0_50, %c256_51] : memref<8x512xf32, #tpu.memory_space<vmem>>, vector<8x256xf32>
    tpu.vector_store %arg8[%c0_50, %c256_51], %82 {strides = array<i32>} : memref<8x512xf32, #tpu.memory_space<vmem>>, vector<8x256xf32>,
    %cst_52 = arith.constant dense<0.000000e+00> : vector<8xf32>
    %84 = vector.multi_reduction <add>, %82, %cst_52 [1] : vector<8x256xf32> to vector<8xf32>
    %85 = vector.shape_cast %84 : vector<8xf32> to vector<8x1xf32>
    %86 = arith.addf %76, %85 : vector<8x1xf32>
    %cst_53 = arith.constant 3.920000e+02 : f32
    %87 = vector.broadcast %cst_53 : f32 to vector<8x1xf32>
    %88 = arith.divf %86, %87 : vector<8x1xf32>
    %cst_54 = arith.constant 0.000000e+00 : f32
    %89 = vector.broadcast %cst_54 : f32 to vector<8x1xf32>
    %c0_55 = arith.constant 0 : index
    %c0_56 = arith.constant 0 : index
    %90 = vector.load %arg8[%c0_55, %c0_56] : memref<8x512xf32, #tpu.memory_space<vmem>>, vector<8x256xf32>
    %91 = vector.broadcast %88 : vector<8x1xf32> to vector<8x256xf32>
    %92 = arith.subf %90, %91 : vector<8x256xf32>
    %cst_57 = arith.constant 0.000000e+00 : f32
    %93 = vector.broadcast %cst_57 : f32 to vector<8x256xf32>
    %94 = arith.select %65, %92, %93 : vector<8x256xi1>, vector<8x256xf32>
    %95 = arith.mulf %94, %94 : vector<8x256xf32>
    %cst_58 = arith.constant dense<0.000000e+00> : vector<8xf32>
    %96 = vector.multi_reduction <add>, %95, %cst_58 [1] : vector<8x256xf32> to vector<8xf32>
    %97 = vector.shape_cast %96 : vector<8xf32> to vector<8x1xf32>
    %98 = arith.addf %89, %97 : vector<8x1xf32>
    %c0_59 = arith.constant 0 : index
    %c256_60 = arith.constant 256 : index
    %99 = vector.load %arg8[%c0_59, %c256_60] : memref<8x512xf32, #tpu.memory_space<vmem>>, vector<8x256xf32>
    %100 = vector.broadcast %88 : vector<8x1xf32> to vector<8x256xf32>
    %101 = arith.subf %99, %100 : vector<8x256xf32>
    %cst_61 = arith.constant 0.000000e+00 : f32
    %102 = vector.broadcast %cst_61 : f32 to vector<8x256xf32>
    %103 = arith.select %65, %101, %102 : vector<8x256xi1>, vector<8x256xf32>
    %104 = arith.mulf %103, %103 : vector<8x256xf32>
    %cst_62 = arith.constant dense<0.000000e+00> : vector<8xf32>
    %105 = vector.multi_reduction <add>, %104, %cst_62 [1] : vector<8x256xf32> to vector<8xf32>
    %106 = vector.shape_cast %105 : vector<8xf32> to vector<8x1xf32>
    %107 = arith.addf %98, %106 : vector<8x1xf32>
    %cst_63 = arith.constant 3.920000e+02 : f32
    %108 = vector.broadcast %cst_63 : f32 to vector<8x1xf32>
    %109 = arith.divf %107, %108 : vector<8x1xf32>
    %c0_64 = arith.constant 0 : index
    %c0_65 = arith.constant 0 : index
    %110 = vector.load %arg4[%c0_64, %c0_65] : memref<8x1xf32, #tpu.memory_space<vmem>>, vector<8x1xf32>
    %cst_66 = arith.constant 9.99999974E-6 : f32
    %111 = vector.broadcast %cst_66 : f32 to vector<8x1xf32>
    %112 = arith.addf %109, %111 : vector<8x1xf32>
    %113 = math.rsqrt %112 : vector<8x1xf32>
    %114 = arith.mulf %110, %113 : vector<8x1xf32>
    %c0_67 = arith.constant 0 : index
    %c0_68 = arith.constant 0 : index
    %115 = vector.load %arg5[%c0_67, %c0_68] : memref<8x1xf32, #tpu.memory_space<vmem>>, vector<8x1xf32>
    %116 = arith.mulf %88, %114 : vector<8x1xf32>
    %117 = arith.subf %115, %116 : vector<8x1xf32>
    %c0_69 = arith.constant 0 : index
    %c0_70 = arith.constant 0 : index
    %118 = vector.load %arg8[%c0_69, %c0_70] : memref<8x512xf32, #tpu.memory_space<vmem>>, vector<8x256xf32>
    %119 = vector.broadcast %114 : vector<8x1xf32> to vector<8x256xf32>
    %120 = arith.mulf %118, %119 : vector<8x256xf32>
    %121 = vector.broadcast %117 : vector<8x1xf32> to vector<8x256xf32>
    %122 = arith.addf %120, %121 : vector<8x256xf32>
    %cst_71 = arith.constant 0.000000e+00 : f32
    %123 = vector.broadcast %cst_71 : f32 to vector<8x256xf32>
    %124 = arith.maximumf %122, %123 : vector<8x256xf32>
    %c0_72 = arith.constant 0 : index
    %c0_73 = arith.constant 0 : index
    %c0_74 = arith.constant 0 : index
    %125 = vector.load %arg6[%c0_72, %c0_73, %c0_74] : memref<2x8x256xf32, #tpu.memory_space<vmem>>, vector<1x8x256xf32>
    %126 = vector.shape_cast %125 : vector<1x8x256xf32> to vector<8x256xf32>
    %127 = vector.shape_cast %124 : vector<8x256xf32> to vector<1x8x256xf32>
    tpu.vector_store %arg6[%c0_72, %c0_73, %c0_74], %127 {strides = array<i32>} : memref<2x8x256xf32, #tpu.memory_space<vmem>>, vector<1x8x256xf32>,
    %c0_75 = arith.constant 0 : index
    %c256_76 = arith.constant 256 : index
    %128 = vector.load %arg8[%c0_75, %c256_76] : memref<8x512xf32, #tpu.memory_space<vmem>>, vector<8x256xf32>
    %129 = vector.broadcast %114 : vector<8x1xf32> to vector<8x256xf32>
    %130 = arith.mulf %128, %129 : vector<8x256xf32>
    %131 = vector.broadcast %117 : vector<8x1xf32> to vector<8x256xf32>
    %132 = arith.addf %130, %131 : vector<8x256xf32>
    %cst_77 = arith.constant 0.000000e+00 : f32
    %133 = vector.broadcast %cst_77 : f32 to vector<8x256xf32>
    %134 = arith.maximumf %132, %133 : vector<8x256xf32>
    %c1_78 = arith.constant 1 : index
    %c0_79 = arith.constant 0 : index
    %c0_80 = arith.constant 0 : index
    %135 = vector.load %arg6[%c1_78, %c0_79, %c0_80] : memref<2x8x256xf32, #tpu.memory_space<vmem>>, vector<1x8x256xf32>
    %136 = vector.shape_cast %135 : vector<1x8x256xf32> to vector<8x256xf32>
    %137 = vector.shape_cast %134 : vector<8x256xf32> to vector<1x8x256xf32>
    tpu.vector_store %arg6[%c1_78, %c0_79, %c0_80], %137 {strides = array<i32>} : memref<2x8x256xf32, #tpu.memory_space<vmem>>, vector<1x8x256xf32>,
    return
  }
  func.func @transform_0(%arg0: i32) -> (i32, i32, i32, i32) {
    %c0_i32 = arith.constant 0 : i32
    %c0_i32_0 = arith.constant 0 : i32
    %c0_i32_1 = arith.constant 0 : i32
    %c0_i32_2 = arith.constant 0 : i32
    %c0_i32_3 = arith.constant 0 : i32
    return %c0_i32, %c0_i32_0, %c0_i32_1, %c0_i32_2 : i32, i32, i32, i32
  }
  func.func @transform_1(%arg0: i32) -> (i32, i32) {
    %c0_i32 = arith.constant 0 : i32
    %c0_i32_0 = arith.constant 0 : i32
    %c0_i32_1 = arith.constant 0 : i32
    return %c0_i32, %c0_i32_0 : i32, i32
  }
  func.func @transform_2(%arg0: i32) -> (i32, i32) {
    %c0_i32 = arith.constant 0 : i32
    %c0_i32_0 = arith.constant 0 : i32
    %c0_i32_1 = arith.constant 0 : i32
    return %c0_i32, %c0_i32_0 : i32, i32
  }
  func.func @transform_3(%arg0: i32) -> (i32, i32) {
    %c0_i32 = arith.constant 0 : i32
    %c0_i32_0 = arith.constant 0 : i32
    %c0_i32_1 = arith.constant 0 : i32
    return %c0_i32, %c0_i32_0 : i32, i32
  }
  func.func @transform_4(%arg0: i32) -> (i32, i32) {
    %c0_i32 = arith.constant 0 : i32
    %c0_i32_0 = arith.constant 0 : i32
    %c0_i32_1 = arith.constant 0 : i32
    return %c0_i32, %c0_i32_0 : i32, i32
  }
  func.func @transform_5(%arg0: i32) -> (i32, i32, i32) {
    %c0_i32 = arith.constant 0 : i32
    %c0_i32_0 = arith.constant 0 : i32
    %c0_i32_1 = arith.constant 0 : i32
    %c0_i32_2 = arith.constant 0 : i32
    return %c0_i32, %c0_i32_0, %c0_i32_1 : i32, i32, i32
  }
}

</mosaic_0001>

<bundles_post_ra>
// kernel: conv_bn_act_time.1
= control target key start
LH: loop header
LB: loop body
LE: loop exit
PB: predicated region body
PF: predicated region fallthrough
CT: control target
= control target key end

     0   :  { %vm49_vm0 = vcmask 1047556   ;;  %v3876_v3 = vmov 1983009808   ;;  %v3877_v8 = vmov 1934713408   ;;  %s3878_s9 = smov 56   ;;  %s6089_s0 = inlined_call_operand.vmem [shape: f32[2,4,16,16], index: 0, kind: input, shape index: {}]   ;;  %s6090_s1 = inlined_call_operand.vmem [shape: f32[8,36], index: 1, kind: input, shape index: {}]   ;;  %s6091_s2 = inlined_call_operand.vmem [shape: f32[8,2], index: 2, kind: input, shape index: {}]   ;;  %s6092_s3 = inlined_call_operand.vmem [shape: f32[8,1], index: 3, kind: input, shape index: {}]   ;;  %s6093_s4 = inlined_call_operand.vmem [shape: f32[8,1], index: 4, kind: input, shape index: {}]   ;;  %s6094_s5 = inlined_call_operand.vmem [shape: f32[2,8,256], index: 5, kind: output, shape index: {}]  }
   0x1   :  { %v3929_v0 = vld [vmem:[%s6089_s0] sm:$0xff]  ;;  %v3934_v1 = vld [vmem:[%s6089_s0 + $0x10] sm:$0xff]  ;;  %v54_v4 = vunpack.c.l.s4 %v3876_v3  ;;  %v78_v9 = vunpack.c.l.s4 %v3877_v8  ;;  %v3955_v13 = vld [vmem:[%s6089_s0 + $0x28] sm:$0xff]  ;;  %s3879_s10 = smov 28   ;;  %s3880_s11 = smov 84   ;;  %vm205_vm1 = vcmask 113664  }
   0x2   :  { %v3939_v2 = vld [vmem:[%s6089_s0 + $0x20] sm:$0xff]  ;;  %v3944_v5 = vld [vmem:[%s6089_s0 + $0x30] sm:$0xff]  ;;  %v51_v6 = vrot.slane %v3929_v0, 4  ;;  %v63_v7 = vrot.slane %v3934_v1, 4  ;;  %v3966_v17 = vld [vmem:[%s6089_s0 + $0x38] sm:$0xff]  ;;  %v105_v18 = vrot.slane %v3955_v13, 4 }
   0x3   :  { %v48_v10 = vrot.slane %v3939_v2, 4  ;;  %v3949_v11 = vunpack.c.0.s8 %v54_v4  ;;  %v61_v12 = vrot.slane %v3944_v5, 4  ;;  %v3977_v23 = vld [vmem:[%s6089_s0 + $0x8] sm:$0xff]  ;;  %v3982_v24 = vld [vmem:[%s6089_s0 + $0x18] sm:$0xff]  ;;  %v3984_v25 = vunpack.c.0.s8 %v78_v9  ;;  %s3881_s12 = smov 42   ;;  %s3882_s13 = smov 14  }
   0x4   :  { %v52_v14 = vsel %vm49_vm0, %v3939_v2, %v51_v6  ;;  %v64_v15 = vsel %vm49_vm0, %v3944_v5, %v63_v7  ;;  %v117_v27 = vrot.slane %v3966_v17, 4  ;;  %v106_v32 = vsel %vm49_vm0, %v105_v18, %v3977_v23  ;;  %s3883_s14 = smov 70   ;;  %s3884_s15 = smov 112  }
   0x5   :  { %v50_v16 = vsel %vm49_vm0, %v48_v10, %v3929_v0  ;;  %v60_v19 = vperm.slane %v52_v14, %v3949_v11  ;;  %v72_v20 = vperm.slane %v64_v15, %v3949_v11  ;;  %v62_v22 = vsel %vm49_vm0, %v61_v12, %v3934_v1  ;;  %s3885_s16 = smov 98   ;;  %s3886_s17 = smov 126  }
   0x6   :  { %v56_v21 = vperm.slane %v50_v16, %v3949_v11  ;;  %v68_v26 = vperm.slane %v62_v22, %v3949_v11  ;;  %v118_v33 = vsel %vm49_vm0, %v117_v27, %v3982_v24  ;;  %v112_v45 = vperm.slane %v106_v32, %v3949_v11  ;;  %s3887_s18 = smov 26   ;;  %s3888_s19 = smov 12  }
   0x7   :  { %v85_v28 = vrot.slane %v72_v20, 4  ;;  %v87_v30 = vrot.slane %v60_v19, 4  ;;  %v124_v37 = vperm.slane %v118_v33, %v3949_v11  ;;  %v119_v48 = vrot.slane %v3982_v24, 4  ;;  %s3889_s20 = smov 40   ;;  %s3890_s21 = smov 127  }
   0x8   :  { %v75_v29 = vrot.slane %v56_v21, 4  ;;  %v73_v31 = vrot.slane %v68_v26, 4  ;;  %v131_v53 = vrot.slane %v112_v45, 4  ;;  %v107_v54 = vrot.slane %v3977_v23, 4  ;;  %s3891_s22 = smov 54  }
   0x9   :  { %v86_v34 = vsel %vm49_vm0, %v85_v28, %v60_v19  ;;  %v88_v36 = vsel %vm49_vm0, %v72_v20, %v87_v30  ;;  %v129_v46 = vrot.slane %v124_v37, 4  ;;  %v120_v55 = vsel %vm49_vm0, %v3966_v17, %v119_v48 }
   0xa   :  { %v76_v35 = vsel %vm49_vm0, %v68_v26, %v75_v29  ;;  %v92_v38 = vperm.slane %v86_v34, %v3984_v25  ;;  %v74_v40 = vsel %vm49_vm0, %v73_v31, %v56_v21  ;;  %v96_v41 = vperm.slane %v88_v36, %v3984_v25 }
   0xb   :  { %v84_v39 = vperm.slane %v76_v35, %v3984_v25  ;;  %v4001_v42 = vperm.slane %v74_v40, %v3984_v25  ;;  %v130_v51 = vsel %vm49_vm0, %v129_v46, %v112_v45  ;;  %v132_v58 = vsel %vm49_vm0, %v124_v37, %v131_v53 }
   0xc   :  { %166 = vrot.lane.b32.xlu1 %v92_v38, %s3878_s9  ;;  %174 = vrot.lane.b32.xlu2 %v96_v41, %s3880_s11  ;;  %v101_v47 = vrot.slane %v92_v38, 4  ;;  %v136_v56 = vperm.slane %v130_v51, %v3984_v25  ;;  %v103_v57 = vrot.slane %v96_v41, 4  ;;  %v128_v60 = vperm.slane %v120_v55, %v3949_v11 }
   0xd   :  { %158 = vrot.lane.b32.xlu0 %v84_v39, %s3879_s10  ;;  %v99_v43 = vrot.slane %v84_v39, 4  ;;  %v97_v44 = vrot.slane %v4001_v42, 4  ;;  %v108_v61 = vsel %vm49_vm0, %v3955_v13, %v107_v54  ;;  %v140_v63 = vperm.slane %v132_v58, %v3984_v25 }
   0xe   :  { %v102_v52 = vsel %vm49_vm0, 0.0, %v101_v47  ;;  %v147_v59 = vrot.slane %v136_v56, 4  ;;  %v104_v62 = vsel %vm49_vm0, 0.0, %v103_v57  ;;  %v116_v4 = vperm.slane %v108_v61, %v3949_v11 }
   0xf   :  { %v100_v49 = vsel %vm49_vm0, 0.0, %v99_v43  ;;  %v98_v50 = vsel %vm49_vm0, 0.0, %v97_v44  ;;  %v141_v6 = vrot.slane %v128_v60, 4  ;;  %v149_v7 = vrot.slane %v140_v63, 4 }
  0x10   :  { %v148_v3 = vsel %vm49_vm0, 0.0, %v147_v59  ;;  %v3892_v18 = vmov 0.0   ;;  %vm207_vm2 = vcmask 228352   ;;  %vm209_vm3 = vcmask 343040  }
  0x11   :  { %v142_v8 = vsel %vm49_vm0, %v141_v6, %v116_v4  ;;  %v150_v9 = vsel %vm49_vm0, 0.0, %v149_v7  ;;  %20 = vst [vmem:[#allocation2] sm:$0xff] %v3892_v18  ;;  %vm211_vm4 = vcmask 457728   ;;  %vm213_vm5 = vcmask 572416  }
  0x12   :  { %v146_v10 = vperm.slane %v142_v8, %v3984_v25  ;;  %21 = vst [vmem:[#allocation2 + $0x8] sm:$0xff] %v3892_v18  ;;  %vm215_vm6 = vcmask 687104   ;;  %vm217_vm7 = vcmask 801792   ;;  %vm219_vm8 = vcmask 916480  }
  0x13   :  { %22 = vst [vmem:[#allocation2 + $0x10] sm:$0xff] %v3892_v18  ;;  %vm221_vm9 = vcmask 1031168   ;;  %vm223_vm10 = vcmask 97280   ;;  %vm225_vm11 = vcmask 211968   ;;  %vm227_vm12 = vcmask 326656  }
  0x14   :  { %162 = vrot.lane.b32.xlu1 %v100_v49, %s3881_s12  ;;  %170 = vrot.lane.b32.xlu2 %v102_v52, %s3883_s14  ;;  %v151_v12 = vrot.slane %v146_v10, 4  ;;  %23 = vst [vmem:[#allocation2 + $0x18] sm:$0xff] %v3892_v18  ;;  %vm229_vm13 = vcmask 441344   ;;  %vm6096_vm14 = vcmask 551936   ;;  %vm6095_vm15 = vcmask 1046528  }
  0x15   :  { %154 = vrot.lane.b32.xlu0 %v98_v50, %s3882_s13  ;;  %24 = vst [vmem:[#allocation2 + $0x20] sm:$0xff] %v3892_v18 }
  0x16   :  { %v152_v14 = vsel %vm49_vm0, 0.0, %v151_v12  ;;  %25 = vst [vmem:[#allocation2 + $0x28] sm:$0xff] %v3892_v18 }
  0x17   :  { %26 = vst [vmem:[#allocation2 + $0x30] sm:$0xff] %v3892_v18 }
  0x18   :  { %27 = vst [vmem:[#allocation2 + $0x38] sm:$0xff] %v3892_v18 }
  0x19   :  { %28 = vst [vmem:[#allocation2 + $0x40] sm:$0xff] %v3892_v18 }
  0x1a   :  { %29 = vst [vmem:[#allocation2 + $0x48] sm:$0xff] %v3892_v18 }
  0x1b   :  { %30 = vst [vmem:[#allocation2 + $0x50] sm:$0xff] %v3892_v18 }
  0x1c   :  { %182 = vrot.lane.b32.xlu1 %v136_v56, %s3884_s15  ;;  %186 = vrot.lane.b32.xlu2 %v148_v3, %s3886_s17  ;;  %31 = vst [vmem:[#allocation2 + $0x58] sm:$0xff] %v3892_v18 }
  0x1d   :  { %178 = vrot.lane.b32.xlu0 %v104_v62, %s3885_s16  ;;  %32 = vst [vmem:[#allocation2 + $0x60] sm:$0xff] %v3892_v18 }
  0x1e   :  { %33 = vst [vmem:[#allocation2 + $0x68] sm:$0xff] %v3892_v18 }
  0x1f   :  { %34 = vst [vmem:[#allocation2 + $0x70] sm:$0xff] %v3892_v18 }
  0x20   :  { %35 = vst [vmem:[#allocation2 + $0x78] sm:$0xff] %v3892_v18 }
  0x21   :  { %36 = vst [vmem:[#allocation2 + $0x80] sm:$0xf] %v3892_v18 }
  0x22   :  { %37 = vst [vmem:[#allocation2 + $0x88] sm:$0xf] %v3892_v18 }
  0x23   :  { %38 = vst [vmem:[#allocation2 + $0x90] sm:$0xf] %v3892_v18 }
  0x24   :  { %194 = vrot.lane.b32.xlu1 %v150_v9, %s3887_s18  ;;  %198 = vrot.lane.b32.xlu2 %v146_v10, %s3889_s20  ;;  %39 = vst [vmem:[#allocation2 + $0x98] sm:$0xf] %v3892_v18 }
  0x25   :  { %190 = vrot.lane.b32.xlu0 %v140_v63, %s3888_s19 }
  0x2c   :  { %242 = vrot.lane.b32.xlu1 %v3929_v0, %s3890_s21  ;;  %244 = vrot.lane.b32.xlu2 %v3977_v23, %s3890_s21 }
  0x2d   :  { %202 = vrot.lane.b32.xlu0 %v152_v14, %s3891_s22 }
  0x34   :  { %248 = vrot.lane.b32.xlu1 %v3982_v24, %s3890_s21  ;;  %250 = vrot.lane.b32.xlu2 %v3939_v2, %s3890_s21 }
  0x35   :  { %246 = vrot.lane.b32.xlu0 %v3934_v1, %s3890_s21 }
  0x3c   :  { %254 = vrot.lane.b32.xlu1 %v3944_v5, %s3890_s21  ;;  %256 = vrot.lane.b32.xlu2 %v3966_v17, %s3890_s21 }
  0x3d   :  { %252 = vrot.lane.b32.xlu0 %v3955_v13, %s3890_s21 }
  0x44   :  { %444 = vrot.lane.b32.xlu1 %v3929_v0, %s3886_s17  ;;  %446 = vrot.lane.b32.xlu2 %v3977_v23, %s3886_s17 }
  0x45   :  { %448 = vrot.lane.b32.xlu0 %v3934_v1, %s3886_s17 }
  0x4c   :  { %450 = vrot.lane.b32.xlu1 %v3982_v24, %s3886_s17  ;;  %452 = vrot.lane.b32.xlu2 %v3939_v2, %s3886_s17 }
  0x4d   :  { %454 = vrot.lane.b32.xlu0 %v3955_v13, %s3886_s17 }
  0x54   :  { %456 = vrot.lane.b32.xlu1 %v3944_v5, %s3886_s17  ;;  %458 = vrot.lane.b32.xlu2 %v3966_v17, %s3886_s17 }
  0x66   :  { %v175_v15 = vpop.permute.xlu2 %174 }
  0x6e   :  { %v171_v16 = vpop.permute.xlu2 %170 }
  0x76   :  { %v187_v19 = vpop.permute.xlu2 %186 }
  0x7e   :  { %v167_v20 = vpop.permute.xlu1 %166  ;;  %v199_v22 = vpop.permute.xlu2 %198 }
  0x7f   :  { %v159_v21 = vpop.permute.xlu0 %158 }
  0x86   :  { %v163_v26 = vpop.permute.xlu1 %162  ;;  %v245_v33 = vpop.permute.xlu2 %244 }
  0x87   :  { %v155_v27 = vpop.permute.xlu0 %154  ;;  %v324_v4 = vrot.slane %v245_v33, 4 }
  0x88   :  { %v206_v28 = vsel %vm205_vm1, %v4001_v42, %v155_v27 }
  0x89   :  { %v208_v29 = vsel %vm207_vm2, %v206_v28, %v159_v21 }
  0x8a   :  { %v210_v30 = vsel %vm209_vm3, %v208_v29, %v163_v26 }
  0x8b   :  { %v212_v31 = vsel %vm211_vm4, %v210_v30, %v167_v20 }
  0x8c   :  { %v214_v32 = vsel %vm213_vm5, %v212_v31, %v171_v16 }
  0x8d   :  { %v216_v35 = vsel %vm215_vm6, %v214_v32, %v175_v15 }
  0x8e   :  { %v183_v34 = vpop.permute.xlu1 %182  ;;  %v251_v43 = vpop.permute.xlu2 %250 }
  0x8f   :  { %v179_v36 = vpop.permute.xlu0 %178  ;;  %v266_v50 = vrot.slane %v251_v43, 4 }
  0x90   :  { %v218_v37 = vsel %vm217_vm7, %v216_v35, %v179_v36 }
  0x91   :  { %v220_v38 = vsel %vm219_vm8, %v218_v37, %v183_v34 }
  0x92   :  { %v222_v39 = vsel %vm221_vm9, %v220_v38, %v187_v19 }
  0x93   :  { %231 = vst [vmem:[#allocation2] sm:$0xf] %v222_v39 }
  0x96   :  { %v195_v40 = vpop.permute.xlu1 %194  ;;  %v257_v49 = vpop.permute.xlu2 %256 }
  0x97   :  { %v191_v41 = vpop.permute.xlu0 %190  ;;  %v334_v60 = vrot.slane %v257_v49, 4 }
  0x98   :  { %v224_v42 = vsel %vm223_vm10, %v187_v19, %v191_v41 }
  0x99   :  { %v226_v44 = vsel %vm225_vm11, %v224_v42, %v195_v40 }
  0x9a   :  { %v228_v46 = vsel %vm227_vm12, %v226_v44, %v199_v22 }
  0x9e   :  { %v243_v45 = vpop.permute.xlu1 %242  ;;  %v4092_v61 = vpop.permute.xlu2 %446 }
  0x9f   :  { %v203_v47 = vpop.permute.xlu0 %202  ;;  %v268_v51 = vrot.slane %v243_v45, 4  ;;  %v267_v54 = vsel %vm49_vm0, %v266_v50, %v243_v45 }
  0xa0   :  { %v230_v48 = vsel %vm229_vm13, %v228_v46, %v203_v47  ;;  %v4089_v58 = vperm.slane %v267_v54, %v3949_v11 }
  0xa1   :  { %233 = vst.msk [vmem:[#allocation2 + $0x8] sm:$0xf] %vm6096_vm14, %v230_v48  ;;  %v269_v55 = vsel %vm49_vm0, %v251_v43, %v268_v51 }
  0xa2   :  { %v277_v59 = vperm.slane %v269_v55, %v3949_v11  ;;  %v292_v9 = vrot.slane %v4089_v58, 4 }
  0xa4   :  { %v304_v14 = vrot.slane %v277_v59, 4 }
  0xa6   :  { %v249_v52 = vpop.permute.xlu1 %248  ;;  %v453_v34 = vpop.permute.xlu2 %452 }
  0xa7   :  { %v247_v53 = vpop.permute.xlu0 %246  ;;  %v336_v56 = vrot.slane %v249_v52, 4  ;;  %v335_v10 = vsel %vm49_vm0, %v334_v60, %v249_v52  ;;  %v468_v47 = vrot.slane %v453_v34, 4 }
  0xa8   :  { %v280_v57 = vrot.slane %v247_v53, 4  ;;  %v341_v28 = vperm.slane %v335_v10, %v3949_v11 }
  0xa9   :  { %v337_v62 = vsel %vm49_vm0, %v257_v49, %v336_v56 }
  0xaa   :  { %v345_v15 = vperm.slane %v337_v62, %v3949_v11  ;;  %v346_v38 = vrot.slane %v341_v28, 4 }
  0xac   :  { %v358_v36 = vrot.slane %v345_v15, 4 }
  0xae   :  { %v255_v63 = vpop.permute.xlu1 %254  ;;  %v4139_v49 = vpop.permute.xlu2 %458 }
  0xaf   :  { %v253_v3 = vpop.permute.xlu0 %252  ;;  %v278_v6 = vrot.slane %v255_v63, 4  ;;  %v281_v7 = vsel %vm49_vm0, %v255_v63, %v280_v57 }
  0xb0   :  { %v322_v8 = vrot.slane %v253_v3, 4  ;;  %v289_v12 = vperm.slane %v281_v7, %v3949_v11  ;;  %v325_v19 = vsel %vm49_vm0, %v253_v3, %v324_v4 }
  0xb1   :  { %v279_v16 = vsel %vm49_vm0, %v278_v6, %v247_v53  ;;  %v333_v29 = vperm.slane %v325_v19, %v3949_v11  ;;  %v536_v53 = vrot.slane %v4139_v49, 4 }
  0xb2   :  { %v323_v18 = vsel %vm49_vm0, %v322_v8, %v245_v33  ;;  %v285_v20 = vperm.slane %v279_v16, %v3949_v11  ;;  %v302_v21 = vrot.slane %v289_v12, 4  ;;  %v305_v26 = vsel %vm49_vm0, %v289_v12, %v304_v14 }
  0xb3   :  { %v329_v22 = vperm.slane %v323_v18, %v3949_v11  ;;  %v4107_v27 = vperm.slane %v305_v26, %v3984_v25  ;;  %v359_v39 = vsel %vm49_vm0, %v358_v36, %v333_v29 }
  0xb4   :  { %v303_v30 = vsel %vm49_vm0, %v302_v21, %v277_v59  ;;  %v293_v31 = vsel %vm49_vm0, %v285_v20, %v292_v9  ;;  %v4126_v43 = vperm.slane %v359_v39, %v3984_v25  ;;  %v290_v57 = vrot.slane %v285_v20, 4 }
  0xb5   :  { %391 = vrot.lane.b32.xlu2 %v4107_v27, %s3880_s11  ;;  %v4116_v32 = vperm.slane %v303_v30, %v3984_v25  ;;  %v301_v33 = vperm.slane %v293_v31, %v3984_v25  ;;  %v348_v37 = vrot.slane %v329_v22, 4  ;;  %v347_v42 = vsel %vm49_vm0, %v346_v38, %v329_v22 }
  0xb6   :  { %v445_v35 = vpop.permute.xlu1 %444  ;;  %v353_v46 = vperm.slane %v347_v42, %v3984_v25  ;;  %v291_v18 = vsel %vm49_vm0, %v290_v57, %v4089_v58  ;;  %v4196_v39 = vrot.slane %v3966_v17, 1  ;;  %v4202_v42 = vrot.slane %v3982_v24, 1 }
  0xb7   :  { %383 = vrot.lane.b32.xlu0 %v4116_v32, %s3878_s9  ;;  %375 = vrot.lane.b32.xlu1 %v301_v33, %s3879_s10  ;;  %v449_v40 = vpop.permute.xlu0 %448  ;;  %v349_v41 = vsel %vm49_vm0, %v341_v28, %v348_v37  ;;  %v470_v44 = vrot.slane %v445_v35, 4  ;;  %v469_v51 = vsel %vm49_vm0, %v468_v47, %v445_v35  ;;  %v4179_v29 = vperm.slane %v291_v18, %v3984_v25 }
  0xb8   :  { %v4131_v45 = vperm.slane %v349_v41, %v3984_v25  ;;  %v482_v52 = vrot.slane %v449_v40, 4  ;;  %v475_v56 = vperm.slane %v469_v51, %v3949_v11  ;;  %v316_v58 = vrot.slane %v301_v33, 4 }
  0xb9   :  { %v471_v50 = vsel %vm49_vm0, %v453_v34, %v470_v44  ;;  %v314_v30 = vrot.slane %v4179_v29, 4  ;;  %v364_v37 = vrot.slane %v353_v46, 4  ;;  %v320_v33 = vrot.slane %v4107_v27, 4 }
  0xba   :  { %v479_v54 = vperm.slane %v471_v50, %v3949_v11  ;;  %v494_v7 = vrot.slane %v475_v56, 4  ;;  %v317_v34 = vsel %vm49_vm0, 0.0, %v316_v58  ;;  %v318_v38 = vrot.slane %v4116_v32, 4 }
  0xbb   :  { %v315_v36 = vsel %vm49_vm0, 0.0, %v314_v30  ;;  %v365_v41 = vsel %vm49_vm0, 0.0, %v364_v37  ;;  %v4205_v44 = vrot.slane %v3955_v13, 1  ;;  %v321_v27 = vsel %vm49_vm0, 0.0, %v320_v33 }
  0xbc   :  { %v506_v6 = vrot.slane %v479_v54, 4  ;;  %v319_v32 = vsel %vm49_vm0, 0.0, %v318_v38  ;;  %v646_v17 = vrot.slane %v3939_v2, 1  ;;  %v368_v50 = vrot.slane %v4126_v43, 4 }
  0xbd   :  { %415 = vrot.lane.b32.xlu2 %v4126_v43, %s3889_s20  ;;  %v4220_v51 = vrot.slane %v3977_v23, 1  ;;  %v640_v2 = vrot.slane %v3929_v0, 1  ;;  %v526_v23 = vrot.slane %v4092_v61, 4 }
  0xbe   :  { %v4134_v48 = vpop.permute.xlu1 %450 }
  0xbf   :  { %407 = vrot.lane.b32.xlu0 %v4131_v45, %s3888_s19  ;;  %399 = vrot.lane.b32.xlu1 %v353_v46, %s3884_s15  ;;  %v4145_v55 = vpop.permute.xlu0 %454  ;;  %v537_v60 = vsel %vm49_vm0, %v536_v53, %v4134_v48  ;;  %v538_v13 = vrot.slane %v4134_v48, 4  ;;  %v4232_v48 = vsel %vm6095_vm15, %v646_v17, %v4205_v44  ;;  %v728_v17 = vrot.slane %v4196_v39, 4 }
  0xc0   :  { %v524_v62 = vrot.slane %v4145_v55, 4  ;;  %v4155_v9 = vperm.slane %v537_v60, %v3949_v11 }
  0xc2   :  { %v525_v15 = vsel %vm49_vm0, %v524_v62, %v4092_v61  ;;  %v548_v26 = vrot.slane %v4155_v9, 4  ;;  %v4252_v61 = vsel %vm6095_vm15, %v640_v2, %v4220_v51 }
  0xc3   :  { %v4176_v28 = vperm.slane %v525_v15, %v3949_v11 }
  0xc5   :  { %v549_v31 = vsel %vm49_vm0, %v548_v26, %v4176_v28  ;;  %v550_v62 = vrot.slane %v4176_v28, 4 }
  0xc6   :  { %v457_v59 = vpop.permute.xlu1 %456  ;;  %v555_v35 = vperm.slane %v549_v31, %v3984_v25 }
  0xc7   :  { %v480_v63 = vrot.slane %v457_v59, 4  ;;  %v483_v3 = vsel %vm49_vm0, %v457_v59, %v482_v52  ;;  %v366_v52 = vrot.slane %v4131_v45, 4  ;;  %v539_v45 = vsel %vm49_vm0, %v4139_v49, %v538_v13 }
  0xc8   :  { %v491_v4 = vperm.slane %v483_v3, %v3949_v11  ;;  %v660_v59 = vrot.slane %v4232_v48, 4  ;;  %v547_v49 = vperm.slane %v539_v45, %v3949_v11  ;;  %v527_v3 = vsel %vm49_vm0, %v4145_v55, %v526_v23 }
  0xc9   :  { %v481_v8 = vsel %vm49_vm0, %v480_v63, %v449_v40  ;;  %v649_v40 = vrot.slane %v3944_v5, 1  ;;  %v643_v5 = vrot.slane %v3934_v1, 1  ;;  %v367_v0 = vsel %vm49_vm0, 0.0, %v366_v52 }
  0xca   :  { %v487_v10 = vperm.slane %v481_v8, %v3949_v11  ;;  %v504_v12 = vrot.slane %v491_v4, 4  ;;  %v507_v14 = vsel %vm49_vm0, %v491_v4, %v506_v6  ;;  %v566_v63 = vrot.slane %v555_v35, 4 }
  0xcb   :  { %v4162_v16 = vperm.slane %v507_v14, %v3984_v25  ;;  %v4215_v24 = vsel %vm6095_vm15, %v649_v40, %v4196_v39  ;;  %v661_v8 = vsel %vm49_vm0, %v660_v59, %v4252_v61  ;;  %v535_v14 = vperm.slane %v527_v3, %v3949_v11 }
  0xcc   :  { %v505_v19 = vsel %vm49_vm0, %v504_v12, %v479_v54  ;;  %v495_v20 = vsel %vm49_vm0, %v487_v10, %v494_v7  ;;  %v492_v46 = vrot.slane %v487_v10, 4  ;;  %v672_v53 = vrot.slane %v4215_v24, 4 }
  0xcd   :  { %593 = vrot.lane.b32.xlu2 %v4162_v16, %s3880_s11  ;;  %v4171_v21 = vperm.slane %v505_v19, %v3984_v25  ;;  %v503_v22 = vperm.slane %v495_v20, %v3984_v25  ;;  %v4228_v54 = vsel %vm6095_vm15, %v643_v5, %v4202_v42  ;;  %v551_v10 = vsel %vm49_vm0, %v4155_v9, %v550_v62 }
  0xce   :  { %v493_v1 = vsel %vm49_vm0, %v492_v46, %v475_v56  ;;  %v369_v56 = vsel %vm49_vm0, 0.0, %v368_v50  ;;  %v673_v60 = vsel %vm49_vm0, %v672_v53, %v4228_v54  ;;  %v674_v12 = vrot.slane %v4228_v54, 4 }
  0xcf   :  { %585 = vrot.lane.b32.xlu0 %v4171_v21, %s3878_s9  ;;  %577 = vrot.lane.b32.xlu1 %v503_v22, %s3879_s10  ;;  %v518_v47 = vrot.slane %v503_v22, 4  ;;  %v4242_v57 = vperm.slane %v493_v1, %v3984_v25  ;;  %v679_v4 = vperm.slane %v673_v60, %v3949_v11  ;;  %v520_v7 = vrot.slane %v4171_v21, 4 }
  0xd0   :  { %v567_v15 = vsel %vm49_vm0, 0.0, %v566_v63  ;;  %v560_v18 = vrot.slane %v547_v49, 4  ;;  %v667_v55 = vperm.slane %v661_v8, %v3949_v11  ;;  %v559_v22 = vperm.slane %v551_v10, %v3984_v25 }
  0xd1   :  { %v519_v43 = vsel %vm49_vm0, 0.0, %v518_v47  ;;  %v516_v6 = vrot.slane %v4242_v57, 4  ;;  %v684_v19 = vrot.slane %v679_v4, 4  ;;  %v521_v21 = vsel %vm49_vm0, 0.0, %v520_v7 }
  0xd2   :  { %v662_v9 = vrot.slane %v4252_v61, 4  ;;  %v675_v26 = vsel %vm49_vm0, %v4215_v24, %v674_v12  ;;  %v561_v28 = vsel %vm49_vm0, %v560_v18, %v535_v14  ;;  %v522_v30 = vrot.slane %v4162_v16, 4 }
  0xd3   :  { %v517_v20 = vsel %vm49_vm0, 0.0, %v516_v6  ;;  %v685_v58 = vsel %vm49_vm0, %v684_v19, %v667_v55  ;;  %v568_v31 = vrot.slane %v559_v22, 4  ;;  %v686_v33 = vrot.slane %v667_v55, 4 }
  0xd4   :  { %v4285_v37 = vperm.slane %v685_v58, %v3984_v25  ;;  %v523_v38 = vsel %vm49_vm0, 0.0, %v522_v30  ;;  %v716_v52 = vrot.slane %v4205_v44, 4  ;;  %v729_v53 = vsel %vm49_vm0, %v728_v17, %v4202_v42 }
  0xd5   :  { %379 = vrot.lane.b32.xlu2 %v317_v34, %s3881_s12  ;;  %v683_v34 = vperm.slane %v675_v26, %v3949_v11  ;;  %v569_v40 = vsel %vm49_vm0, 0.0, %v568_v31  ;;  %v735_v45 = vperm.slane %v729_v53, %v3949_v11  ;;  %v718_v63 = vrot.slane %v4220_v51, 4 }
  0xd6   :  { %vm6098_vm15 = vcmask 556036  }
  0xd7   :  { %371 = vrot.lane.b32.xlu0 %v315_v36, %s3882_s13  ;;  %601 = vrot.lane.b32.xlu1 %v555_v35, %s3884_s15  ;;  %v565_v35 = vperm.slane %v561_v28, %v3984_v25  ;;  %v663_v36 = vsel %vm49_vm0, %v4232_v48, %v662_v9  ;;  %v740_v62 = vrot.slane %v735_v45, 4  ;;  %v719_v12 = vsel %vm49_vm0, %v4205_v44, %v718_v63 }
  0xd8   :  { %v671_v16 = vperm.slane %v663_v36, %v3949_v11  ;;  %v727_v19 = vperm.slane %v719_v12, %v3949_v11 }
  0xd9   :  { %v570_v23 = vrot.slane %v565_v35, 4 }
  0xda   :  { %v698_v50 = vrot.slane %v671_v16, 4 }
  0xdb   :  { %v571_v49 = vsel %vm49_vm0, 0.0, %v570_v23 }
  0xdc   :  { %v699_v2 = vsel %vm49_vm0, %v683_v34, %v698_v50 }
  0xdd   :  { %403 = vrot.lane.b32.xlu2 %v365_v41, %s3886_s17  ;;  %v696_v41 = vrot.slane %v683_v34, 4  ;;  %v707_v59 = vperm.slane %v699_v2, %v3984_v25 }
  0xdf   :  { %395 = vrot.lane.b32.xlu0 %v321_v27, %s3885_s16  ;;  %387 = vrot.lane.b32.xlu1 %v319_v32, %s3883_s14  ;;  %v708_v27 = vrot.slane %v4285_v37, 4  ;;  %v687_v32 = vsel %vm49_vm0, %v679_v4, %v686_v33  ;;  %v697_v46 = vsel %vm49_vm0, %v696_v41, %v671_v16  ;;  %v714_v6 = vrot.slane %v707_v59, 4 }
  0xe0   :  { %v695_v5 = vperm.slane %v687_v32, %v3984_v25  ;;  %v703_v13 = vperm.slane %v697_v46, %v3984_v25 }
  0xe1   :  { %v709_v47 = vsel %vm49_vm0, 0.0, %v708_v27  ;;  %v715_v18 = vsel %vm49_vm0, 0.0, %v714_v6 }
  0xe2   :  { %v712_v1 = vrot.slane %v703_v13, 4  ;;  %v710_v4 = vrot.slane %v695_v5, 4 }
  0xe5   :  { %581 = vrot.lane.b32.xlu2 %v519_v43, %s3881_s12  ;;  %v717_v43 = vsel %vm49_vm0, %v716_v52, %v4220_v51 }
  0xe6   :  { %v723_v60 = vperm.slane %v717_v43, %v3949_v11 }
  0xe7   :  { %419 = vrot.lane.b32.xlu0 %v369_v56, %s3891_s22  ;;  %411 = vrot.lane.b32.xlu1 %v367_v0, %s3887_s18  ;;  %v730_v56 = vrot.slane %v4202_v42, 4  ;;  %v713_v0 = vsel %vm49_vm0, 0.0, %v712_v1 }
  0xe8   :  { %v742_v7 = vrot.slane %v723_v60, 4  ;;  %v741_v8 = vsel %vm49_vm0, %v740_v62, %v723_v60 }
  0xe9   :  { %v731_v3 = vsel %vm49_vm0, %v4196_v39, %v730_v56  ;;  %v747_v14 = vperm.slane %v741_v8, %v3984_v25 }
  0xea   :  { %v739_v10 = vperm.slane %v731_v3, %v3949_v11  ;;  %v743_v55 = vsel %vm49_vm0, %v735_v45, %v742_v7 }
  0xeb   :  { %v758_v30 = vrot.slane %v747_v14, 4 }
  0xed   :  { %605 = vrot.lane.b32.xlu2 %v567_v15, %s3886_s17  ;;  %v711_v15 = vsel %vm49_vm0, 0.0, %v710_v4  ;;  %v759_v34 = vsel %vm49_vm0, 0.0, %v758_v30 }
  0xef   :  { %573 = vrot.lane.b32.xlu0 %v517_v20, %s3882_s13  ;;  %589 = vrot.lane.b32.xlu1 %v521_v21, %s3883_s14  ;;  %v752_v20 = vrot.slane %v739_v10, 4  ;;  %v751_v21 = vperm.slane %v743_v55, %v3984_v25 }
  0xf1   :  { %v760_v9 = vrot.slane %v751_v21, 4 }
  0xf3   :  { %v761_v26 = vsel %vm49_vm0, 0.0, %v760_v9 }
  0xf5   :  { %617 = vrot.lane.b32.xlu2 %v565_v35, %s3889_s20 }
  0xf7   :  { %597 = vrot.lane.b32.xlu0 %v523_v38, %s3885_s16  ;;  %613 = vrot.lane.b32.xlu1 %v569_v40, %s3887_s18 }
  0xfd   :  { %769 = vrot.lane.b32.xlu2 %v695_v5, %s3879_s10 }
  0xff   :  { %609 = vrot.lane.b32.xlu0 %v559_v22, %s3888_s19  ;;  %765 = vrot.lane.b32.xlu1 %v709_v47, %s3882_s13  ;;  %v753_v22 = vsel %vm49_vm0, %v752_v20, %v727_v19 }
 0x100   :  { %v757_v28 = vperm.slane %v753_v22, %v3984_v25 }
 0x102   :  { %v762_v31 = vrot.slane %v757_v28, 4 }
 0x104   :  { %v763_v35 = vsel %vm49_vm0, 0.0, %v762_v31 }
 0x105   :  { %781 = vrot.lane.b32.xlu2 %v713_v0, %s3883_s14 }
 0x107   :  { %621 = vrot.lane.b32.xlu0 %v571_v49, %s3891_s22  ;;  %777 = vrot.lane.b32.xlu1 %v703_v13, %s3878_s9 }
 0x10d   :  { %793 = vrot.lane.b32.xlu2 %v747_v14, %s3884_s15 }
 0x10f   :  { %773 = vrot.lane.b32.xlu0 %v711_v15, %s3881_s12  ;;  %789 = vrot.lane.b32.xlu1 %v715_v18, %s3885_s16  ;;  %v392_v58 = vpop.permute.xlu2 %391 }
 0x115   :  { %805 = vrot.lane.b32.xlu2 %v761_v26, %s3887_s18 }
 0x117   :  { %785 = vrot.lane.b32.xlu0 %v707_v59, %s3880_s11  ;;  %801 = vrot.lane.b32.xlu1 %v751_v21, %s3888_s19  ;;  %v416_v36 = vpop.permute.xlu2 %415 }
 0x11d   :  { %837 = vrot.lane.b32.xlu2 %v4252_v61, %s3890_s21 }
 0x11f   :  { %797 = vrot.lane.b32.xlu0 %v759_v34, %s3886_s17  ;;  %813 = vrot.lane.b32.xlu1 %v763_v35, %s3891_s22 }
 0x125   :  { %843 = vrot.lane.b32.xlu2 %v4202_v42, %s3890_s21 }
 0x127   :  { %v594_v33 = vpop.permute.xlu2 %593  ;;  %809 = vrot.lane.b32.xlu0 %v757_v28, %s3889_s20  ;;  %841 = vrot.lane.b32.xlu1 %v4228_v54, %s3890_s21 }
 0x129   :  { %v376_v38 = vpop.permute.xlu1 %375  ;;  %v384_v40 = vpop.permute.xlu0 %383 }
 0x12d   :  { %849 = vrot.lane.b32.xlu2 %v4215_v24, %s3890_s21 }
 0x12f   :  { %839 = vrot.lane.b32.xlu0 %v4220_v51, %s3890_s21  ;;  %847 = vrot.lane.b32.xlu1 %v4205_v44, %s3890_s21  ;;  %v380_v16 = vpop.permute.xlu2 %379 }
 0x131   :  { %v400_v41 = vpop.permute.xlu1 %399  ;;  %v408_v27 = vpop.permute.xlu0 %407 }
 0x137   :  { %845 = vrot.lane.b32.xlu0 %v4232_v48, %s3890_s21  ;;  %v404_v32 = vpop.permute.xlu2 %403 }
 0x138   :  { %v431_v49 = vsel %vm223_vm10, %v404_v32, %v408_v27 }
 0x13f   :  { %851 = vrot.lane.b32.xlu0 %v4196_v39, %s3890_s21  ;;  %v582_v17 = vpop.permute.xlu2 %581 }
 0x141   :  { %v578_v46 = vpop.permute.xlu1 %577  ;;  %v586_v5 = vpop.permute.xlu0 %585 }
 0x147   :  { %v606_v53 = vpop.permute.xlu2 %605 }
 0x149   :  { %v602_v47 = vpop.permute.xlu1 %601  ;;  %v372_v13 = vpop.permute.xlu0 %371 }
 0x14a   :  { %v422_v50 = vsel %vm205_vm1, %v4179_v29, %v372_v13 }
 0x14b   :  { %v423_v52 = vsel %vm207_vm2, %v422_v50, %v376_v38 }
 0x14c   :  { %v424_v1 = vsel %vm209_vm3, %v423_v52, %v380_v16 }
 0x14d   :  { %v425_v43 = vsel %vm211_vm4, %v424_v1, %v384_v40 }
 0x14f   :  { %v618_v62 = vpop.permute.xlu2 %617 }
 0x151   :  { %v388_v2 = vpop.permute.xlu1 %387  ;;  %v396_v23 = vpop.permute.xlu0 %395 }
 0x152   :  { %v426_v45 = vsel %vm213_vm5, %v425_v43, %v388_v2 }
 0x153   :  { %v427_v56 = vsel %vm215_vm6, %v426_v45, %v392_v58 }
 0x154   :  { %v428_v0 = vsel %vm217_vm7, %v427_v56, %v396_v23 }
 0x155   :  { %v429_v59 = vsel %vm219_vm8, %v428_v0, %v400_v41 }
 0x156   :  { %v430_v60 = vsel %vm221_vm9, %v429_v59, %v404_v32 }
 0x157   :  { %v437_v29 = vrot.slane %v430_v60, 4  ;;  %v770_v10 = vpop.permute.xlu2 %769 }
 0x159   :  { %441 = vst [vmem:[#allocation2] sm:$0xf0] %v437_v29  ;;  %v412_v63 = vpop.permute.xlu1 %411  ;;  %v420_v3 = vpop.permute.xlu0 %419 }
 0x15a   :  { %v432_v4 = vsel %vm225_vm11, %v431_v49, %v412_v63 }
 0x15b   :  { %v433_v6 = vsel %vm227_vm12, %v432_v4, %v416_v36 }
 0x15c   :  { %v434_v7 = vsel %vm229_vm13, %v433_v6, %v420_v3 }
 0x15d   :  { %v438_v8 = vrot.slane %v434_v7, 4 }
 0x15f   :  { %443 = vst.msk [vmem:[#allocation2 + $0x8] sm:$0xf0] %vm6098_vm15, %v438_v8  ;;  %v782_v58 = vpop.permute.xlu2 %781 }
 0x161   :  { %v590_v12 = vpop.permute.xlu1 %589  ;;  %v574_v14 = vpop.permute.xlu0 %573 }
 0x162   :  { %v624_v15 = vsel %vm205_vm1, %v4242_v57, %v574_v14 }
 0x163   :  { %v625_v18 = vsel %vm207_vm2, %v624_v15, %v578_v46 }
 0x164   :  { %v626_v55 = vsel %vm209_vm3, %v625_v18, %v582_v17 }
 0x165   :  { %v627_v19 = vsel %vm211_vm4, %v626_v55, %v586_v5 }
 0x166   :  { %v628_v20 = vsel %vm213_vm5, %v627_v19, %v590_v12 }
 0x167   :  { %v629_v22 = vsel %vm215_vm6, %v628_v20, %v594_v33  ;;  %v794_v35 = vpop.permute.xlu2 %793 }
 0x169   :  { %v614_v21 = vpop.permute.xlu1 %613  ;;  %v598_v9 = vpop.permute.xlu0 %597 }
 0x16a   :  { %v630_v26 = vsel %vm217_vm7, %v629_v22, %v598_v9 }
 0x16b   :  { %v631_v28 = vsel %vm219_vm8, %v630_v26, %v602_v47 }
 0x16c   :  { %v632_v30 = vsel %vm221_vm9, %v631_v28, %v606_v53 }
 0x16d   :  { %637 = vst [vmem:[#allocation2 + $0x20] sm:$0xf] %v632_v30 }
 0x16f   :  { %v806_v41 = vpop.permute.xlu2 %805 }
 0x171   :  { %v766_v57 = vpop.permute.xlu1 %765  ;;  %v610_v31 = vpop.permute.xlu0 %609 }
 0x172   :  { %v633_v34 = vsel %vm223_vm10, %v606_v53, %v610_v31  ;;  %v816_v27 = vsel %vm205_vm1, %v4285_v37, %v766_v57 }
 0x173   :  { %v634_v36 = vsel %vm225_vm11, %v633_v34, %v614_v21  ;;  %v817_v5 = vsel %vm207_vm2, %v816_v27, %v770_v10 }
 0x174   :  { %v635_v40 = vsel %vm227_vm12, %v634_v36, %v618_v62 }
 0x177   :  { %v838_v50 = vpop.permute.xlu2 %837 }
 0x178   :  { %v863_v15 = vrot.slane %v838_v50, 4 }
 0x179   :  { %v778_v38 = vpop.permute.xlu1 %777  ;;  %v622_v33 = vpop.permute.xlu0 %621 }
 0x17a   :  { %v636_v16 = vsel %vm229_vm13, %v635_v40, %v622_v33 }
 0x17b   :  { %638 = vst.msk [vmem:[#allocation2 + $0x28] sm:$0xf] %vm6096_vm14, %v636_v16 }
 0x17f   :  { %v4401_v56 = vpop.permute.xlu2 %843 }
 0x181   :  { %v774_v32 = vpop.permute.xlu0 %773  ;;  %v790_v46 = vpop.permute.xlu1 %789 }
 0x182   :  { %v818_v17 = vsel %vm209_vm3, %v817_v5, %v774_v32 }
 0x183   :  { %v819_v47 = vsel %vm211_vm4, %v818_v17, %v778_v38 }
 0x184   :  { %v820_v52 = vsel %vm213_vm5, %v819_v47, %v782_v58 }
 0x187   :  { %v850_v3 = vpop.permute.xlu2 %849 }
 0x188   :  { %v873_v6 = vrot.slane %v850_v3, 4 }
 0x189   :  { %v786_v13 = vpop.permute.xlu0 %785  ;;  %v802_v1 = vpop.permute.xlu1 %801 }
 0x18a   :  { %v821_v53 = vsel %vm215_vm6, %v820_v52, %v786_v13 }
 0x18b   :  { %v822_v2 = vsel %vm217_vm7, %v821_v53, %v790_v46 }
 0x18c   :  { %v823_v43 = vsel %vm219_vm8, %v822_v2, %v794_v35 }
 0x191   :  { %v798_v37 = vpop.permute.xlu0 %797  ;;  %v814_v0 = vpop.permute.xlu1 %813 }
 0x192   :  { %v824_v23 = vsel %vm221_vm9, %v823_v43, %v798_v37  ;;  %v825_v59 = vsel %vm223_vm10, %v798_v37, %v802_v1  ;;  %v931_v37 = vrot.slane %v4401_v56, 4 }
 0x193   :  { %v831_v45 = vrot.slane %v824_v23, 4  ;;  %v826_v60 = vsel %vm225_vm11, %v825_v59, %v806_v41 }
 0x195   :  { %835 = vst [vmem:[#allocation2 + $0x20] sm:$0xf0] %v831_v45 }
 0x199   :  { %v810_v29 = vpop.permute.xlu0 %809  ;;  %v842_v4 = vpop.permute.xlu1 %841 }
 0x19a   :  { %v827_v62 = vsel %vm227_vm12, %v826_v60, %v810_v29  ;;  %v875_v7 = vrot.slane %v842_v4, 4  ;;  %v874_v10 = vsel %vm49_vm0, %v873_v6, %v842_v4 }
 0x19b   :  { %v828_v49 = vsel %vm229_vm13, %v827_v62, %v814_v0  ;;  %v880_v14 = vperm.slane %v874_v10, %v3949_v11 }
 0x19c   :  { %v832_v63 = vrot.slane %v828_v49, 4  ;;  %v876_v12 = vsel %vm49_vm0, %v850_v3, %v875_v7 }
 0x19d   :  { %v884_v18 = vperm.slane %v876_v12, %v3949_v11  ;;  %v885_v21 = vrot.slane %v880_v14, 4 }
 0x19e   :  { %836 = vst.msk [vmem:[#allocation2 + $0x28] sm:$0xf0] %vm6098_vm15, %v832_v63 }
 0x19f   :  { %v897_v22 = vrot.slane %v884_v18, 4 }
 0x1a1   :  { %v840_v8 = vpop.permute.xlu0 %839  ;;  %v848_v58 = vpop.permute.xlu1 %847 }
 0x1a2   :  { %v917_v38 = vrot.slane %v848_v58, 4  ;;  %v919_v60 = vrot.slane %v840_v8, 4 }
 0x1a4   :  { %v918_v47 = vsel %vm49_vm0, %v917_v38, %v840_v8  ;;  %v920_v3 = vsel %vm49_vm0, %v848_v58, %v919_v60 }
 0x1a5   :  { %v924_v53 = vperm.slane %v918_v47, %v3949_v11  ;;  %v928_v8 = vperm.slane %v920_v3, %v3949_v11 }
 0x1a7   :  { %v943_v45 = vrot.slane %v924_v53, 4 }
 0x1a9   :  { %v846_v55 = vpop.permute.xlu0 %845 }
 0x1aa   :  { %v861_v19 = vrot.slane %v846_v55, 4  ;;  %v864_v20 = vsel %vm49_vm0, %v846_v55, %v863_v15 }
 0x1ab   :  { %v872_v26 = vperm.slane %v864_v20, %v3949_v11 }
 0x1ac   :  { %v862_v9 = vsel %vm49_vm0, %v861_v19, %v838_v50 }
 0x1ad   :  { %v868_v28 = vperm.slane %v862_v9, %v3949_v11  ;;  %v898_v34 = vsel %vm49_vm0, %v897_v22, %v872_v26  ;;  %v899_v5 = vrot.slane %v872_v26, 4 }
 0x1ae   :  { %v904_v41 = vperm.slane %v898_v34, %v3984_v25 }
 0x1af   :  { %v887_v30 = vrot.slane %v868_v28, 4  ;;  %v886_v57 = vsel %vm49_vm0, %v885_v21, %v868_v28  ;;  %v900_v1 = vsel %vm49_vm0, %v884_v18, %v899_v5 }
 0x1b0   :  { %v4418_v31 = vperm.slane %v886_v57, %v3984_v25  ;;  %v913_v50 = vrot.slane %v904_v41, 4  ;;  %v908_v23 = vperm.slane %v900_v1, %v3984_v25 }
 0x1b1   :  { %v852_v35 = vpop.permute.xlu0 %851  ;;  %v888_v36 = vsel %vm49_vm0, %v880_v14, %v887_v30 }
 0x1b2   :  { %v929_v40 = vrot.slane %v852_v35, 4  ;;  %v896_v33 = vperm.slane %v888_v36, %v3984_v25  ;;  %v909_v16 = vrot.slane %v4418_v31, 4  ;;  %v914_v2 = vsel %vm49_vm0, 0.0, %v913_v50 }
 0x1b3   :  { %v932_v0 = vsel %vm49_vm0, %v852_v35, %v931_v37  ;;  %v915_v29 = vrot.slane %v908_v23, 4 }
 0x1b4   :  { %v930_v27 = vsel %vm49_vm0, %v929_v40, %v4401_v56  ;;  %970 = vrot.lane.b32.xlu2 %v896_v33, %s3879_s10  ;;  %v910_v32 = vsel %vm49_vm0, 0.0, %v909_v16  ;;  %v911_v46 = vrot.slane %v896_v33, 4  ;;  %v940_v49 = vperm.slane %v932_v0, %v3949_v11 }
 0x1b5   :  { %v936_v17 = vperm.slane %v930_v27, %v3949_v11  ;;  %966 = vrot.lane.b32.xlu1 %v910_v32, %s3882_s13  ;;  %v916_v4 = vsel %vm49_vm0, 0.0, %v915_v29 }
 0x1b6   :  { %v912_v13 = vsel %vm49_vm0, 0.0, %v911_v46  ;;  %v953_v6 = vrot.slane %v940_v49, 4 }
 0x1b7   :  { %974 = vrot.lane.b32.xlu0 %v912_v13, %s3881_s12  ;;  %v941_v52 = vrot.slane %v936_v17, 4  ;;  %v944_v62 = vsel %vm49_vm0, %v936_v17, %v943_v45 }
 0x1b8   :  { %v952_v63 = vperm.slane %v944_v62, %v3984_v25  ;;  %v954_v12 = vsel %vm49_vm0, %v953_v6, %v928_v8 }
 0x1b9   :  { %v942_v43 = vsel %vm49_vm0, %v941_v52, %v924_v53  ;;  %v958_v15 = vperm.slane %v954_v12, %v3984_v25 }
 0x1ba   :  { %v948_v59 = vperm.slane %v942_v43, %v3984_v25  ;;  %v961_v10 = vrot.slane %v952_v63, 4 }
 0x1bb   :  { %v963_v18 = vrot.slane %v958_v15, 4 }
 0x1bc   :  { %982 = vrot.lane.b32.xlu2 %v914_v2, %s3883_s14  ;;  %v959_v56 = vrot.slane %v948_v59, 4  ;;  %v962_v14 = vsel %vm49_vm0, 0.0, %v961_v10 }
 0x1bd   :  { %978 = vrot.lane.b32.xlu1 %v904_v41, %s3878_s9  ;;  %v964_v55 = vsel %vm49_vm0, 0.0, %v963_v18 }
 0x1be   :  { %v960_v7 = vsel %vm49_vm0, 0.0, %v959_v56 }
 0x1bf   :  { %986 = vrot.lane.b32.xlu0 %v908_v23, %s3880_s11 }
 0x1c4   :  { %994 = vrot.lane.b32.xlu2 %v948_v59, %s3884_s15 }
 0x1c5   :  { %990 = vrot.lane.b32.xlu1 %v916_v4, %s3885_s16 }
 0x1c7   :  { %998 = vrot.lane.b32.xlu0 %v960_v7, %s3886_s17 }
 0x1cc   :  { %1006 = vrot.lane.b32.xlu2 %v962_v14, %s3887_s18 }
 0x1cd   :  { %1002 = vrot.lane.b32.xlu1 %v952_v63, %s3888_s19 }
 0x1cf   :  { %1010 = vrot.lane.b32.xlu0 %v958_v15, %s3889_s20 }
 0x1d4   :  { %1032 = vrot.lane.b32.xlu2 %v4252_v61, %s3886_s17 }
 0x1d5   :  { %1014 = vrot.lane.b32.xlu1 %v964_v55, %s3891_s22 }
 0x1d7   :  { %1034 = vrot.lane.b32.xlu0 %v4220_v51, %s3886_s17 }
 0x1dc   :  { %1038 = vrot.lane.b32.xlu2 %v4202_v42, %s3886_s17 }
 0x1dd   :  { %1036 = vrot.lane.b32.xlu1 %v4228_v54, %s3886_s17 }
 0x1df   :  { %1040 = vrot.lane.b32.xlu0 %v4232_v48, %s3886_s17 }
 0x1e4   :  { %1044 = vrot.lane.b32.xlu2 %v4215_v24, %s3886_s17 }
 0x1e5   :  { %1042 = vrot.lane.b32.xlu1 %v4205_v44, %s3886_s17 }
 0x1e7   :  { %1046 = vrot.lane.b32.xlu0 %v4196_v39, %s3886_s17 }
 0x20e   :  { %v971_v61 = vpop.permute.xlu2 %970 }
 0x216   :  { %v983_v51 = vpop.permute.xlu2 %982 }
 0x21e   :  { %v995_v19 = vpop.permute.xlu2 %994 }
 0x226   :  { %v1007_v21 = vpop.permute.xlu2 %1006 }
 0x227   :  { %v967_v20 = vpop.permute.xlu1 %966 }
 0x228   :  { %v1017_v54 = vsel %vm205_vm1, %v4418_v31, %v967_v20 }
 0x229   :  { %v975_v42 = vpop.permute.xlu0 %974  ;;  %v1018_v48 = vsel %vm207_vm2, %v1017_v54, %v971_v61  ;;  %v3869_v54 = vld [vmem:[%s6089_s0 + $0x20] sm:$0xff] }
 0x22a   :  { %v1019_v24 = vsel %vm209_vm3, %v1018_v48, %v975_v42 }
 0x22e   :  { %v1033_v39 = vpop.permute.xlu2 %1032 }
 0x22f   :  { %v979_v22 = vpop.permute.xlu1 %978  ;;  %v1058_v50 = vrot.slane %v1033_v39, 4 }
 0x230   :  { %v1020_v9 = vsel %vm211_vm4, %v1019_v24, %v979_v22 }
 0x231   :  { %v987_v44 = vpop.permute.xlu0 %986  ;;  %v1021_v26 = vsel %vm213_vm5, %v1020_v9, %v983_v51  ;;  %v3868_v51 = vld [vmem:[%s6089_s0 + $0x28] sm:$0xff]  ;;  %v3870_v9 = vld [vmem:[%s6089_s0 + $0x10] sm:$0xff] }
 0x232   :  { %v1022_v28 = vsel %vm215_vm6, %v1021_v26, %v987_v44  ;;  %v1237_v44 = vrot.slane %v3870_v9, 2  ;;  %v3871_v26 = vld [vmem:[%s6089_s0 + $0x18] sm:$0xff] }
 0x236   :  { %v4489_v36 = vpop.permute.xlu2 %1038 }
 0x237   :  { %v991_v58 = vpop.permute.xlu1 %990 }
 0x238   :  { %v1023_v30 = vsel %vm217_vm7, %v1022_v28, %v991_v58  ;;  %v3872_v28 = vld [vmem:[%s6089_s0 + $0x30] sm:$0xff] }
 0x239   :  { %v1024_v57 = vsel %vm219_vm8, %v1023_v30, %v995_v19  ;;  %v999_v31 = vpop.permute.xlu0 %998  ;;  %v4528_v19 = vrot.slane %v3868_v51, 2  ;;  %v1243_v58 = vrot.slane %v3872_v28, 2  ;;  %v3873_v30 = vld [vmem:[%s6089_s0 + $0x38] sm:$0xff] }
 0x23a   :  { %v1025_v34 = vsel %vm221_vm9, %v1024_v57, %v999_v31  ;;  %v4551_v57 = vrot.slane %v3873_v30, 2 }
 0x23b   :  { %1030 = vst [vmem:[#allocation2 + $0x40] sm:$0xf] %v1025_v34  ;;  %v1310_v30 = vrot.slane %v4528_v19, 4 }
 0x23e   :  { %v1045_v46 = vpop.permute.xlu2 %1044 }
 0x23f   :  { %v1003_v35 = vpop.permute.xlu1 %1002  ;;  %v1068_v5 = vrot.slane %v1045_v46, 4 }
 0x240   :  { %v1026_v38 = vsel %vm223_vm10, %v999_v31, %v1003_v35  ;;  %v3874_v31 = vld [vmem:[%s6089_s0 + $0x8] sm:$0xff] }
 0x241   :  { %v1011_v40 = vpop.permute.xlu0 %1010  ;;  %v1027_v33 = vsel %vm225_vm11, %v1026_v38, %v1007_v21  ;;  %v1240_v21 = vrot.slane %v3869_v54, 2  ;;  %v4556_v34 = vrot.slane %v3874_v31, 2  ;;  %v3875_v38 = vld [vmem:[%s6089_s0] sm:$0xff] }
 0x242   :  { %v1028_v16 = vsel %vm227_vm12, %v1027_v33, %v1011_v40  ;;  %v1234_v40 = vrot.slane %v3875_v38, 2 }
 0x247   :  { %v1015_v41 = vpop.permute.xlu1 %1014 }
 0x248   :  { %v1029_v27 = vsel %vm229_vm13, %v1028_v16, %v1015_v41 }
 0x249   :  { %1031 = vst.msk [vmem:[#allocation2 + $0x48] sm:$0xf] %vm6096_vm14, %v1029_v27  ;;  %v4496_v32 = vpop.permute.xlu0 %1034  ;;  %vm6097_vm14 = vcmask 1045504  }
 0x24a   :  { %v4564_v33 = vsel %vm6097_vm14, %v1240_v21, %v4528_v19  ;;  %v4570_v27 = vsel %vm6097_vm14, %v1243_v58, %v4551_v57 }
 0x24f   :  { %v1037_v17 = vpop.permute.xlu1 %1036 }
 0x250   :  { %v1070_v47 = vrot.slane %v1037_v17, 4  ;;  %v1069_v13 = vsel %vm49_vm0, %v1068_v5, %v1037_v17 }
 0x251   :  { %v1075_v52 = vperm.slane %v1069_v13, %v3949_v11  ;;  %v1041_v53 = vpop.permute.xlu0 %1040  ;;  %v1254_v13 = vrot.slane %v4564_v33, 4 }
 0x252   :  { %v1071_v1 = vsel %vm49_vm0, %v1045_v46, %v1070_v47  ;;  %v1056_v2 = vrot.slane %v1041_v53, 4  ;;  %v1059_v23 = vsel %vm49_vm0, %v1041_v53, %v1058_v50  ;;  %v1126_v46 = vrot.slane %v4489_v36, 4 }
 0x253   :  { %v1079_v43 = vperm.slane %v1071_v1, %v3949_v11  ;;  %v1080_v37 = vrot.slane %v1075_v52, 4  ;;  %v1067_v60 = vperm.slane %v1059_v23, %v3949_v11  ;;  %v1266_v50 = vrot.slane %v4570_v27, 4 }
 0x254   :  { %v1057_v45 = vsel %vm49_vm0, %v1056_v2, %v1033_v39  ;;  %v4543_v39 = vrot.slane %v3871_v26, 2 }
 0x255   :  { %v1092_v0 = vrot.slane %v1079_v43, 4  ;;  %v1063_v59 = vperm.slane %v1057_v45, %v3949_v11  ;;  %v1094_v20 = vrot.slane %v1067_v60, 4 }
 0x256   :  { %v4576_v17 = vsel %vm6097_vm14, %v1237_v44, %v4543_v39  ;;  %v1322_v44 = vrot.slane %v4551_v57, 4 }
 0x257   :  { %v4506_v29 = vpop.permute.xlu1 %1042  ;;  %v1082_v62 = vrot.slane %v1063_v59, 4  ;;  %v1081_v49 = vsel %vm49_vm0, %v1080_v37, %v1063_v59  ;;  %v1093_v63 = vsel %vm49_vm0, %v1092_v0, %v1067_v60  ;;  %v1095_v35 = vsel %vm49_vm0, %v1079_v43, %v1094_v20 }
 0x258   :  { %v4510_v56 = vperm.slane %v1081_v49, %v3984_v25  ;;  %v1112_v3 = vrot.slane %v4506_v29, 4  ;;  %v1099_v12 = vperm.slane %v1093_v63, %v3984_v25  ;;  %v1103_v47 = vperm.slane %v1095_v35, %v3984_v25 }
 0x259   :  { %v1047_v4 = vpop.permute.xlu0 %1046  ;;  %v1083_v6 = vsel %vm49_vm0, %v1075_v52, %v1082_v62  ;;  %v1267_v1 = vsel %vm49_vm0, %v1266_v50, %v4576_v17  ;;  %v1268_v59 = vrot.slane %v4576_v17, 4  ;;  %v1114_v62 = vrot.slane %v4496_v32, 4 }
 0x25a   :  { %v1124_v7 = vrot.slane %v1047_v4, 4  ;;  %v1091_v8 = vperm.slane %v1083_v6, %v3984_v25  ;;  %v1104_v10 = vrot.slane %v4510_v56, 4  ;;  %v1113_v18 = vsel %vm49_vm0, %v1112_v3, %v4496_v32 }
 0x25b   :  { %v1108_v48 = vrot.slane %v1099_v12, 4  ;;  %v1119_v24 = vperm.slane %v1113_v18, %v3949_v11  ;;  %v1127_v52 = vsel %vm49_vm0, %v1047_v4, %v1126_v46  ;;  %v1273_v43 = vperm.slane %v1267_v1, %v3949_v11 }
 0x25c   :  { %v1125_v14 = vsel %vm49_vm0, %v1124_v7, %v4489_v36  ;;  %1165 = vrot.lane.b32.xlu2 %v1091_v8, %s3879_s10  ;;  %v1106_v15 = vrot.slane %v1091_v8, 4  ;;  %v1105_v61 = vsel %vm49_vm0, 0.0, %v1104_v10  ;;  %v4586_v36 = vsel %vm6097_vm14, %v1234_v40, %v4556_v34 }
 0x25d   :  { %v1131_v55 = vperm.slane %v1125_v14, %v3949_v11  ;;  %1161 = vrot.lane.b32.xlu1 %v1105_v61, %s3882_s13  ;;  %v1109_v16 = vsel %vm49_vm0, 0.0, %v1108_v48  ;;  %v1138_v5 = vrot.slane %v1119_v24, 4  ;;  %v1135_v37 = vperm.slane %v1127_v52, %v3949_v11 }
 0x25e   :  { %v1107_v42 = vsel %vm49_vm0, 0.0, %v1106_v15  ;;  %v1110_v23 = vrot.slane %v1103_v47, 4  ;;  %v1255_v45 = vsel %vm49_vm0, %v1254_v13, %v4586_v36  ;;  %v1278_v60 = vrot.slane %v1273_v43, 4 }
 0x25f   :  { %1169 = vrot.lane.b32.xlu0 %v1107_v42, %s3881_s12  ;;  %v1136_v22 = vrot.slane %v1131_v55, 4  ;;  %v1139_v2 = vsel %vm49_vm0, %v1131_v55, %v1138_v5  ;;  %v1261_v63 = vperm.slane %v1255_v45, %v3949_v11  ;;  %v1115_v3 = vsel %vm49_vm0, %v4506_v29, %v1114_v62 }
 0x260   :  { %v1147_v49 = vperm.slane %v1139_v2, %v3984_v25  ;;  %v1148_v4 = vrot.slane %v1135_v37, 4  ;;  %v1111_v6 = vsel %vm49_vm0, 0.0, %v1110_v23  ;;  %v1256_v8 = vrot.slane %v4586_v36, 4 }
 0x261   :  { %v1137_v41 = vsel %vm49_vm0, %v1136_v22, %v1119_v24  ;;  %v1269_v32 = vsel %vm49_vm0, %v4570_v27, %v1268_v59  ;;  %v1279_v10 = vsel %vm49_vm0, %v1278_v60, %v1261_v63  ;;  %v1123_v14 = vperm.slane %v1115_v3, %v3949_v11 }
 0x262   :  { %v1143_v53 = vperm.slane %v1137_v41, %v3984_v25  ;;  %v1277_v29 = vperm.slane %v1269_v32, %v3949_v11  ;;  %v4614_v15 = vperm.slane %v1279_v10, %v3984_v25  ;;  %v1257_v55 = vsel %vm49_vm0, %v4564_v33, %v1256_v8 }
 0x263   :  { %v1149_v18 = vsel %vm49_vm0, %v1148_v4, %v1123_v14  ;;  %v1280_v51 = vrot.slane %v1261_v63, 4  ;;  %v1265_v42 = vperm.slane %v1257_v55, %v3949_v11  ;;  %v1323_v35 = vsel %vm49_vm0, %v1322_v44, %v4543_v39 }
 0x264   :  { %1177 = vrot.lane.b32.xlu2 %v1109_v16, %s3883_s14  ;;  %v1154_v0 = vrot.slane %v1143_v53, 4  ;;  %v1153_v20 = vperm.slane %v1149_v18, %v3984_v25  ;;  %v1290_v54 = vrot.slane %v1277_v29, 4  ;;  %v1302_v21 = vrot.slane %v4614_v15, 4 }
 0x265   :  { %1173 = vrot.lane.b32.xlu1 %v1099_v12, %s3878_s9  ;;  %v1156_v12 = vrot.slane %v1147_v49, 4  ;;  %v1281_v48 = vsel %vm49_vm0, %v1273_v43, %v1280_v51  ;;  %v1292_v58 = vrot.slane %v1265_v42, 4  ;;  %v1311_v41 = vsel %vm49_vm0, %v1310_v30, %v4556_v34 }
 0x266   :  { %v1155_v7 = vsel %vm49_vm0, 0.0, %v1154_v0  ;;  %v1158_v22 = vrot.slane %v1153_v20, 4  ;;  %v1291_v24 = vsel %vm49_vm0, %v1290_v54, %v1265_v42  ;;  %v1303_v9 = vsel %vm49_vm0, 0.0, %v1302_v21 }
 0x267   :  { %1181 = vrot.lane.b32.xlu0 %v1103_v47, %s3880_s11  ;;  %v1157_v61 = vsel %vm49_vm0, 0.0, %v1156_v12  ;;  %v1289_v26 = vperm.slane %v1281_v48, %v3984_v25  ;;  %v1297_v28 = vperm.slane %v1291_v24, %v3984_v25  ;;  %v1293_v16 = vsel %vm49_vm0, %v1277_v29, %v1292_v58 }
 0x268   :  { %v1159_v31 = vsel %vm49_vm0, 0.0, %v1158_v22  ;;  %v1329_v46 = vperm.slane %v1323_v35, %v3949_v11  ;;  %v1324_v5 = vrot.slane %v4543_v39, 4  ;;  %v1301_v13 = vperm.slane %v1293_v16, %v3984_v25 }
 0x269   :  { %v1304_v38 = vrot.slane %v1289_v26, 4  ;;  %v1306_v40 = vrot.slane %v1297_v28, 4  ;;  %v1317_v50 = vperm.slane %v1311_v41, %v3949_v11  ;;  %v1312_v43 = vrot.slane %v4556_v34, 4 }
 0x26a   :  { %v1308_v2 = vrot.slane %v1301_v13, 4  ;;  %v1325_v37 = vsel %vm49_vm0, %v4551_v57, %v1324_v5  ;;  %vm6100_vm14 = vcmask 551936  }
 0x26b   :  { %v1305_v47 = vsel %vm49_vm0, 0.0, %v1304_v38  ;;  %v1307_v52 = vsel %vm49_vm0, 0.0, %v1306_v40  ;;  %v1336_v1 = vrot.slane %v1317_v50, 4  ;;  %v1333_v45 = vperm.slane %v1325_v37, %v3949_v11 }
 0x26c   :  { %1189 = vrot.lane.b32.xlu2 %v1143_v53, %s3884_s15  ;;  %v1334_v53 = vrot.slane %v1329_v46, 4  ;;  %v1309_v59 = vsel %vm49_vm0, 0.0, %v1308_v2  ;;  %v1313_v60 = vsel %vm49_vm0, %v4528_v19, %v1312_v43 }
 0x26d   :  { %1185 = vrot.lane.b32.xlu1 %v1111_v6, %s3885_s16  ;;  %v1337_v0 = vsel %vm49_vm0, %v1329_v46, %v1336_v1  ;;  %v1321_v63 = vperm.slane %v1313_v60, %v3949_v11  ;;  %v1346_v3 = vrot.slane %v1333_v45, 4 }
 0x26e   :  { %v1335_v23 = vsel %vm49_vm0, %v1334_v53, %v1317_v50 }
 0x26f   :  { %1193 = vrot.lane.b32.xlu0 %v1155_v7, %s3886_s17  ;;  %v1341_v62 = vperm.slane %v1335_v23, %v3984_v25  ;;  %v1347_v7 = vsel %vm49_vm0, %v1346_v3, %v1321_v63 }
 0x270   :  { %v1351_v32 = vperm.slane %v1347_v7, %v3984_v25 }
 0x271   :  { %v1352_v4 = vrot.slane %v1341_v62, 4 }
 0x272   :  { %v1356_v12 = vrot.slane %v1351_v32, 4 }
 0x273   :  { %v1353_v8 = vsel %vm49_vm0, 0.0, %v1352_v4 }
 0x274   :  { %1201 = vrot.lane.b32.xlu2 %v1157_v61, %s3887_s18  ;;  %v1357_v14 = vsel %vm49_vm0, 0.0, %v1356_v12 }
 0x275   :  { %1197 = vrot.lane.b32.xlu1 %v1147_v49, %s3888_s19  ;;  %v1345_v49 = vperm.slane %v1337_v0, %v3984_v25 }
 0x277   :  { %1205 = vrot.lane.b32.xlu0 %v1153_v20, %s3889_s20  ;;  %v1354_v6 = vrot.slane %v1345_v49, 4 }
 0x279   :  { %v1355_v10 = vsel %vm49_vm0, 0.0, %v1354_v6 }
 0x27c   :  { %1359 = vrot.lane.b32.xlu2 %v1303_v9, %s3882_s13 }
 0x27d   :  { %1209 = vrot.lane.b32.xlu1 %v1159_v31, %s3891_s22 }
 0x27f   :  { %1363 = vrot.lane.b32.xlu0 %v1289_v26, %s3879_s10 }
 0x284   :  { %1371 = vrot.lane.b32.xlu2 %v1297_v28, %s3878_s9 }
 0x285   :  { %1367 = vrot.lane.b32.xlu1 %v1305_v47, %s3881_s12 }
 0x287   :  { %1375 = vrot.lane.b32.xlu0 %v1307_v52, %s3883_s14 }
 0x28c   :  { %1383 = vrot.lane.b32.xlu2 %v1309_v59, %s3885_s16 }
 0x28d   :  { %1379 = vrot.lane.b32.xlu1 %v1301_v13, %s3880_s11 }
 0x28f   :  { %1387 = vrot.lane.b32.xlu0 %v1341_v62, %s3884_s15 }
 0x294   :  { %1395 = vrot.lane.b32.xlu2 %v1345_v49, %s3888_s19 }
 0x295   :  { %1391 = vrot.lane.b32.xlu1 %v1353_v8, %s3886_s17 }
 0x297   :  { %1399 = vrot.lane.b32.xlu0 %v1355_v10, %s3887_s18 }
 0x29c   :  { %1407 = vrot.lane.b32.xlu2 %v1357_v14, %s3891_s22 }
 0x29d   :  { %1403 = vrot.lane.b32.xlu1 %v1351_v32, %s3889_s20 }
 0x29f   :  { %1425 = vrot.lane.b32.xlu0 %v4586_v36, %s3890_s21 }
 0x2a4   :  { %1429 = vrot.lane.b32.xlu2 %v4576_v17, %s3890_s21 }
 0x2a5   :  { %1427 = vrot.lane.b32.xlu1 %v4556_v34, %s3890_s21 }
 0x2a7   :  { %1431 = vrot.lane.b32.xlu0 %v4543_v39, %s3890_s21 }
 0x2ac   :  { %1435 = vrot.lane.b32.xlu2 %v4528_v19, %s3890_s21 }
 0x2ad   :  { %1433 = vrot.lane.b32.xlu1 %v4564_v33, %s3890_s21 }
 0x2af   :  { %1437 = vrot.lane.b32.xlu0 %v4570_v27, %s3890_s21 }
 0x2b5   :  { %1439 = vrot.lane.b32.xlu1 %v4551_v57, %s3890_s21 }
 0x2b6   :  { %v1166_v29 = vpop.permute.xlu2 %1165 }
 0x2be   :  { %v1178_v18 = vpop.permute.xlu2 %1177 }
 0x2c6   :  { %v1190_v42 = vpop.permute.xlu2 %1189 }
 0x2ce   :  { %v1202_v26 = vpop.permute.xlu2 %1201 }
 0x2cf   :  { %v1162_v55 = vpop.permute.xlu1 %1161 }
 0x2d0   :  { %v1212_v51 = vsel %vm205_vm1, %v4510_v56, %v1162_v55 }
 0x2d1   :  { %v1170_v61 = vpop.permute.xlu0 %1169  ;;  %v1213_v20 = vsel %vm207_vm2, %v1212_v51, %v1166_v29 }
 0x2d2   :  { %v1214_v21 = vsel %vm209_vm3, %v1213_v20, %v1170_v61 }
 0x2d6   :  { %v1360_v38 = vpop.permute.xlu2 %1359 }
 0x2d7   :  { %v1174_v54 = vpop.permute.xlu1 %1173  ;;  %v1410_v53 = vsel %vm205_vm1, %v4614_v15, %v1360_v38 }
 0x2d8   :  { %v1215_v22 = vsel %vm211_vm4, %v1214_v21, %v1174_v54 }
 0x2d9   :  { %v1182_v48 = vpop.permute.xlu0 %1181  ;;  %v1216_v24 = vsel %vm213_vm5, %v1215_v22, %v1178_v18 }
 0x2da   :  { %v1217_v9 = vsel %vm215_vm6, %v1216_v24, %v1182_v48 }
 0x2de   :  { %v1372_v52 = vpop.permute.xlu2 %1371 }
 0x2df   :  { %v1186_v44 = vpop.permute.xlu1 %1185 }
 0x2e0   :  { %v1218_v28 = vsel %vm217_vm7, %v1217_v9, %v1186_v44 }
 0x2e1   :  { %v1194_v58 = vpop.permute.xlu0 %1193  ;;  %v1219_v56 = vsel %vm219_vm8, %v1218_v28, %v1190_v42 }
 0x2e2   :  { %v1220_v30 = vsel %vm221_vm9, %v1219_v56, %v1194_v58 }
 0x2e3   :  { %v1227_v31 = vrot.slane %v1220_v30, 4 }
 0x2e5   :  { %1231 = vst [vmem:[#allocation2 + $0x40] sm:$0xf0] %v1227_v31 }
 0x2e6   :  { %v1384_v23 = vpop.permute.xlu2 %1383 }
 0x2e7   :  { %v1198_v35 = vpop.permute.xlu1 %1197 }
 0x2e8   :  { %v1221_v16 = vsel %vm223_vm10, %v1194_v58, %v1198_v35 }
 0x2e9   :  { %v1206_v40 = vpop.permute.xlu0 %1205  ;;  %v1222_v41 = vsel %vm225_vm11, %v1221_v16, %v1202_v26 }
 0x2ea   :  { %v1223_v46 = vsel %vm227_vm12, %v1222_v41, %v1206_v40 }
 0x2ee   :  { %v1396_v63 = vpop.permute.xlu2 %1395 }
 0x2ef   :  { %v1210_v5 = vpop.permute.xlu1 %1209 }
 0x2f0   :  { %v1224_v47 = vsel %vm229_vm13, %v1223_v46, %v1210_v5 }
 0x2f1   :  { %v1364_v13 = vpop.permute.xlu0 %1363  ;;  %v1228_v50 = vrot.slane %v1224_v47, 4 }
 0x2f2   :  { %v1411_v43 = vsel %vm207_vm2, %v1410_v53, %v1364_v13 }
 0x2f3   :  { %1232 = vst.msk [vmem:[#allocation2 + $0x48] sm:$0xf0] %vm6098_vm15, %v1228_v50 }
 0x2f6   :  { %v1408_v10 = vpop.permute.xlu2 %1407 }
 0x2f7   :  { %v1368_v1 = vpop.permute.xlu1 %1367 }
 0x2f8   :  { %v1412_v37 = vsel %vm209_vm3, %v1411_v43, %v1368_v1 }
 0x2f9   :  { %v1376_v2 = vpop.permute.xlu0 %1375  ;;  %v1413_v45 = vsel %vm211_vm4, %v1412_v37, %v1372_v52 }
 0x2fa   :  { %v1414_v59 = vsel %vm213_vm5, %v1413_v45, %v1376_v2 }
 0x2fe   :  { %v1430_v61 = vpop.permute.xlu2 %1429 }
 0x2ff   :  { %v1380_v0 = vpop.permute.xlu1 %1379  ;;  %v1463_v51 = vrot.slane %v1430_v61, 4 }
 0x300   :  { %v1415_v62 = vsel %vm215_vm6, %v1414_v59, %v1380_v0 }
 0x301   :  { %v1388_v60 = vpop.permute.xlu0 %1387  ;;  %v1416_v49 = vsel %vm217_vm7, %v1415_v62, %v1384_v23 }
 0x302   :  { %v1417_v15 = vsel %vm219_vm8, %v1416_v49, %v1388_v60 }
 0x306   :  { %v1436_v31 = vpop.permute.xlu2 %1435 }
 0x307   :  { %v1392_v3 = vpop.permute.xlu1 %1391  ;;  %v1505_v46 = vrot.slane %v1436_v31, 4 }
 0x308   :  { %v1418_v4 = vsel %vm221_vm9, %v1417_v15, %v1392_v3  ;;  %v1419_v7 = vsel %vm223_vm10, %v1392_v3, %v1396_v63 }
 0x309   :  { %v1400_v6 = vpop.permute.xlu0 %1399  ;;  %1423 = vst [vmem:[#allocation2 + $0x60] sm:$0xf] %v1418_v4 }
 0x30a   :  { %v1420_v8 = vsel %vm225_vm11, %v1419_v7, %v1400_v6 }
 0x30f   :  { %v1404_v32 = vpop.permute.xlu1 %1403 }
 0x310   :  { %v1421_v12 = vsel %vm227_vm12, %v1420_v8, %v1404_v32 }
 0x311   :  { %v1426_v14 = vpop.permute.xlu0 %1425  ;;  %v1422_v29 = vsel %vm229_vm13, %v1421_v12, %v1408_v10 }
 0x312   :  { %1424 = vst.msk [vmem:[#allocation2 + $0x68] sm:$0xf] %vm6100_vm14, %v1422_v29  ;;  %v1451_v20 = vrot.slane %v1426_v14, 4  ;;  %vm6099_vm14 = vcmask 1043456  }
 0x317   :  { %v4722_v18 = vpop.permute.xlu1 %1427 }
 0x318   :  { %v1506_v37 = vsel %vm49_vm0, %v1505_v46, %v4722_v18  ;;  %v1507_v10 = vrot.slane %v4722_v18, 4 }
 0x319   :  { %v1432_v55 = vpop.permute.xlu0 %1431  ;;  %v1512_v62 = vperm.slane %v1506_v37, %v3949_v11 }
 0x31a   :  { %v1519_v3 = vrot.slane %v1432_v55, 4 }
 0x31b   :  { %v1531_v6 = vrot.slane %v1512_v62, 4 }
 0x31f   :  { %v1434_v42 = vpop.permute.xlu1 %1433 }
 0x320   :  { %v1449_v54 = vrot.slane %v1434_v42, 4  ;;  %v1452_v48 = vsel %vm49_vm0, %v1434_v42, %v1451_v20 }
 0x321   :  { %v1438_v21 = vpop.permute.xlu0 %1437  ;;  %v1460_v58 = vperm.slane %v1452_v48, %v3949_v11 }
 0x322   :  { %v1461_v22 = vrot.slane %v1438_v21, 4  ;;  %v1464_v24 = vsel %vm49_vm0, %v1438_v21, %v1463_v51  ;;  %v1450_v9 = vsel %vm49_vm0, %v1449_v54, %v1426_v14 }
 0x323   :  { %v1472_v44 = vperm.slane %v1464_v24, %v3949_v11  ;;  %v1456_v26 = vperm.slane %v1450_v9, %v3949_v11  ;;  %v1487_v23 = vrot.slane %v1460_v58, 4 }
 0x324   :  { %v1462_v28 = vsel %vm49_vm0, %v1461_v22, %v1430_v61  ;;  %v1508_v61 = vsel %vm49_vm0, %v1436_v31, %v1507_v10 }
 0x325   :  { %v1468_v56 = vperm.slane %v1462_v28, %v3949_v11  ;;  %v1485_v30 = vrot.slane %v1472_v44, 4  ;;  %v1475_v35 = vrot.slane %v1456_v26, 4  ;;  %v1488_v49 = vsel %vm49_vm0, %v1472_v44, %v1487_v23 }
 0x326   :  { %v1496_v4 = vperm.slane %v1488_v49, %v3984_v25  ;;  %v1516_v18 = vperm.slane %v1508_v61, %v3949_v11 }
 0x327   :  { %v1473_v38 = vrot.slane %v1468_v56, 4  ;;  %v1486_v40 = vsel %vm49_vm0, %v1485_v30, %v1460_v58  ;;  %v1440_v16 = vpop.permute.xlu1 %1439  ;;  %v1476_v41 = vsel %vm49_vm0, %v1468_v56, %v1475_v35 }
 0x328   :  { %v1517_v5 = vrot.slane %v1440_v16, 4  ;;  %v1484_v47 = vperm.slane %v1476_v41, %v3984_v25  ;;  %v1492_v52 = vperm.slane %v1486_v40, %v3984_v25  ;;  %v1520_v8 = vsel %vm49_vm0, %v1440_v16, %v1519_v3 }
 0x329   :  { %v1474_v13 = vsel %vm49_vm0, %v1473_v38, %v1456_v26  ;;  %v1528_v12 = vperm.slane %v1520_v8, %v3949_v11  ;;  %v1503_v29 = vrot.slane %v1496_v4, 4 }
 0x32a   :  { %v4737_v50 = vperm.slane %v1474_v13, %v3984_v25  ;;  %v1518_v53 = vsel %vm49_vm0, %v1517_v5, %v1432_v55  ;;  %1558 = vrot.lane.b32.xlu0 %v1484_v47, %s3879_s10  ;;  %v1499_v1 = vrot.slane %v1484_v47, 4  ;;  %v1501_v59 = vrot.slane %v1492_v52, 4 }
 0x32b   :  { %v1524_v2 = vperm.slane %v1518_v53, %v3949_v11  ;;  %v1541_v51 = vrot.slane %v1528_v12, 4  ;;  %v1504_v42 = vsel %vm49_vm0, 0.0, %v1503_v29 }
 0x32c   :  { %v1497_v43 = vrot.slane %v4737_v50, 4  ;;  %v1500_v45 = vsel %vm49_vm0, 0.0, %v1499_v1  ;;  %v1502_v63 = vsel %vm49_vm0, 0.0, %v1501_v59 }
 0x32d   :  { %1562 = vrot.lane.b32.xlu1 %v1500_v45, %s3881_s12  ;;  %v1529_v60 = vrot.slane %v1524_v2, 4  ;;  %v1532_v32 = vsel %vm49_vm0, %v1524_v2, %v1531_v6  ;;  %v1542_v21 = vsel %vm49_vm0, %v1541_v51, %v1516_v18 }
 0x32e   :  { %v1498_v0 = vsel %vm49_vm0, 0.0, %v1497_v43  ;;  %v1540_v55 = vperm.slane %v1532_v32, %v3984_v25  ;;  %v1546_v22 = vperm.slane %v1542_v21, %v3984_v25 }
 0x32f   :  { %1554 = vrot.lane.b32.xlu2 %v1498_v0, %s3882_s13  ;;  %v1530_v15 = vsel %vm49_vm0, %v1529_v60, %v1512_v62 }
 0x330   :  { %v1536_v7 = vperm.slane %v1530_v15, %v3984_v25  ;;  %v1549_v54 = vrot.slane %v1540_v55, 4  ;;  %v1551_v24 = vrot.slane %v1546_v22, 4 }
 0x332   :  { %1570 = vrot.lane.b32.xlu0 %v1502_v63, %s3883_s14  ;;  %v1547_v14 = vrot.slane %v1536_v7, 4  ;;  %v1550_v48 = vsel %vm49_vm0, 0.0, %v1549_v54  ;;  %v1552_v9 = vsel %vm49_vm0, 0.0, %v1551_v24 }
 0x334   :  { %v1548_v20 = vsel %vm49_vm0, 0.0, %v1547_v14 }
 0x335   :  { %1574 = vrot.lane.b32.xlu1 %v1496_v4, %s3880_s11 }
 0x337   :  { %1566 = vrot.lane.b32.xlu2 %v1492_v52, %s3878_s9 }
 0x33a   :  { %1582 = vrot.lane.b32.xlu0 %v1536_v7, %s3884_s15 }
 0x33d   :  { %1586 = vrot.lane.b32.xlu1 %v1548_v20, %s3886_s17 }
 0x33f   :  { %1578 = vrot.lane.b32.xlu2 %v1504_v42, %s3885_s16 }
 0x342   :  { %1594 = vrot.lane.b32.xlu0 %v1550_v48, %s3887_s18 }
 0x345   :  { %1598 = vrot.lane.b32.xlu1 %v1546_v22, %s3889_s20 }
 0x347   :  { %1590 = vrot.lane.b32.xlu2 %v1540_v55, %s3888_s19 }
 0x34a   :  { %1626 = vrot.lane.b32.xlu0 %v4586_v36, %s3886_s17 }
 0x34d   :  { %1628 = vrot.lane.b32.xlu1 %v4556_v34, %s3886_s17 }
 0x34f   :  { %1602 = vrot.lane.b32.xlu2 %v1552_v9, %s3891_s22 }
 0x352   :  { %1632 = vrot.lane.b32.xlu0 %v4543_v39, %s3886_s17 }
 0x355   :  { %1634 = vrot.lane.b32.xlu1 %v4564_v33, %s3886_s17 }
 0x357   :  { %1630 = vrot.lane.b32.xlu2 %v4576_v17, %s3886_s17 }
 0x35a   :  { %1638 = vrot.lane.b32.xlu0 %v4570_v27, %s3886_s17 }
 0x35d   :  { %1640 = vrot.lane.b32.xlu1 %v4551_v57, %s3886_s17 }
 0x35f   :  { %1636 = vrot.lane.b32.xlu2 %v4528_v19, %s3886_s17 }
 0x389   :  { %v1555_v34 = vpop.permute.xlu2 %1554 }
 0x38a   :  { %v1605_v39 = vsel %vm205_vm1, %v4737_v50, %v1555_v34  ;;  %v4834_v34 = vld [vmem:[%s6089_s0 + $0x70] sm:$0xff] }
 0x391   :  { %v1567_v36 = vpop.permute.xlu2 %1566 }
 0x399   :  { %v1579_v33 = vpop.permute.xlu2 %1578 }
 0x39c   :  { %v1559_v44 = vpop.permute.xlu0 %1558 }
 0x39d   :  { %v1606_v17 = vsel %vm207_vm2, %v1605_v39, %v1559_v44 }
 0x39f   :  { %v1563_v26 = vpop.permute.xlu1 %1562 }
 0x3a0   :  { %v1607_v58 = vsel %vm209_vm3, %v1606_v17, %v1563_v26 }
 0x3a1   :  { %v1608_v56 = vsel %vm211_vm4, %v1607_v58, %v1567_v36  ;;  %v1591_v31 = vpop.permute.xlu2 %1590 }
 0x3a4   :  { %v1571_v28 = vpop.permute.xlu0 %1570 }
 0x3a5   :  { %v1609_v57 = vsel %vm213_vm5, %v1608_v56, %v1571_v28  ;;  %v1842_v28 = vrot.slane %v4834_v34, 4  ;;  %v4851_v56 = vld [vmem:[%s6089_s0 + $0x60] sm:$0xff] }
 0x3a7   :  { %v1575_v27 = vpop.permute.xlu1 %1574 }
 0x3a8   :  { %v1610_v19 = vsel %vm215_vm6, %v1609_v57, %v1575_v27  ;;  %v4846_v27 = vld [vmem:[%s6089_s0 + $0x50] sm:$0xff] }
 0x3a9   :  { %v1611_v35 = vsel %vm217_vm7, %v1610_v19, %v1579_v33  ;;  %v1603_v50 = vpop.permute.xlu2 %1602 }
 0x3ac   :  { %v1583_v30 = vpop.permute.xlu0 %1582 }
 0x3ad   :  { %v1612_v38 = vsel %vm219_vm8, %v1611_v35, %v1583_v30  ;;  %v1830_v35 = vrot.slane %v4851_v56, 4 }
 0x3af   :  { %v1587_v40 = vpop.permute.xlu1 %1586 }
 0x3b0   :  { %v1613_v16 = vsel %vm221_vm9, %v1612_v38, %v1587_v40  ;;  %v1614_v5 = vsel %vm223_vm10, %v1587_v40, %v1591_v31  ;;  %v1843_v38 = vsel %vm49_vm0, %v1842_v28, %v4846_v27 }
 0x3b1   :  { %v1620_v41 = vrot.slane %v1613_v16, 4  ;;  %v1631_v23 = vpop.permute.xlu2 %1630  ;;  %v4865_v16 = vld [vmem:[%s6089_s0 + $0x40] sm:$0xff] }
 0x3b2   :  { %v1664_v59 = vrot.slane %v1631_v23, 4 }
 0x3b3   :  { %1624 = vst [vmem:[#allocation2 + $0x60] sm:$0xf0] %v1620_v41 }
 0x3b4   :  { %v1595_v46 = vpop.permute.xlu0 %1594 }
 0x3b5   :  { %v1615_v47 = vsel %vm225_vm11, %v1614_v5, %v1595_v46 }
 0x3b7   :  { %v1599_v13 = vpop.permute.xlu1 %1598 }
 0x3b8   :  { %v1616_v52 = vsel %vm227_vm12, %v1615_v47, %v1599_v13  ;;  %v1849_v13 = vperm.slane %v1843_v38, %v3949_v11 }
 0x3b9   :  { %v1617_v53 = vsel %vm229_vm13, %v1616_v52, %v1603_v50  ;;  %v1637_v10 = vpop.permute.xlu2 %1636  ;;  %v1831_v50 = vsel %vm49_vm0, %v1830_v35, %v4865_v16 }
 0x3ba   :  { %v1621_v1 = vrot.slane %v1617_v53, 4  ;;  %v1706_v54 = vrot.slane %v1637_v10, 4 }
 0x3bc   :  { %1625 = vst.msk [vmem:[#allocation2 + $0x68] sm:$0xf0] %vm6098_vm15, %v1621_v1  ;;  %v1627_v2 = vpop.permute.xlu0 %1626  ;;  %vm6101_vm15 = vcmask 551936  }
 0x3bd   :  { %v1652_v60 = vrot.slane %v1627_v2, 4 }
 0x3bf   :  { %v4810_v43 = vpop.permute.xlu1 %1628 }
 0x3c0   :  { %v1707_v36 = vsel %vm49_vm0, %v1706_v54, %v4810_v43  ;;  %v1708_v53 = vrot.slane %v4810_v43, 4 }
 0x3c1   :  { %v1713_v57 = vperm.slane %v1707_v36, %v3949_v11 }
 0x3c3   :  { %v1732_v46 = vrot.slane %v1713_v57, 4 }
 0x3c4   :  { %v1633_v37 = vpop.permute.xlu0 %1632 }
 0x3c5   :  { %v1720_v40 = vrot.slane %v1633_v37, 4 }
 0x3c7   :  { %v1635_v45 = vpop.permute.xlu1 %1634 }
 0x3c8   :  { %v1650_v0 = vrot.slane %v1635_v45, 4  ;;  %v1653_v49 = vsel %vm49_vm0, %v1635_v45, %v1652_v60  ;;  %v1844_v45 = vrot.slane %v4846_v27, 4  ;;  %v1709_v60 = vsel %vm49_vm0, %v1637_v10, %v1708_v53 }
 0x3c9   :  { %v1661_v7 = vperm.slane %v1653_v49, %v3949_v11 }
 0x3ca   :  { %v1651_v62 = vsel %vm49_vm0, %v1650_v0, %v1627_v2 }
 0x3cb   :  { %v1657_v63 = vperm.slane %v1651_v62, %v3949_v11  ;;  %v1688_v17 = vrot.slane %v1661_v7, 4 }
 0x3cc   :  { %v1639_v15 = vpop.permute.xlu0 %1638 }
 0x3cd   :  { %v1662_v3 = vrot.slane %v1639_v15, 4  ;;  %v1665_v4 = vsel %vm49_vm0, %v1639_v15, %v1664_v59  ;;  %v1676_v12 = vrot.slane %v1657_v63, 4  ;;  %v1845_v15 = vsel %vm49_vm0, %v4834_v34, %v1844_v45 }
 0x3ce   :  { %v1673_v6 = vperm.slane %v1665_v4, %v3949_v11  ;;  %v1717_v4 = vperm.slane %v1709_v60, %v3949_v11 }
 0x3cf   :  { %v1663_v8 = vsel %vm49_vm0, %v1662_v3, %v1631_v23  ;;  %v1641_v32 = vpop.permute.xlu1 %1640  ;;  %v1854_v23 = vrot.slane %v1849_v13, 4 }
 0x3d0   :  { %v1669_v14 = vperm.slane %v1663_v8, %v3949_v11  ;;  %v1686_v29 = vrot.slane %v1673_v6, 4  ;;  %v1718_v55 = vrot.slane %v1641_v32, 4  ;;  %v1689_v19 = vsel %vm49_vm0, %v1673_v6, %v1688_v17 }
 0x3d1   :  { %v1697_v41 = vperm.slane %v1689_v19, %v3984_v25  ;;  %v1721_v5 = vsel %vm49_vm0, %v1641_v32, %v1720_v40  ;;  %v1853_v8 = vperm.slane %v1845_v15, %v3949_v11 }
 0x3d2   :  { %v1674_v61 = vrot.slane %v1669_v14, 4  ;;  %v1719_v51 = vsel %vm49_vm0, %v1718_v55, %v1633_v37  ;;  %v1677_v20 = vsel %vm49_vm0, %v1669_v14, %v1676_v12  ;;  %v1687_v42 = vsel %vm49_vm0, %v1686_v29, %v1661_v7 }
 0x3d3   :  { %v1685_v18 = vperm.slane %v1677_v20, %v3984_v25  ;;  %v1725_v21 = vperm.slane %v1719_v51, %v3949_v11  ;;  %v1693_v22 = vperm.slane %v1687_v42, %v3984_v25  ;;  %v1729_v1 = vperm.slane %v1721_v5, %v3949_v11  ;;  %v4907_v20 = vld [vmem:[%s6089_s0 + $0x78] sm:$0xff] }
 0x3d4   :  { %v1675_v48 = vsel %vm49_vm0, %v1674_v61, %v1657_v63  ;;  %v1837_v37 = vperm.slane %v1831_v50, %v3949_v11  ;;  %v1704_v59 = vrot.slane %v1697_v41, 4  ;;  %v1832_v63 = vrot.slane %v4865_v16, 4 }
 0x3d5   :  { %1759 = vrot.lane.b32.xlu0 %v1685_v18, %s3879_s10  ;;  %v1700_v24 = vrot.slane %v1685_v18, 4  ;;  %v4829_v9 = vperm.slane %v1675_v48, %v3984_v25  ;;  %v1730_v39 = vrot.slane %v1725_v21, 4  ;;  %v1702_v33 = vrot.slane %v1693_v22, 4 }
 0x3d6   :  { %v1733_v52 = vsel %vm49_vm0, %v1725_v21, %v1732_v46  ;;  %v1742_v62 = vrot.slane %v1729_v1, 4  ;;  %v1855_v49 = vsel %vm49_vm0, %v1854_v23, %v1837_v37  ;;  %v1705_v6 = vsel %vm49_vm0, 0.0, %v1704_v59  ;;  %v4917_v21 = vld [vmem:[%s6089_s0 + $0x68] sm:$0xff] }
 0x3d7   :  { %v1701_v44 = vsel %vm49_vm0, 0.0, %v1700_v24  ;;  %v1698_v26 = vrot.slane %v4829_v9, 4  ;;  %v1703_v30 = vsel %vm49_vm0, 0.0, %v1702_v33  ;;  %v1731_v31 = vsel %vm49_vm0, %v1730_v39, %v1713_v57  ;;  %v4923_v24 = vld [vmem:[%s6089_s0 + $0x58] sm:$0xff]  ;;  %v4932_v33 = vld [vmem:[%s6089_s0 + $0x48] sm:$0xff] }
 0x3d8   :  { %1763 = vrot.lane.b32.xlu1 %v1701_v44, %s3881_s12  ;;  %v1737_v47 = vperm.slane %v1731_v31, %v3984_v25  ;;  %v1741_v0 = vperm.slane %v1733_v52, %v3984_v25  ;;  %v4893_v7 = vperm.slane %v1855_v49, %v3984_v25  ;;  %v1743_v32 = vsel %vm49_vm0, %v1742_v62, %v1717_v4 }
 0x3d9   :  { %v1699_v58 = vsel %vm49_vm0, 0.0, %v1698_v26  ;;  %v1833_v10 = vsel %vm49_vm0, %v4851_v56, %v1832_v63  ;;  %v1856_v14 = vrot.slane %v1837_v37, 4  ;;  %v1747_v29 = vperm.slane %v1743_v32, %v3984_v25 }
 0x3da   :  { %1755 = vrot.lane.b32.xlu2 %v1699_v58, %s3882_s13  ;;  %v1748_v2 = vrot.slane %v1737_v47, 4  ;;  %v1750_v3 = vrot.slane %v1741_v0, 4  ;;  %v1878_v55 = vrot.slane %v4893_v7, 4  ;;  %v1841_v61 = vperm.slane %v1833_v10, %v3949_v11 }
 0x3db   :  { %v1866_v51 = vrot.slane %v1853_v8, 4  ;;  %v1857_v42 = vsel %vm49_vm0, %v1849_v13, %v1856_v14  ;;  %v1898_v48 = vrot.slane %v4907_v20, 4  ;;  %v1752_v44 = vrot.slane %v1747_v29, 4 }
 0x3dc   :  { %v1749_v43 = vsel %vm49_vm0, 0.0, %v1748_v2  ;;  %v1751_v12 = vsel %vm49_vm0, 0.0, %v1750_v3  ;;  %v1879_v54 = vsel %vm49_vm0, 0.0, %v1878_v55  ;;  %v1865_v36 = vperm.slane %v1857_v42, %v3984_v25 }
 0x3dd   :  { %1771 = vrot.lane.b32.xlu0 %v1703_v30, %s3883_s14  ;;  %v1867_v18 = vsel %vm49_vm0, %v1866_v51, %v1841_v61  ;;  %v1886_v39 = vrot.slane %v4917_v21, 4  ;;  %v1899_v28 = vsel %vm49_vm0, %v1898_v48, %v4923_v24  ;;  %v1900_v58 = vrot.slane %v4923_v24, 4 }
 0x3de   :  { %v1873_v26 = vperm.slane %v1867_v18, %v3984_v25  ;;  %v1753_v57 = vsel %vm49_vm0, 0.0, %v1752_v44  ;;  %v1905_v31 = vperm.slane %v1899_v28, %v3949_v11  ;;  %v1880_v38 = vrot.slane %v1865_v36, 4 }
 0x3df   :  { %v1887_v30 = vsel %vm49_vm0, %v1886_v39, %v4932_v33  ;;  %v1901_v46 = vsel %vm49_vm0, %v4907_v20, %v1900_v58 }
 0x3e0   :  { %1775 = vrot.lane.b32.xlu1 %v1697_v41, %s3880_s11  ;;  %v1882_v19 = vrot.slane %v1873_v26, 4  ;;  %v1893_v40 = vperm.slane %v1887_v30, %v3949_v11  ;;  %v1888_v41 = vrot.slane %v4932_v33, 4  ;;  %v1881_v52 = vsel %vm49_vm0, 0.0, %v1880_v38 }
 0x3e1   :  { %v1909_v53 = vperm.slane %v1901_v46, %v3949_v11  ;;  %v3594_v46 = vld [vmem:[#allocation2 + $0x40] sm:$0xff] }
 0x3e2   :  { %1767 = vrot.lane.b32.xlu2 %v1693_v22, %s3878_s9  ;;  %v1868_v22 = vrot.slane %v1841_v61, 4  ;;  %v1883_v5 = vsel %vm49_vm0, 0.0, %v1882_v19  ;;  %v1912_v50 = vrot.slane %v1893_v40, 4  ;;  %v1889_v1 = vsel %vm49_vm0, %v4917_v21, %v1888_v41 }
 0x3e3   :  { %v1897_v45 = vperm.slane %v1889_v1, %v3949_v11  ;;  %v3599_v1 = vld [vmem:[#allocation2 + $0x68] sm:$0xff] }
 0x3e4   :  { %v1869_v17 = vsel %vm49_vm0, %v1853_v8, %v1868_v22  ;;  %v1913_v23 = vsel %vm49_vm0, %v1905_v31, %v1912_v50  ;;  %v3586_v50 = vld [vmem:[#allocation2] sm:$0xff] }
 0x3e5   :  { %1783 = vrot.lane.b32.xlu0 %v1737_v47, %s3884_s15  ;;  %v1877_v35 = vperm.slane %v1869_v17, %v3984_v25  ;;  %v1910_v47 = vrot.slane %v1905_v31, 4  ;;  %v1921_v60 = vperm.slane %v1913_v23, %v3984_v25 }
 0x3e7   :  { %v1884_v13 = vrot.slane %v1877_v35, 4  ;;  %v1911_v2 = vsel %vm49_vm0, %v1910_v47, %v1893_v40  ;;  %v3598_v40 = vld [vmem:[#allocation2 + $0x60] sm:$0xff] }
 0x3e8   :  { %1787 = vrot.lane.b32.xlu1 %v1749_v43, %s3886_s17  ;;  %v1917_v59 = vperm.slane %v1911_v2, %v3984_v25  ;;  %v1930_v43 = vrot.slane %v1921_v60, 4  ;;  %v3590_v47 = vld [vmem:[#allocation2 + $0x20] sm:$0xff] }
 0x3e9   :  { %v1885_v37 = vsel %vm49_vm0, 0.0, %v1884_v13 }
 0x3ea   :  { %1779 = vrot.lane.b32.xlu2 %v1705_v6, %s3885_s16  ;;  %v1928_v63 = vrot.slane %v1917_v59, 4  ;;  %v1931_v15 = vsel %vm49_vm0, 0.0, %v1930_v43 }
 0x3ec   :  { %v1929_v4 = vsel %vm49_vm0, 0.0, %v1928_v63 }
 0x3ed   :  { %1795 = vrot.lane.b32.xlu0 %v1751_v12, %s3887_s18 }
 0x3f0   :  { %1799 = vrot.lane.b32.xlu1 %v1747_v29, %s3889_s20 }
 0x3f2   :  { %1791 = vrot.lane.b32.xlu2 %v1741_v0, %s3888_s19  ;;  %v1922_v0 = vrot.slane %v1909_v53, 4 }
 0x3f4   :  { %v1923_v62 = vsel %vm49_vm0, %v1922_v0, %v1897_v45 }
 0x3f5   :  { %1935 = vrot.lane.b32.xlu0 %v1879_v54, %s3882_s13  ;;  %v1927_v49 = vperm.slane %v1923_v62, %v3984_v25  ;;  %v3587_v62 = vld [vmem:[#allocation2 + $0x8] sm:$0xff] }
 0x3f7   :  { %v1932_v3 = vrot.slane %v1927_v49, 4 }
 0x3f8   :  { %1939 = vrot.lane.b32.xlu1 %v1865_v36, %s3879_s10 }
 0x3f9   :  { %v1933_v6 = vsel %vm49_vm0, 0.0, %v1932_v3 }
 0x3fa   :  { %1803 = vrot.lane.b32.xlu2 %v1753_v57, %s3891_s22 }
 0x3fd   :  { %1947 = vrot.lane.b32.xlu0 %v1873_v26, %s3878_s9 }
 0x400   :  { %1951 = vrot.lane.b32.xlu1 %v1883_v5, %s3883_s14 }
 0x402   :  { %1943 = vrot.lane.b32.xlu2 %v1881_v52, %s3881_s12 }
 0x405   :  { %1959 = vrot.lane.b32.xlu0 %v1885_v37, %s3885_s16  ;;  %v3595_v37 = vld [vmem:[#allocation2 + $0x48] sm:$0xff] }
 0x408   :  { %1963 = vrot.lane.b32.xlu1 %v1917_v59, %s3884_s15  ;;  %v3591_v59 = vld [vmem:[#allocation2 + $0x28] sm:$0xff] }
 0x40a   :  { %1955 = vrot.lane.b32.xlu2 %v1877_v35, %s3880_s11 }
 0x40d   :  { %1971 = vrot.lane.b32.xlu0 %v1921_v60, %s3888_s19 }
 0x410   :  { %1975 = vrot.lane.b32.xlu1 %v1931_v15, %s3887_s18 }
 0x412   :  { %1967 = vrot.lane.b32.xlu2 %v1929_v4, %s3886_s17 }
 0x415   :  { %1983 = vrot.lane.b32.xlu0 %v1933_v6, %s3891_s22 }
 0x418   :  { %2009 = vrot.lane.b32.xlu1 %v4865_v16, %s3890_s21 }
 0x41a   :  { %1979 = vrot.lane.b32.xlu2 %v1927_v49, %s3889_s20 }
 0x41d   :  { %2013 = vrot.lane.b32.xlu0 %v4846_v27, %s3890_s21 }
 0x420   :  { %2015 = vrot.lane.b32.xlu1 %v4923_v24, %s3890_s21 }
 0x422   :  { %2011 = vrot.lane.b32.xlu2 %v4932_v33, %s3890_s21 }
 0x425   :  { %2019 = vrot.lane.b32.xlu0 %v4917_v21, %s3890_s21 }
 0x428   :  { %2021 = vrot.lane.b32.xlu1 %v4834_v34, %s3890_s21 }
 0x42a   :  { %2017 = vrot.lane.b32.xlu2 %v4851_v56, %s3890_s21 }
 0x432   :  { %2023 = vrot.lane.b32.xlu2 %v4907_v20, %s3890_s21 }
 0x434   :  { %v1756_v8 = vpop.permute.xlu2 %1755 }
 0x435   :  { %v1806_v55 = vsel %vm205_vm1, %v4829_v9, %v1756_v8 }
 0x43c   :  { %v1768_v32 = vpop.permute.xlu2 %1767 }
 0x444   :  { %v1780_v10 = vpop.permute.xlu2 %1779 }
 0x447   :  { %v1760_v12 = vpop.permute.xlu0 %1759 }
 0x448   :  { %v1807_v51 = vsel %vm207_vm2, %v1806_v55, %v1760_v12 }
 0x44a   :  { %v1764_v14 = vpop.permute.xlu1 %1763 }
 0x44b   :  { %v1808_v42 = vsel %vm209_vm3, %v1807_v51, %v1764_v14 }
 0x44c   :  { %v1792_v29 = vpop.permute.xlu2 %1791  ;;  %v1809_v18 = vsel %vm211_vm4, %v1808_v42, %v1768_v32 }
 0x44f   :  { %v1772_v61 = vpop.permute.xlu0 %1771 }
 0x450   :  { %v1810_v48 = vsel %vm213_vm5, %v1809_v18, %v1772_v61 }
 0x452   :  { %v1776_v54 = vpop.permute.xlu1 %1775 }
 0x453   :  { %v1811_v22 = vsel %vm215_vm6, %v1810_v48, %v1776_v54 }
 0x454   :  { %v1804_v36 = vpop.permute.xlu2 %1803  ;;  %v1812_v26 = vsel %vm217_vm7, %v1811_v22, %v1780_v10 }
 0x457   :  { %v1784_v44 = vpop.permute.xlu0 %1783 }
 0x458   :  { %v1813_v39 = vsel %vm219_vm8, %v1812_v26, %v1784_v44 }
 0x45a   :  { %v1788_v28 = vpop.permute.xlu1 %1787 }
 0x45b   :  { %v1814_v9 = vsel %vm221_vm9, %v1813_v39, %v1788_v28  ;;  %v1815_v57 = vsel %vm223_vm10, %v1788_v28, %v1792_v29 }
 0x45c   :  { %1819 = vst [vmem:[#allocation2 + $0x80] sm:$0xf] %v1814_v9  ;;  %v1944_v17 = vpop.permute.xlu2 %1943 }
 0x45f   :  { %v1796_v58 = vpop.permute.xlu0 %1795 }
 0x460   :  { %v1816_v19 = vsel %vm225_vm11, %v1815_v57, %v1796_v58 }
 0x462   :  { %v1800_v30 = vpop.permute.xlu1 %1799 }
 0x463   :  { %v1817_v31 = vsel %vm227_vm12, %v1816_v19, %v1800_v30  ;;  %v3602_v35 = vld [vmem:[#allocation2 + $0x80] sm:$0xf] }
 0x464   :  { %v1818_v38 = vsel %vm229_vm13, %v1817_v31, %v1804_v36  ;;  %3830 = vmatpush.msk.msra.mxu0 %vm6099_vm14, %v3602_v35  ;;  %v1956_v5 = vpop.permute.xlu2 %1955 }
 0x465   :  { %1820 = vst.msk [vmem:[#allocation2 + $0x88] sm:$0xf] %vm6101_vm15, %v1818_v38 }
 0x466   :  { %3635 = vmatpush.msra.mxu0 %v3598_v40 }
 0x467   :  { %v1936_v41 = vpop.permute.xlu0 %1935 }
 0x468   :  { %3636 = vmatpush.msra.mxu0 %v3594_v46  ;;  %v1986_v53 = vsel %vm205_vm1, %v4893_v7, %v1936_v41 }
 0x46a   :  { %v1940_v13 = vpop.permute.xlu1 %1939  ;;  %3637 = vmatpush.msra.mxu0 %v3590_v47 }
 0x46b   :  { %v1987_v23 = vsel %vm207_vm2, %v1986_v53, %v1940_v13 }
 0x46c   :  { %3638 = vmatpush.msra.mxu0 %v3586_v50  ;;  %v3603_v52 = vld [vmem:[#allocation2 + $0x88] sm:$0xf]  ;;  %v1968_v45 = vpop.permute.xlu2 %1967  ;;  %v1988_v60 = vsel %vm209_vm3, %v1987_v23, %v1944_v17 }
 0x46d   :  { %3832 = vmatpush.msk.msra.mxu1 %vm6099_vm14, %v3603_v52 }
 0x46f   :  { %v1948_v2 = vpop.permute.xlu0 %1947  ;;  %3655 = vmatpush.msra.mxu1 %v3599_v1 }
 0x470   :  { %v1989_v43 = vsel %vm211_vm4, %v1988_v60, %v1948_v2 }
 0x471   :  { %3656 = vmatpush.msra.mxu1 %v3595_v37 }
 0x472   :  { %v1952_v0 = vpop.permute.xlu1 %1951 }
 0x473   :  { %3657 = vmatpush.msra.mxu1 %v3591_v59  ;;  %v1990_v49 = vsel %vm213_vm5, %v1989_v43, %v1952_v0 }
 0x474   :  { %v1991_v63 = vsel %vm215_vm6, %v1990_v49, %v1956_v5  ;;  %v1980_v6 = vpop.permute.xlu2 %1979 }
 0x475   :  { %3658 = vmatpush.msra.mxu1 %v3587_v62 }
 0x477   :  { %v1960_v7 = vpop.permute.xlu0 %1959 }
 0x478   :  { %v1992_v15 = vsel %vm217_vm7, %v1991_v63, %v1960_v7 }
 0x47a   :  { %v1964_v3 = vpop.permute.xlu1 %1963 }
 0x47b   :  { %v1993_v4 = vsel %vm219_vm8, %v1992_v15, %v1964_v3 }
 0x47c   :  { %v1994_v8 = vsel %vm221_vm9, %v1993_v4, %v1968_v45  ;;  %v5021_v29 = vpop.permute.xlu2 %2011 }
 0x47d   :  { %1999 = vst [vmem:[#allocation2 + $0x10] sm:$0xf] %v1994_v8 }
 0x47f   :  { %v1972_v32 = vpop.permute.xlu0 %1971 }
 0x480   :  { %v1995_v10 = vsel %vm223_vm10, %v1968_v45, %v1972_v32 }
 0x482   :  { %v1976_v12 = vpop.permute.xlu1 %1975 }
 0x483   :  { %v1996_v14 = vsel %vm225_vm11, %v1995_v10, %v1976_v12 }
 0x484   :  { %v1997_v61 = vsel %vm227_vm12, %v1996_v14, %v1980_v6  ;;  %v2018_v54 = vpop.permute.xlu2 %2017 }
 0x485   :  { %v2033_v22 = vrot.slane %v2018_v54, 4 }
 0x487   :  { %v1984_v55 = vpop.permute.xlu0 %1983 }
 0x488   :  { %v1998_v51 = vsel %vm229_vm13, %v1997_v61, %v1984_v55  ;;  %v2091_v55 = vrot.slane %v5021_v29, 4 }
 0x489   :  { %2000 = vst.msk [vmem:[#allocation2 + $0x18] sm:$0xf] %vm6101_vm15, %v1998_v51  ;;  %vm6102_vm15 = vcmask 556036  }
 0x48a   :  { %v2010_v42 = vpop.permute.xlu1 %2009 }
 0x48b   :  { %v2034_v36 = vsel %vm49_vm0, %v2033_v22, %v2010_v42  ;;  %v2035_v44 = vrot.slane %v2010_v42, 4 }
 0x48c   :  { %v2040_v39 = vperm.slane %v2034_v36, %v3949_v11  ;;  %v2024_v28 = vpop.permute.xlu2 %2023 }
 0x48d   :  { %v2036_v17 = vsel %vm49_vm0, %v2018_v54, %v2035_v44  ;;  %v2101_v31 = vrot.slane %v2024_v28, 4 }
 0x48e   :  { %v2044_v38 = vperm.slane %v2036_v17, %v3949_v11  ;;  %v2059_v40 = vrot.slane %v2040_v39, 4 }
 0x48f   :  { %v2014_v18 = vpop.permute.xlu0 %2013 }
 0x490   :  { %v2047_v26 = vrot.slane %v2014_v18, 4  ;;  %v2071_v49 = vrot.slane %v2044_v38, 4 }
 0x492   :  { %v2016_v48 = vpop.permute.xlu1 %2015 }
 0x493   :  { %v2102_v52 = vsel %vm49_vm0, %v2101_v31, %v2016_v48  ;;  %v2103_v3 = vrot.slane %v2016_v48, 4 }
 0x494   :  { %v2108_v0 = vperm.slane %v2102_v52, %v3949_v11 }
 0x495   :  { %v2104_v12 = vsel %vm49_vm0, %v2024_v28, %v2103_v3 }
 0x496   :  { %v2113_v63 = vrot.slane %v2108_v0, 4  ;;  %v2112_v61 = vperm.slane %v2104_v12, %v3949_v11 }
 0x497   :  { %v2020_v19 = vpop.permute.xlu0 %2019 }
 0x498   :  { %v2089_v5 = vrot.slane %v2020_v19, 4  ;;  %v2092_v42 = vsel %vm49_vm0, %v2020_v19, %v2091_v55  ;;  %v2125_v48 = vrot.slane %v2112_v61, 4 }
 0x499   :  { %v2100_v22 = vperm.slane %v2092_v42, %v3949_v11 }
 0x49a   :  { %v2022_v9 = vpop.permute.xlu1 %2021  ;;  %v2090_v37 = vsel %vm49_vm0, %v2089_v5, %v5021_v29 }
 0x49b   :  { %v2045_v58 = vrot.slane %v2022_v9, 4  ;;  %v2048_v57 = vsel %vm49_vm0, %v2022_v9, %v2047_v26  ;;  %v2096_v62 = vperm.slane %v2090_v37, %v3949_v11  ;;  %v2126_v26 = vsel %vm49_vm0, %v2125_v48, %v2100_v22 }
 0x49c   :  { %v2056_v30 = vperm.slane %v2048_v57, %v3949_v11  ;;  %v2130_v28 = vperm.slane %v2126_v26, %v3984_v25 }
 0x49d   :  { %v2046_v35 = vsel %vm49_vm0, %v2045_v58, %v2014_v18  ;;  %v2114_v6 = vsel %vm49_vm0, %v2113_v63, %v2096_v62  ;;  %v2115_v8 = vrot.slane %v2096_v62, 4 }
 0x49e   :  { %v2052_v41 = vperm.slane %v2046_v35, %v3949_v11  ;;  %v2069_v46 = vrot.slane %v2056_v30, 4  ;;  %v2072_v15 = vsel %vm49_vm0, %v2056_v30, %v2071_v49  ;;  %v2120_v10 = vperm.slane %v2114_v6, %v3984_v25 }
 0x49f   :  { %v2080_v32 = vperm.slane %v2072_v15, %v3984_v25  ;;  %v2116_v14 = vsel %vm49_vm0, %v2108_v0, %v2115_v8  ;;  %v2135_v9 = vrot.slane %v2130_v28, 4 }
 0x4a0   :  { %v2057_v47 = vrot.slane %v2052_v41, 4  ;;  %v2060_v13 = vsel %vm49_vm0, %v2052_v41, %v2059_v40  ;;  %v2070_v50 = vsel %vm49_vm0, %v2069_v46, %v2044_v38  ;;  %v2131_v51 = vrot.slane %v2120_v10, 4 }
 0x4a1   :  { %v2068_v53 = vperm.slane %v2060_v13, %v3984_v25  ;;  %v2076_v2 = vperm.slane %v2070_v50, %v3984_v25  ;;  %v2124_v54 = vperm.slane %v2116_v14, %v3984_v25  ;;  %v2087_v18 = vrot.slane %v2080_v32, 4 }
 0x4a2   :  { %v2058_v1 = vsel %vm49_vm0, %v2057_v47, %v2040_v39  ;;  %v2132_v36 = vsel %vm49_vm0, 0.0, %v2131_v51  ;;  %v2136_v17 = vsel %vm49_vm0, 0.0, %v2135_v9 }
 0x4a3   :  { %2142 = vrot.lane.b32.xlu1 %v2068_v53, %s3879_s10  ;;  %v2083_v23 = vrot.slane %v2068_v53, 4  ;;  %v2064_v45 = vperm.slane %v2058_v1, %v3984_v25  ;;  %v2085_v43 = vrot.slane %v2076_v2, 4  ;;  %v2133_v29 = vrot.slane %v2124_v54, 4 }
 0x4a4   :  { %v2088_v44 = vsel %vm49_vm0, 0.0, %v2087_v18 }
 0x4a5   :  { %v2084_v59 = vsel %vm49_vm0, 0.0, %v2083_v23  ;;  %v2081_v60 = vrot.slane %v2064_v45, 4  ;;  %v2086_v4 = vsel %vm49_vm0, 0.0, %v2085_v43  ;;  %v2134_v39 = vsel %vm49_vm0, 0.0, %v2133_v29 }
 0x4a6   :  { %2146 = vrot.lane.b32.xlu2 %v2084_v59, %s3881_s12 }
 0x4a7   :  { %v2082_v7 = vsel %vm49_vm0, 0.0, %v2081_v60 }
 0x4a8   :  { %2138 = vrot.lane.b32.xlu0 %v2082_v7, %s3882_s13 }
 0x4ab   :  { %2154 = vrot.lane.b32.xlu1 %v2086_v4, %s3883_s14 }
 0x4ae   :  { %2158 = vrot.lane.b32.xlu2 %v2080_v32, %s3880_s11 }
 0x4b0   :  { %2150 = vrot.lane.b32.xlu0 %v2076_v2, %s3878_s9 }
 0x4b3   :  { %2166 = vrot.lane.b32.xlu1 %v2120_v10, %s3884_s15 }
 0x4b6   :  { %2170 = vrot.lane.b32.xlu2 %v2132_v36, %s3886_s17 }
 0x4b8   :  { %2162 = vrot.lane.b32.xlu0 %v2088_v44, %s3885_s16 }
 0x4bb   :  { %2178 = vrot.lane.b32.xlu1 %v2134_v39, %s3887_s18 }
 0x4be   :  { %2182 = vrot.lane.b32.xlu2 %v2130_v28, %s3889_s20 }
 0x4c0   :  { %2174 = vrot.lane.b32.xlu0 %v2124_v54, %s3888_s19 }
 0x4c3   :  { %2210 = vrot.lane.b32.xlu1 %v4865_v16, %s3886_s17 }
 0x4c6   :  { %2212 = vrot.lane.b32.xlu2 %v4932_v33, %s3886_s17 }
 0x4c8   :  { %2186 = vrot.lane.b32.xlu0 %v2136_v17, %s3891_s22 }
 0x4cb   :  { %2216 = vrot.lane.b32.xlu1 %v4923_v24, %s3886_s17 }
 0x4ce   :  { %2218 = vrot.lane.b32.xlu2 %v4851_v56, %s3886_s17 }
 0x4d0   :  { %2214 = vrot.lane.b32.xlu0 %v4846_v27, %s3886_s17 }
 0x4d3   :  { %2222 = vrot.lane.b32.xlu1 %v4834_v34, %s3886_s17 }
 0x4d6   :  { %2224 = vrot.lane.b32.xlu2 %v4907_v20, %s3886_s17 }
 0x4d8   :  { %2220 = vrot.lane.b32.xlu0 %v4917_v21, %s3886_s17 }
 0x500   :  { %v2147_v58 = vpop.permute.xlu2 %2146 }
 0x508   :  { %v2159_v57 = vpop.permute.xlu2 %2158 }
 0x510   :  { %v2171_v31 = vpop.permute.xlu2 %2170 }
 0x515   :  { %v2143_v19 = vpop.permute.xlu1 %2142 }
 0x518   :  { %v2183_v13 = vpop.permute.xlu2 %2182 }
 0x51a   :  { %v2139_v30 = vpop.permute.xlu0 %2138 }
 0x51b   :  { %v2189_v35 = vsel %vm205_vm1, %v2064_v45, %v2139_v30  ;;  %v5121_v30 = vrot.slane %v4907_v20, 2 }
 0x51c   :  { %v2190_v40 = vsel %vm207_vm2, %v2189_v35, %v2143_v19  ;;  %v3007_v19 = vrot.slane %v4834_v34, 2 }
 0x51d   :  { %v2155_v38 = vpop.permute.xlu1 %2154  ;;  %v2191_v46 = vsel %vm209_vm3, %v2190_v40, %v2147_v58 }
 0x520   :  { %v2213_v0 = vpop.permute.xlu2 %2212 }
 0x521   :  { %v2292_v26 = vrot.slane %v2213_v0, 4 }
 0x522   :  { %v2151_v41 = vpop.permute.xlu0 %2150 }
 0x523   :  { %v2192_v5 = vsel %vm211_vm4, %v2191_v46, %v2151_v41 }
 0x524   :  { %v2193_v50 = vsel %vm213_vm5, %v2192_v5, %v2155_v38 }
 0x525   :  { %v2167_v47 = vpop.permute.xlu1 %2166  ;;  %v2194_v53 = vsel %vm215_vm6, %v2193_v50, %v2159_v57 }
 0x528   :  { %v2219_v49 = vpop.permute.xlu2 %2218 }
 0x529   :  { %v2234_v6 = vrot.slane %v2219_v49, 4 }
 0x52a   :  { %v2163_v52 = vpop.permute.xlu0 %2162 }
 0x52b   :  { %v2195_v1 = vsel %vm217_vm7, %v2194_v53, %v2163_v52 }
 0x52c   :  { %v2196_v2 = vsel %vm219_vm8, %v2195_v1, %v2167_v47 }
 0x52d   :  { %v2197_v37 = vsel %vm221_vm9, %v2196_v2, %v2171_v31  ;;  %v2179_v23 = vpop.permute.xlu1 %2178 }
 0x52e   :  { %v2204_v45 = vrot.slane %v2197_v37, 4 }
 0x530   :  { %2208 = vst [vmem:[#allocation2 + $0x10] sm:$0xf0] %v2204_v45  ;;  %v2225_v14 = vpop.permute.xlu2 %2224 }
 0x531   :  { %v2302_v54 = vrot.slane %v2225_v14, 4 }
 0x532   :  { %v2175_v59 = vpop.permute.xlu0 %2174 }
 0x533   :  { %v2198_v60 = vsel %vm223_vm10, %v2171_v31, %v2175_v59 }
 0x534   :  { %v2199_v43 = vsel %vm225_vm11, %v2198_v60, %v2179_v23 }
 0x535   :  { %v2211_v62 = vpop.permute.xlu1 %2210  ;;  %v2200_v63 = vsel %vm227_vm12, %v2199_v43, %v2183_v13 }
 0x536   :  { %v2235_v32 = vsel %vm49_vm0, %v2234_v6, %v2211_v62  ;;  %v2236_v12 = vrot.slane %v2211_v62, 4 }
 0x537   :  { %v2241_v61 = vperm.slane %v2235_v32, %v3949_v11 }
 0x538   :  { %v2237_v22 = vsel %vm49_vm0, %v2219_v49, %v2236_v12 }
 0x539   :  { %v2260_v39 = vrot.slane %v2241_v61, 4  ;;  %v2245_v17 = vperm.slane %v2237_v22, %v3949_v11  ;;  %v2998_v22 = vrot.slane %v4865_v16, 2 }
 0x53a   :  { %v2187_v7 = vpop.permute.xlu0 %2186 }
 0x53b   :  { %v2201_v15 = vsel %vm229_vm13, %v2200_v63, %v2187_v7  ;;  %v5147_v7 = vrot.slane %v4923_v24, 2  ;;  %v2272_v63 = vrot.slane %v2245_v17, 4 }
 0x53c   :  { %v2205_v3 = vrot.slane %v2201_v15, 4 }
 0x53d   :  { %v2217_v4 = vpop.permute.xlu1 %2216 }
 0x53e   :  { %2209 = vst.msk [vmem:[#allocation2 + $0x18] sm:$0xf0] %vm6102_vm15, %v2205_v3  ;;  %v2304_v8 = vrot.slane %v2217_v4, 4  ;;  %v2303_v58 = vsel %vm49_vm0, %v2302_v54, %v2217_v4  ;;  %vm6103_vm15 = vcmask 1045504  }
 0x53f   :  { %v2309_v23 = vperm.slane %v2303_v58, %v3949_v11  ;;  %v3009_v45 = vsel %vm6103_vm15, %v3007_v19, %v5121_v30  ;;  %vm6104_vm14 = vmmov %vm6103_vm15  ;;  %v5189_v58 = vrot.slane %v4907_v20, 1  ;;  %v5202_v20 = vrot.slane %v4923_v24, 1 }
 0x540   :  { %v2305_v51 = vsel %vm49_vm0, %v2225_v14, %v2304_v8  ;;  %v3030_v43 = vrot.slane %v3009_v45, 4  ;;  %v5217_v24 = vrot.slane %v4917_v21, 1 }
 0x541   :  { %v2313_v29 = vperm.slane %v2305_v51, %v3949_v11  ;;  %v2314_v4 = vrot.slane %v2309_v23, 4 }
 0x542   :  { %v2215_v10 = vpop.permute.xlu0 %2214 }
 0x543   :  { %v2248_v55 = vrot.slane %v2215_v10, 4  ;;  %v2326_v41 = vrot.slane %v2313_v29, 4 }
 0x545   :  { %v2223_v42 = vpop.permute.xlu1 %2222 }
 0x546   :  { %v2246_v18 = vrot.slane %v2223_v42, 4  ;;  %v2249_v48 = vsel %vm49_vm0, %v2223_v42, %v2248_v55  ;;  %v3004_v55 = vrot.slane %v4851_v56, 2 }
 0x547   :  { %v2257_v36 = vperm.slane %v2249_v48, %v3949_v11 }
 0x548   :  { %v2247_v44 = vsel %vm49_vm0, %v2246_v18, %v2215_v10 }
 0x549   :  { %v2253_v28 = vperm.slane %v2247_v44, %v3949_v11  ;;  %v2270_v9 = vrot.slane %v2257_v36, 4  ;;  %v2273_v8 = vsel %vm49_vm0, %v2257_v36, %v2272_v63  ;;  %v5178_v36 = vrot.slane %v4932_v33, 2 }
 0x54a   :  { %v2221_v57 = vpop.permute.xlu0 %2220  ;;  %v2281_v42 = vperm.slane %v2273_v8, %v3984_v25 }
 0x54b   :  { %v2258_v31 = vrot.slane %v2253_v28, 4  ;;  %v2290_v35 = vrot.slane %v2221_v57, 4  ;;  %v2293_v38 = vsel %vm49_vm0, %v2221_v57, %v2292_v26  ;;  %v2261_v40 = vsel %vm49_vm0, %v2253_v28, %v2260_v39 }
 0x54c   :  { %v2301_v46 = vperm.slane %v2293_v38, %v3949_v11  ;;  %v2269_v5 = vperm.slane %v2261_v40, %v3984_v25  ;;  %v2271_v47 = vsel %vm49_vm0, %v2270_v9, %v2245_v17  ;;  %v3000_v44 = vsel %vm6104_vm14, %v2998_v22, %v5178_v36 }
 0x54d   :  { %v2291_v13 = vsel %vm49_vm0, %v2290_v35, %v2213_v0  ;;  %v2259_v50 = vsel %vm49_vm0, %v2258_v31, %v2241_v61  ;;  %v2277_v52 = vperm.slane %v2271_v47, %v3984_v25  ;;  %v3001_v0 = vrot.slane %v4846_v27, 2 }
 0x54e   :  { %v2297_v53 = vperm.slane %v2291_v13, %v3949_v11  ;;  %v5133_v1 = vsel %vm49_vm0, %v2326_v41, %v2301_v46  ;;  %2343 = vrot.lane.b32.xlu1 %v2269_v5, %s3879_s10  ;;  %v2284_v2 = vrot.slane %v2269_v5, 4  ;;  %v5137_v37 = vperm.slane %v2259_v50, %v3984_v25 }
 0x54f   :  { %v2286_v49 = vrot.slane %v2277_v52, 4  ;;  %v3003_v6 = vsel %vm6103_vm15, %v3001_v0, %v5147_v7  ;;  %v5164_v61 = vrot.slane %v4917_v21, 2  ;;  %v2288_v26 = vrot.slane %v2281_v42, 4 }
 0x550   :  { %v2316_v59 = vrot.slane %v2297_v53, 4  ;;  %v2285_v60 = vsel %vm49_vm0, 0.0, %v2284_v2  ;;  %v2282_v62 = vrot.slane %v5137_v37, 4  ;;  %v5158_v32 = vsel %vm49_vm0, %v3030_v43, %v3003_v6 }
 0x551   :  { %2347 = vrot.lane.b32.xlu2 %v2285_v60, %s3881_s12  ;;  %v3032_v10 = vrot.slane %v3003_v6, 4  ;;  %v2287_v12 = vsel %vm49_vm0, 0.0, %v2286_v49  ;;  %v2315_v14 = vsel %vm49_vm0, %v2314_v4, %v2297_v53  ;;  %v3006_v18 = vsel %vm6103_vm15, %v3004_v55, %v5164_v61 }
 0x552   :  { %v2283_v15 = vsel %vm49_vm0, 0.0, %v2282_v62  ;;  %v5151_v3 = vsel %vm49_vm0, %v2309_v23, %v2316_v59  ;;  %v2321_v54 = vperm.slane %v2315_v14, %v3984_v25  ;;  %v3018_v48 = vrot.slane %v3006_v18, 4 }
 0x553   :  { %2339 = vrot.lane.b32.xlu0 %v2283_v15, %s3882_s13  ;;  %v5168_v51 = vsel %vm49_vm0, %v3009_v45, %v3032_v10  ;;  %v3020_v28 = vrot.slane %v3000_v44, 4  ;;  %v2414_v17 = vrot.slane %v4834_v34, 1  ;;  %v2289_v19 = vsel %vm49_vm0, 0.0, %v2288_v26 }
 0x554   :  { %v2332_v29 = vrot.slane %v2321_v54, 4  ;;  %v5184_v39 = vsel %vm49_vm0, %v3018_v48, %v3000_v44  ;;  %vm6105_vm14 = vcmask 1046528   ;;  %v2408_v34 = vrot.slane %v4846_v27, 1 }
 0x555   :  { %v5192_v57 = vsel %vm49_vm0, %v3006_v18, %v3020_v28  ;;  %v2416_v31 = vsel %vm6105_vm14, %v2414_v17, %v5189_v58  ;;  %vm6106_vm15 = vmmov %vm6105_vm14  ;;  %v2411_v27 = vrot.slane %v4851_v56, 1  ;;  %v2405_v13 = vrot.slane %v4865_v16, 1 }
 0x556   :  { %2355 = vrot.lane.b32.xlu1 %v2287_v12, %s3883_s14  ;;  %v2333_v9 = vsel %vm49_vm0, 0.0, %v2332_v29  ;;  %v2437_v35 = vrot.slane %v2416_v31, 4  ;;  %v2410_v38 = vsel %vm6106_vm15, %v2408_v34, %v5202_v20  ;;  %v5226_v50 = vrot.slane %v4932_v33, 1  ;;  %vm6107_vm15 = vmmov %vm6105_vm14 }
 0x557   :  { %v2439_v41 = vrot.slane %v2410_v38, 4  ;;  %v2413_v5 = vsel %vm6105_vm14, %v2411_v27, %v5217_v24  ;;  %v3037_v22 = vperm.slane %v5158_v32, %v3949_v11  ;;  %v3025_v28 = vperm.slane %v5184_v39, %v3949_v11 }
 0x558   :  { %v5208_v40 = vsel %vm49_vm0, %v2437_v35, %v2410_v38  ;;  %v2425_v47 = vrot.slane %v2413_v5, 4  ;;  %v2407_v56 = vsel %vm6107_vm15, %v2405_v13, %v5226_v50  ;;  %vm3606_vm15 = vcmask 293888  }
 0x559   :  { %2359 = vrot.lane.b32.xlu2 %v2281_v42, %s3880_s11  ;;  %v5212_v46 = vsel %vm49_vm0, %v2416_v31, %v2439_v41  ;;  %v3042_v26 = vrot.slane %v3037_v22, 4 }
 0x55a   :  { %v5232_v21 = vsel %vm49_vm0, %v2425_v47, %v2407_v56 }
 0x55b   :  { %2351 = vrot.lane.b32.xlu0 %v2277_v52, %s3878_s9  ;;  %v2427_v52 = vrot.slane %v2407_v56, 4  ;;  %v3043_v34 = vsel %vm49_vm0, %v3042_v26, %v3025_v28 }
 0x55d   :  { %v5236_v53 = vsel %vm49_vm0, %v2413_v5, %v2427_v52 }
 0x55e   :  { %2367 = vrot.lane.b32.xlu1 %v2321_v54, %s3884_s15 }
 0x561   :  { %2371 = vrot.lane.b32.xlu2 %v2333_v9, %s3886_s17 }
 0x563   :  { %2363 = vrot.lane.b32.xlu0 %v2289_v19, %s3885_s16 }
 0x566   :  { %3402 = vrot.lane.b32.xlu1 %v3009_v45, %s3886_s17 }
 0x569   :  { %2809 = vrot.lane.b32.xlu2 %v2416_v31, %s3886_s17 }
 0x56b   :  { %3201 = vrot.lane.b32.xlu0 %v3009_v45, %s3890_s21 }
 0x56e   :  { %3197 = vrot.lane.b32.xlu1 %v3006_v18, %s3890_s21 }
 0x571   :  { %3394 = vrot.lane.b32.xlu2 %v3003_v6, %s3886_s17 }
 0x573   :  { %3193 = vrot.lane.b32.xlu0 %v3003_v6, %s3890_s21 }
 0x576   :  { %2614 = vrot.lane.b32.xlu1 %v2416_v31, %s3890_s21 }
 0x579   :  { %2801 = vrot.lane.b32.xlu2 %v2410_v38, %s3886_s17 }
 0x57b   :  { %3398 = vrot.lane.b32.xlu0 %v3006_v18, %s3886_s17 }
 0x57e   :  { %3189 = vrot.lane.b32.xlu1 %v3000_v44, %s3890_s21 }
 0x581   :  { %3203 = vrot.lane.b32.xlu2 %v5121_v30, %s3890_s21 }
 0x583   :  { %2805 = vrot.lane.b32.xlu0 %v2413_v5, %s3886_s17 }
 0x586   :  { %3404 = vrot.lane.b32.xlu1 %v5121_v30, %s3886_s17 }
 0x589   :  { %3199 = vrot.lane.b32.xlu2 %v5164_v61, %s3890_s21 }
 0x58b   :  { %3390 = vrot.lane.b32.xlu0 %v3000_v44, %s3886_s17 }
 0x58e   :  { %2606 = vrot.lane.b32.xlu1 %v2410_v38, %s3890_s21 }
 0x591   :  { %2610 = vrot.lane.b32.xlu2 %v2413_v5, %s3890_s21 }
 0x593   :  { %3400 = vrot.lane.b32.xlu0 %v5164_v61, %s3886_s17 }
 0x596   :  { %2811 = vrot.lane.b32.xlu1 %v5189_v58, %s3886_s17 }
 0x599   :  { %3195 = vrot.lane.b32.xlu2 %v5147_v7, %s3890_s21 }
 0x59b   :  { %2797 = vrot.lane.b32.xlu0 %v2407_v56, %s3886_s17 }
 0x59e   :  { %2807 = vrot.lane.b32.xlu1 %v5217_v24, %s3886_s17 }
 0x5a1   :  { %3191 = vrot.lane.b32.xlu2 %v5178_v36, %s3890_s21 }
 0x5a3   :  { %3396 = vrot.lane.b32.xlu0 %v5147_v7, %s3886_s17 }
 0x5a6   :  { %2602 = vrot.lane.b32.xlu1 %v2407_v56, %s3890_s21  ;;  %v3044_v56 = vrot.slane %v3025_v28, 4 }
 0x5a9   :  { %2616 = vrot.lane.b32.xlu2 %v5189_v58, %s3890_s21 }
 0x5ab   :  { %3392 = vrot.lane.b32.xlu0 %v5178_v36, %s3886_s17  ;;  %v2348_v16 = vpop.permute.xlu2 %2347 }
 0x5ae   :  { %2612 = vrot.lane.b32.xlu1 %v5217_v24, %s3890_s21 }
 0x5b1   :  { %2799 = vrot.lane.b32.xlu2 %v5226_v50, %s3886_s17 }
 0x5b3   :  { %2803 = vrot.lane.b32.xlu0 %v5202_v20, %s3886_s17  ;;  %v2360_v33 = vpop.permute.xlu2 %2359 }
 0x5b6   :  { %2604 = vrot.lane.b32.xlu1 %v5226_v50, %s3890_s21 }
 0x5bb   :  { %v5275_v2 = vpop.permute.xlu2 %2371  ;;  %2608 = vrot.lane.b32.xlu0 %v5202_v20, %s3890_s21 }
 0x5c0   :  { %v2344_v23 = vpop.permute.xlu1 %2343 }
 0x5c3   :  { %v5279_v45 = vpop.permute.xlu2 %2809 }
 0x5c5   :  { %v2340_v0 = vpop.permute.xlu0 %2339 }
 0x5c6   :  { %v2390_v59 = vsel %vm205_vm1, %v5137_v37, %v2340_v0 }
 0x5c7   :  { %v2391_v62 = vsel %vm207_vm2, %v2390_v59, %v2344_v23 }
 0x5c8   :  { %v2356_v60 = vpop.permute.xlu1 %2355  ;;  %v2392_v63 = vsel %vm209_vm3, %v2391_v62, %v2348_v16 }
 0x5cb   :  { %v5284_v43 = vpop.permute.xlu2 %3394 }
 0x5cd   :  { %v2352_v49 = vpop.permute.xlu0 %2351 }
 0x5ce   :  { %v2393_v15 = vsel %vm211_vm4, %v2392_v63, %v2352_v49 }
 0x5cf   :  { %v2394_v6 = vsel %vm213_vm5, %v2393_v15, %v2356_v60 }
 0x5d0   :  { %v2368_v4 = vpop.permute.xlu1 %2367  ;;  %v2395_v12 = vsel %vm215_vm6, %v2394_v6, %v2360_v33  ;;  %v5321_v33 = vperm.slane %v5208_v40, %v3949_v11 }
 0x5d3   :  { %v5289_v8 = vpop.permute.xlu2 %2801 }
 0x5d5   :  { %v2364_v10 = vpop.permute.xlu0 %2363 }
 0x5d6   :  { %v2396_v37 = vsel %vm217_vm7, %v2395_v12, %v2364_v10  ;;  %v5336_v10 = vperm.slane %v3043_v34, %v3984_v25  ;;  %v5339_v12 = vsel %vm49_vm0, %v3037_v22, %v3044_v56 }
 0x5d7   :  { %v2397_v14 = vsel %vm219_vm8, %v2396_v37, %v2368_v4  ;;  %v2449_v37 = vrot.slane %v5321_v33, 4 }
 0x5d8   :  { %v2398_v55 = vsel %vm221_vm9, %v2397_v14, %v5275_v2  ;;  %v5296_v42 = vpop.permute.xlu1 %3402  ;;  %v5344_v14 = vperm.slane %v5232_v21, %v3949_v11 }
 0x5d9   :  { %2403 = vst [vmem:[#allocation2 + $0x30] sm:$0xf] %v2398_v55  ;;  %v3426_v59 = vrot.slane %v5296_v42, 4 }
 0x5db   :  { %v5298_v54 = vpop.permute.xlu2 %3203 }
 0x5dd   :  { %v3202_v18 = vpop.permute.xlu0 %3201 }
 0x5de   :  { %v3225_v17 = vrot.slane %v3202_v18, 4 }
 0x5e0   :  { %v3198_v48 = vpop.permute.xlu1 %3197 }
 0x5e1   :  { %v3213_v38 = vrot.slane %v3198_v48, 4 }
 0x5e3   :  { %v5302_v29 = vpop.permute.xlu2 %3199 }
 0x5e5   :  { %v3194_v44 = vpop.permute.xlu0 %3193 }
 0x5e6   :  { %v3227_v19 = vrot.slane %v3194_v44, 4  ;;  %v3226_v31 = vsel %vm49_vm0, %v3225_v17, %v3194_v44  ;;  %v3066_v17 = vrot.slane %v5336_v10, 4 }
 0x5e7   :  { %v3232_v27 = vperm.slane %v3226_v31, %v3949_v11  ;;  %v2450_v31 = vsel %vm49_vm0, %v2449_v37, %v5344_v14 }
 0x5e8   :  { %v5306_v9 = vpop.permute.xlu1 %2614  ;;  %v3228_v32 = vsel %vm49_vm0, %v3202_v18, %v3227_v19 }
 0x5e9   :  { %v3236_v39 = vperm.slane %v3228_v32, %v3949_v11  ;;  %v3237_v52 = vrot.slane %v3232_v27, 4 }
 0x5eb   :  { %v5309_v35 = vpop.permute.xlu2 %2610  ;;  %v3249_v63 = vrot.slane %v3236_v39, 4 }
 0x5ed   :  { %v5312_v41 = vpop.permute.xlu0 %3398 }
 0x5ee   :  { %v3414_v34 = vrot.slane %v5312_v41, 4 }
 0x5f0   :  { %v3190_v5 = vpop.permute.xlu1 %3189 }
 0x5f1   :  { %v3214_v47 = vsel %vm49_vm0, %v3213_v38, %v3190_v5  ;;  %v3215_v13 = vrot.slane %v3190_v5, 4 }
 0x5f2   :  { %v3220_v16 = vperm.slane %v3214_v47, %v3949_v11  ;;  %v3067_v47 = vsel %vm49_vm0, 0.0, %v3066_v17 }
 0x5f3   :  { %v3216_v23 = vsel %vm49_vm0, %v3198_v48, %v3215_v13  ;;  %v5324_v0 = vpop.permute.xlu2 %3195  ;;  %v3427_v48 = vsel %vm49_vm0, %v3426_v59, %v5284_v43 }
 0x5f4   :  { %v3224_v60 = vperm.slane %v3216_v23, %v3949_v11  ;;  %v3238_v62 = vsel %vm49_vm0, %v3237_v52, %v3220_v16  ;;  %v3239_v49 = vrot.slane %v3220_v16, 4  ;;  %v3283_v26 = vrot.slane %v5324_v0, 4 }
 0x5f5   :  { %v5329_v15 = vpop.permute.xlu0 %2805  ;;  %v5332_v4 = vperm.slane %v3238_v62, %v3984_v25  ;;  %v3433_v19 = vperm.slane %v3427_v48, %v3949_v11 }
 0x5f6   :  { %v3251_v6 = vrot.slane %v3224_v60, 4  ;;  %v3240_v40 = vsel %vm49_vm0, %v3232_v27, %v3239_v49  ;;  %v5354_v22 = vsel %vm49_vm0, %v3249_v63, %v3224_v60  ;;  %v3284_v38 = vsel %vm49_vm0, %v5298_v54, %v3283_v26 }
 0x5f7   :  { %v3248_v55 = vperm.slane %v3240_v40, %v3984_v25  ;;  %v3261_v18 = vrot.slane %v5332_v4, 4  ;;  %v3438_v13 = vrot.slane %v3433_v19, 4  ;;  %v3292_v52 = vperm.slane %v3284_v38, %v3949_v11 }
 0x5f8   :  { %v5350_v44 = vpop.permute.xlu1 %3404  ;;  %v5357_v28 = vsel %vm49_vm0, %v3236_v39, %v3251_v6  ;;  %v2833_v63 = vrot.slane %v5279_v45, 4 }
 0x5f9   :  { %3322 = vrot.lane.b32.xlu1 %v3248_v55, %s3879_s10  ;;  %v3262_v21 = vsel %vm49_vm0, 0.0, %v3261_v18  ;;  %v3305_v6 = vrot.slane %v3292_v52, 4  ;;  %v2821_v52 = vrot.slane %v5329_v15, 4 }
 0x5fa   :  { %3318 = vrot.lane.b32.xlu2 %v3262_v21, %s3882_s13 }
 0x5fb   :  { %v5369_v32 = vpop.permute.xlu2 %3191 }
 0x5fc   :  { %v3271_v5 = vrot.slane %v5369_v32, 4 }
 0x5fd   :  { %v3391_v27 = vpop.permute.xlu0 %3390 }
 0x5fe   :  { %v3415_v39 = vsel %vm49_vm0, %v3414_v34, %v3391_v27  ;;  %v3272_v60 = vsel %vm49_vm0, %v5302_v29, %v3271_v5  ;;  %v2834_v34 = vsel %vm49_vm0, %v2833_v63, %v5289_v8 }
 0x5ff   :  { %v3421_v56 = vperm.slane %v3415_v39, %v3949_v11  ;;  %v3280_v26 = vperm.slane %v3272_v60, %v3949_v11  ;;  %v3263_v39 = vrot.slane %v3248_v55, 4  ;;  %v3416_v60 = vrot.slane %v3391_v27, 4 }
 0x600   :  { %v5376_v16 = vpop.permute.xlu1 %2606 }
 0x601   :  { %v3439_v23 = vsel %vm49_vm0, %v3438_v13, %v3421_v56  ;;  %v3440_v59 = vrot.slane %v3421_v56, 4  ;;  %3123 = vrot.lane.b32.xlu1 %v3067_v47, %s3882_s13  ;;  %v2640_v62 = vrot.slane %v5376_v16, 4  ;;  %v5409_v5 = vsel %vm49_vm0, %v3305_v6, %v3280_v26 }
 0x602   :  { %v5384_v49 = vperm.slane %v3439_v23, %v3984_v25  ;;  %v2840_v13 = vperm.slane %v2834_v34, %v3949_v11  ;;  %v3428_v56 = vrot.slane %v5284_v43, 4  ;;  %v3281_v43 = vrot.slane %v5298_v54, 4 }
 0x603   :  { %v3441_v40 = vsel %vm49_vm0, %v3433_v19, %v3440_v59  ;;  %v5390_v37 = vsel %vm49_vm0, %v5306_v9, %v2640_v62  ;;  %v2835_v19 = vrot.slane %v5289_v8, 4  ;;  %v3264_v59 = vsel %vm49_vm0, 0.0, %v3263_v39 }
 0x604   :  { %v5393_v18 = vperm.slane %v3441_v40, %v3984_v25  ;;  %v3462_v48 = vrot.slane %v5384_v49, 4  ;;  %v2845_v55 = vrot.slane %v2840_v13, 4  ;;  %v3429_v6 = vsel %vm49_vm0, %v5296_v42, %v3428_v56 }
 0x605   :  { %v5397_v21 = vpop.permute.xlu0 %3400  ;;  %v2836_v47 = vsel %vm49_vm0, %v5279_v45, %v2835_v19  ;;  %v3417_v34 = vsel %vm49_vm0, %v5312_v41, %v3416_v60  ;;  %v5434_v39 = vperm.slane %v5339_v12, %v3984_v25  ;;  %v5440_v54 = vperm.slane %v3429_v6, %v3949_v11 }
 0x606   :  { %3523 = vrot.lane.b32.xlu2 %v5393_v18, %s3879_s10  ;;  %v3463_v17 = vsel %vm49_vm0, 0.0, %v3462_v48  ;;  %v2844_v8 = vperm.slane %v2836_v47, %v3949_v11  ;;  %v5444_v56 = vperm.slane %v2450_v31, %v3984_v25  ;;  %v3269_v31 = vrot.slane %v5302_v29, 4 }
 0x607   :  { %3519 = vrot.lane.b32.xlu0 %v3463_v17, %s3882_s13  ;;  %v2626_v6 = vrot.slane %v5309_v35, 4 }
 0x608   :  { %v5406_v38 = vpop.permute.xlu1 %2811  ;;  %v2857_v19 = vrot.slane %v2844_v8, 4  ;;  %v2473_v29 = vrot.slane %v5444_v56, 4 }
 0x60d   :  { %v2798_v23 = vpop.permute.xlu0 %2797 }
 0x60e   :  { %v2822_v62 = vsel %vm49_vm0, %v2821_v52, %v2798_v23  ;;  %v2823_v63 = vrot.slane %v2798_v23, 4  ;;  %3326 = vrot.lane.b32.xlu2 %v3264_v59, %s3881_s12  ;;  %v3282_v52 = vsel %vm49_vm0, %v3281_v43, %v5324_v0  ;;  %v5456_v59 = vperm.slane %v3417_v34, %v3949_v11 }
 0x60f   :  { %v2828_v45 = vperm.slane %v2822_v62, %v3949_v11  ;;  %v3464_v34 = vrot.slane %v5393_v18, 4 }
 0x610   :  { %v2824_v40 = vsel %vm49_vm0, %v5329_v15, %v2823_v63  ;;  %v5426_v48 = vpop.permute.xlu1 %2807  ;;  %v3450_v63 = vrot.slane %v5440_v54, 4 }
 0x611   :  { %v2832_v27 = vperm.slane %v2824_v40, %v3949_v11  ;;  %v2846_v26 = vsel %vm49_vm0, %v2845_v55, %v2828_v45  ;;  %v2847_v17 = vrot.slane %v2828_v45, 4  ;;  %v2638_v55 = vrot.slane %v5306_v9, 4 }
 0x612   :  { %v5437_v42 = vperm.slane %v2846_v26, %v3984_v25  ;;  %v5470_v45 = vperm.slane %v3282_v52, %v3949_v11  ;;  %v3451_v9 = vsel %vm49_vm0, %v3450_v63, %v5456_v59 }
 0x613   :  { %v2859_v15 = vrot.slane %v2832_v27, 4  ;;  %v2848_v47 = vsel %vm49_vm0, %v2840_v13, %v2847_v17  ;;  %v5453_v23 = vsel %vm49_vm0, %v2857_v19, %v2832_v27  ;;  %v2639_v40 = vsel %vm49_vm0, %v2638_v55, %v5376_v16 }
 0x614   :  { %v5449_v41 = vperm.slane %v2848_v47, %v3984_v25  ;;  %v2869_v12 = vrot.slane %v5437_v42, 4  ;;  %v2649_v27 = vperm.slane %v5390_v37, %v3949_v11  ;;  %v3270_v17 = vsel %vm49_vm0, %v3269_v31, %v5369_v32 }
 0x615   :  { %v3397_v60 = vpop.permute.xlu0 %3396  ;;  %v5459_v13 = vsel %vm49_vm0, %v2844_v8, %v2859_v15  ;;  %v5472_v8 = vpop.permute.xlu2 %2616  ;;  %v3293_v15 = vrot.slane %v5470_v45, 4  ;;  %v2474_v47 = vsel %vm49_vm0, 0.0, %v2473_v29  ;;  %v5493_v37 = vperm.slane %v2639_v40, %v3949_v11 }
 0x616   :  { %v3484_v62 = vrot.slane %v3397_v60, 4  ;;  %3127 = vrot.lane.b32.xlu2 %v5434_v39, %s3879_s10  ;;  %2930 = vrot.lane.b32.xlu1 %v5449_v41, %s3879_s10  ;;  %v2870_v0 = vsel %vm49_vm0, 0.0, %v2869_v12  ;;  %v5498_v32 = vperm.slane %v3451_v9, %v3984_v25  ;;  %v2662_v31 = vrot.slane %v2649_v27, 4 }
 0x617   :  { %2926 = vrot.lane.b32.xlu0 %v2870_v0, %s3882_s13  ;;  %v3276_v18 = vperm.slane %v3270_v17, %v3949_v11  ;;  %v3465_v29 = vsel %vm49_vm0, 0.0, %v3464_v34  ;;  %v3068_v40 = vrot.slane %v5434_v39, 4  ;;  %v3470_v9 = vrot.slane %v5397_v21, 4 }
 0x618   :  { %v2603_v43 = vpop.permute.xlu1 %2602  ;;  %v3485_v19 = vsel %vm49_vm0, %v5350_v44, %v3484_v62 }
 0x619   :  { %v2628_v26 = vrot.slane %v2603_v43, 4  ;;  %v2627_v52 = vsel %vm49_vm0, %v2626_v6, %v2603_v43  ;;  %v3493_v62 = vperm.slane %v3485_v19, %v3949_v11  ;;  %v3294_v6 = vsel %vm49_vm0, %v3293_v15, %v3276_v18 }
 0x61a   :  { %v5509_v43 = vperm.slane %v2627_v52, %v3949_v11  ;;  %v2451_v52 = vrot.slane %v5344_v14, 4 }
 0x61b   :  { %v2629_v16 = vsel %vm49_vm0, %v5309_v35, %v2628_v26  ;;  %v3482_v35 = vrot.slane %v5350_v44, 4  ;;  %v2650_v26 = vrot.slane %v5493_v37, 4  ;;  %v3506_v15 = vrot.slane %v3493_v62, 4 }
 0x61c   :  { %v2637_v12 = vperm.slane %v2629_v16, %v3949_v11 }
 0x61d   :  { %v3393_v0 = vpop.permute.xlu0 %3392  ;;  %v3483_v34 = vsel %vm49_vm0, %v3482_v35, %v3397_v60  ;;  %v5524_v16 = vpop.permute.xlu2 %2799  ;;  %v5539_v35 = vperm.slane %v3294_v6, %v3984_v25  ;;  %v2452_v6 = vsel %vm49_vm0, %v5321_v33, %v2451_v52 }
 0x61e   :  { %v2664_v63 = vrot.slane %v2637_v12, 4  ;;  %v3472_v55 = vrot.slane %v3393_v0, 4  ;;  %2530 = vrot.lane.b32.xlu2 %v2474_v47, %s3882_s13  ;;  %3531 = vrot.lane.b32.xlu1 %v5498_v32, %s3878_s9  ;;  %v5514_v44 = vsel %vm49_vm0, %v2662_v31, %v2637_v12  ;;  %v2871_v47 = vrot.slane %v5449_v41, 4 }
 0x61f   :  { %3527 = vrot.lane.b32.xlu0 %v3465_v29, %s3881_s12  ;;  %v2651_v12 = vsel %vm49_vm0, %v2650_v26, %v5509_v43  ;;  %v3471_v31 = vsel %vm49_vm0, %v3470_v9, %v3393_v0  ;;  %v3489_v60 = vperm.slane %v3483_v34, %v3949_v11  ;;  %v2879_v62 = vrot.slane %v5524_v16, 4 }
 0x620   :  { %v3473_v17 = vsel %vm49_vm0, %v5397_v21, %v3472_v55  ;;  %v5521_v19 = vsel %vm49_vm0, %v2649_v27, %v2664_v63  ;;  %v3069_v21 = vsel %vm49_vm0, 0.0, %v3068_v40  ;;  %v3295_v41 = vrot.slane %v3276_v18, 4 }
 0x621   :  { %v3481_v39 = vperm.slane %v3473_v17, %v3949_v11  ;;  %v2872_v14 = vsel %vm49_vm0, 0.0, %v2871_v47  ;;  %v3256_v55 = vperm.slane %v5354_v22, %v3984_v25  ;;  %v3477_v0 = vperm.slane %v3471_v31, %v3949_v11 }
 0x622   :  { %v5548_v40 = vperm.slane %v2651_v12, %v3984_v25  ;;  %v3494_v18 = vrot.slane %v3489_v60, 4  ;;  %v2880_v26 = vsel %vm49_vm0, %v5426_v48, %v2879_v62  ;;  %v3311_v9 = vrot.slane %v5539_v35, 4  ;;  %v5568_v12 = vpop.permute.xlu1 %2612 }
 0x623   :  { %v5534_v27 = vsel %vm49_vm0, %v3506_v15, %v3481_v39  ;;  %v5560_v17 = vperm.slane %v5168_v51, %v3949_v11  ;;  %v3296_v33 = vsel %vm49_vm0, %v5470_v45, %v3295_v41  ;;  %v2888_v47 = vperm.slane %v2880_v26, %v3949_v11 }
 0x624   :  { %v3495_v15 = vsel %vm49_vm0, %v3494_v18, %v3477_v0  ;;  %v2674_v39 = vrot.slane %v5548_v40, 4  ;;  %v3496_v31 = vrot.slane %v3477_v0, 4  ;;  %v3312_v51 = vsel %vm49_vm0, 0.0, %v3311_v9 }
 0x625   :  { %v2804_v63 = vpop.permute.xlu0 %2803  ;;  %v5573_v62 = vperm.slane %v3495_v15, %v3984_v25  ;;  %v5577_v45 = vperm.slane %v5192_v57, %v3949_v11  ;;  %v3054_v41 = vrot.slane %v5560_v17, 4  ;;  %v3265_v9 = vrot.slane %v3256_v55, 4 }
 0x626   :  { %v2891_v29 = vrot.slane %v2804_v63, 4  ;;  %3131 = vrot.lane.b32.xlu2 %v3069_v21, %s3881_s12  ;;  %2934 = vrot.lane.b32.xlu1 %v2872_v14, %s3881_s12  ;;  %v3304_v21 = vperm.slane %v3296_v33, %v3984_v25  ;;  %v2675_v0 = vsel %vm49_vm0, 0.0, %v2674_v39  ;;  %v3497_v26 = vsel %vm49_vm0, %v3489_v60, %v3496_v31 }
 0x627   :  { %3330 = vrot.lane.b32.xlu0 %v3256_v55, %s3878_s9  ;;  %v3505_v33 = vperm.slane %v3497_v26, %v3984_v25  ;;  %v2652_v15 = vrot.slane %v5509_v43, 4  ;;  %v3266_v60 = vsel %vm49_vm0, 0.0, %v3265_v9 }
 0x628   :  { %v2892_v22 = vsel %vm49_vm0, %v5406_v38, %v2891_v29  ;;  %v3055_v29 = vsel %vm49_vm0, %v3054_v41, %v5577_v45 }
 0x629   :  { %v2900_v34 = vperm.slane %v2892_v22, %v3949_v11  ;;  %v3512_v22 = vrot.slane %v5573_v62, 4  ;;  %v2653_v43 = vsel %vm49_vm0, %v5493_v37, %v2652_v15  ;;  %v3086_v15 = vrot.slane %v5121_v30, 4 }
 0x62a   :  { %v2661_v26 = vperm.slane %v2653_v43, %v3984_v25  ;;  %v3514_v43 = vrot.slane %v3505_v33, 4 }
 0x62b   :  { %v2913_v52 = vrot.slane %v2900_v34, 4  ;;  %v3513_v39 = vsel %vm49_vm0, 0.0, %v3512_v22  ;;  %v2889_v22 = vrot.slane %v5406_v38, 4 }
 0x62d   :  { %v5581_v14 = vsel %vm49_vm0, %v2913_v52, %v2888_v47  ;;  %v5589_v18 = vpop.permute.xlu0 %2608  ;;  %v5599_v47 = vpop.permute.xlu1 %2604  ;;  %v2890_v37 = vsel %vm49_vm0, %v2889_v22, %v2804_v63  ;;  %v3061_v22 = vperm.slane %v3055_v29, %v3984_v25 }
 0x62e   :  { %3354 = vrot.lane.b32.xlu2 %v3304_v21, %s3888_s19  ;;  %3350 = vrot.lane.b32.xlu1 %v3312_v51, %s3886_s17  ;;  %v2696_v57 = vrot.slane %v5589_v18, 4  ;;  %v2684_v52 = vrot.slane %v5599_v47, 4  ;;  %v3466_v51 = vrot.slane %v5498_v32, 4  ;;  %v2896_v38 = vperm.slane %v2890_v37, %v3949_v11 }
 0x62f   :  { %2731 = vrot.lane.b32.xlu0 %v2675_v0, %s3882_s13 }
 0x630   :  { %v2697_v34 = vsel %vm49_vm0, %v5472_v8, %v2696_v57  ;;  %v2685_v31 = vsel %vm49_vm0, %v5568_v12, %v2684_v52  ;;  %v2864_v57 = vperm.slane %v5453_v23, %v3984_v25  ;;  %v3467_v9 = vsel %vm49_vm0, 0.0, %v3466_v51 }
 0x631   :  { %v2705_v55 = vperm.slane %v2697_v34, %v3949_v11  ;;  %v2693_v0 = vperm.slane %v2685_v31, %v3949_v11  ;;  %v2877_v34 = vrot.slane %v5426_v48, 4  ;;  %v3313_v23 = vrot.slane %v3304_v21, 4 }
 0x632   :  { %v3087_v48 = vsel %vm49_vm0, %v3086_v15, %v5147_v7  ;;  %v2901_v21 = vrot.slane %v2896_v38, 4  ;;  %v3452_v15 = vrot.slane %v5456_v59, 4 }
 0x633   :  { %v2718_v41 = vrot.slane %v2705_v55, 4  ;;  %v2878_v63 = vsel %vm49_vm0, %v2877_v34, %v5524_v16  ;;  %v3314_v52 = vsel %vm49_vm0, 0.0, %v3313_v23  ;;  %v3074_v55 = vrot.slane %v5164_v61, 4 }
 0x634   :  { %v2884_v16 = vperm.slane %v2878_v63, %v3949_v11  ;;  %v3093_v31 = vperm.slane %v3087_v48, %v3949_v11 }
 0x635   :  { %v5623_v32 = vsel %vm49_vm0, %v2718_v41, %v2693_v0  ;;  %v3075_v51 = vsel %vm49_vm0, %v3074_v55, %v5178_v36 }
 0x636   :  { %3555 = vrot.lane.b32.xlu2 %v3505_v33, %s3888_s19  ;;  %3551 = vrot.lane.b32.xlu1 %v3513_v39, %s3886_s17  ;;  %v2460_v39 = vperm.slane %v2452_v6, %v3984_v25  ;;  %v2902_v41 = vsel %vm49_vm0, %v2901_v21, %v2884_v16  ;;  %v3098_v37 = vrot.slane %v3093_v31, 4  ;;  %v3515_v33 = vsel %vm49_vm0, 0.0, %v3514_v43 }
 0x637   :  { %3334 = vrot.lane.b32.xlu0 %v3266_v60, %s3883_s14  ;;  %v3260_v60 = vperm.slane %v5357_v28, %v3984_v25  ;;  %v5642_v28 = vperm.slane %v5212_v46, %v3949_v11  ;;  %v5654_v46 = vperm.slane %v5236_v53, %v3949_v11  ;;  %v5659_v23 = vperm.slane %v2902_v41, %v3984_v25 }
 0x638   :  { %v2475_v6 = vrot.slane %v2460_v39, 4 }
 0x639   :  { %v2461_v34 = vrot.slane %v5642_v28, 4  ;;  %v2919_v63 = vrot.slane %v5659_v23, 4 }
 0x63a   :  { %v2476_v0 = vsel %vm49_vm0, 0.0, %v2475_v6 }
 0x63b   :  { %v2462_v29 = vsel %vm49_vm0, %v2461_v34, %v5654_v46  ;;  %v2920_v48 = vsel %vm49_vm0, 0.0, %v2919_v63  ;;  %v3056_v63 = vrot.slane %v5577_v45, 4 }
 0x63e   :  { %2938 = vrot.lane.b32.xlu2 %v2864_v57, %s3878_s9  ;;  %2735 = vrot.lane.b32.xlu1 %v2661_v26, %s3879_s10 }
 0x63f   :  { %3535 = vrot.lane.b32.xlu0 %v3467_v9, %s3883_s14  ;;  %v3081_v9 = vperm.slane %v3075_v51, %v3949_v11 }
 0x641   :  { %v3099_v53 = vsel %vm49_vm0, %v3098_v37, %v3081_v9  ;;  %v2903_v37 = vrot.slane %v2884_v16, 4  ;;  %v5703_v16 = vperm.slane %v2462_v29, %v3984_v25 }
 0x642   :  { %v5672_v55 = vperm.slane %v3099_v53, %v3984_v25 }
 0x644   :  { %v3116_v6 = vrot.slane %v5672_v55, 4 }
 0x646   :  { %3358 = vrot.lane.b32.xlu2 %v3314_v52, %s3887_s18  ;;  %3338 = vrot.lane.b32.xlu1 %v3260_v60, %s3880_s11  ;;  %v3453_v52 = vsel %vm49_vm0, %v5440_v54, %v3452_v15  ;;  %v2676_v54 = vrot.slane %v2661_v26, 4  ;;  %v3117_v41 = vsel %vm49_vm0, 0.0, %v3116_v6  ;;  %v5690_v26 = vperm.slane %v5409_v5, %v3984_v25 }
 0x647   :  { %2534 = vrot.lane.b32.xlu0 %v2460_v39, %s3879_s10  ;;  %v2873_v39 = vrot.slane %v2864_v57, 4  ;;  %v3461_v21 = vperm.slane %v3453_v52, %v3984_v25  ;;  %v3070_v57 = vrot.slane %v3061_v22, 4  ;;  %v3100_v15 = vrot.slane %v3081_v9, 4 }
 0x649   :  { %v2874_v59 = vsel %vm49_vm0, 0.0, %v2873_v39  ;;  %v3071_v51 = vsel %vm49_vm0, 0.0, %v3070_v57  ;;  %v3101_v5 = vsel %vm49_vm0, %v3093_v31, %v3100_v15  ;;  %v2493_v31 = vrot.slane %v5189_v58, 4 }
 0x64a   :  { %v3109_v52 = vperm.slane %v3101_v5, %v3984_v25  ;;  %v3468_v29 = vrot.slane %v3461_v21, 4 }
 0x64e   :  { %2538 = vrot.lane.b32.xlu2 %v2476_v0, %s3881_s12  ;;  %3559 = vrot.lane.b32.xlu1 %v3515_v33, %s3887_s18  ;;  %v2677_v0 = vsel %vm49_vm0, 0.0, %v2676_v54  ;;  %v3267_v33 = vrot.slane %v3260_v60, 4 }
 0x64f   :  { %3135 = vrot.lane.b32.xlu0 %v3061_v22, %s3878_s9  ;;  %v2904_v22 = vsel %vm49_vm0, %v2896_v38, %v2903_v37  ;;  %v3057_v38 = vsel %vm49_vm0, %v5560_v17, %v3056_v63 }
 0x650   :  { %v3268_v53 = vsel %vm49_vm0, 0.0, %v3267_v33  ;;  %v2912_v39 = vperm.slane %v2904_v22, %v3984_v25 }
 0x654   :  { %v3319_v43 = vpop.permute.xlu2 %3318 }
 0x655   :  { %v3369_v9 = vsel %vm205_vm1, %v5332_v4, %v3319_v43  ;;  %v2921_v4 = vrot.slane %v2912_v39, 4  ;;  %v5721_v43 = vperm.slane %v5459_v13, %v3984_v25  ;;  %v3469_v13 = vsel %vm49_vm0, 0.0, %v3468_v29 }
 0x656   :  { %2942 = vrot.lane.b32.xlu1 %v2874_v59, %s3883_s14  ;;  %2958 = vrot.lane.b32.xlu2 %v2920_v48, %s3886_s17  ;;  %v3511_v48 = vperm.slane %v5534_v27, %v3984_v25 }
 0x657   :  { %3539 = vrot.lane.b32.xlu0 %v3461_v21, %s3880_s11  ;;  %v2922_v54 = vsel %vm49_vm0, 0.0, %v2921_v4  ;;  %v3118_v21 = vrot.slane %v3109_v52, 4 }
 0x65e   :  { %3139 = vrot.lane.b32.xlu1 %v3071_v51, %s3883_s14  ;;  %3155 = vrot.lane.b32.xlu2 %v3117_v41, %s3886_s17  ;;  %v2481_v41 = vrot.slane %v5217_v24, 4 }
 0x65f   :  { %2739 = vrot.lane.b32.xlu0 %v2677_v0, %s3881_s12  ;;  %v2494_v0 = vsel %vm49_vm0, %v2493_v31, %v5202_v20 }
 0x660   :  { %v3524_v34 = vpop.permute.xlu2 %3523  ;;  %v2500_v37 = vperm.slane %v2494_v0, %v3949_v11  ;;  %v2482_v22 = vsel %vm49_vm0, %v2481_v41, %v5226_v50  ;;  %v3315_v41 = vrot.slane %v5690_v26, 4 }
 0x662   :  { %v2505_v5 = vrot.slane %v2500_v37, 4 }
 0x666   :  { %3342 = vrot.lane.b32.xlu1 %v3268_v53, %s3885_s16  ;;  %3362 = vrot.lane.b32.xlu2 %v5690_v26, %s3889_s20  ;;  %v2694_v53 = vrot.slane %v5472_v8, 4  ;;  %v2477_v26 = vrot.slane %v5703_v16, 4 }
 0x667   :  { %2962 = vrot.lane.b32.xlu0 %v2912_v39, %s3888_s19  ;;  %v3119_v39 = vsel %vm49_vm0, 0.0, %v3118_v21 }
 0x668   :  { %v3327_v60 = vpop.permute.xlu2 %3326 }
 0x66b   :  { %v3323_v45 = vpop.permute.xlu1 %3322 }
 0x66c   :  { %v3370_v59 = vsel %vm207_vm2, %v3369_v9, %v3323_v45  ;;  %v5748_v9 = vperm.slane %v5514_v44, %v3984_v25  ;;  %v2682_v45 = vrot.slane %v5568_v12, 4  ;;  %v3516_v44 = vrot.slane %v3511_v48, 4 }
 0x66d   :  { %v5712_v57 = vsel %vm209_vm3, %v3370_v59, %v3327_v60  ;;  %v2488_v60 = vperm.slane %v2482_v22, %v3949_v11 }
 0x66e   :  { %3563 = vrot.lane.b32.xlu1 %v3511_v48, %s3889_s20  ;;  %2542 = vrot.lane.b32.xlu2 %v5703_v16, %s3878_s9  ;;  %v2683_v12 = vsel %vm49_vm0, %v2682_v45, %v5599_v47  ;;  %v3517_v29 = vsel %vm49_vm0, 0.0, %v3516_v44 }
 0x66f   :  { %3159 = vrot.lane.b32.xlu0 %v3109_v52, %s3888_s19  ;;  %v2507_v4 = vrot.slane %v2488_v60, 4 }
 0x670   :  { %v3128_v17 = vpop.permute.xlu2 %3127 }
 0x673   :  { %v3124_v6 = vpop.permute.xlu1 %3123 }
 0x674   :  { %v3174_v27 = vsel %vm205_vm1, %v5336_v10, %v3124_v6 }
 0x675   :  { %v3175_v51 = vsel %vm207_vm2, %v3174_v27, %v3128_v17  ;;  %v2463_v17 = vrot.slane %v5654_v46, 4 }
 0x676   :  { %2946 = vrot.lane.b32.xlu1 %v5721_v43, %s3880_s11  ;;  %2966 = vrot.lane.b32.xlu2 %v2922_v54, %s3887_s18 }
 0x677   :  { %3543 = vrot.lane.b32.xlu0 %v3469_v13, %s3885_s16  ;;  %v5770_v31 = vsel %vm49_vm0, %v5642_v28, %v2463_v17  ;;  %v2689_v28 = vperm.slane %v2683_v12, %v3949_v11  ;;  %v3088_v17 = vrot.slane %v5147_v7, 4  ;;  %v2678_v12 = vrot.slane %v5748_v9, 4 }
 0x678   :  { %v5735_v10 = vpop.permute.xlu2 %2530 }
 0x679   :  { %v3520_v33 = vpop.permute.xlu0 %3519  ;;  %v2708_v21 = vrot.slane %v2689_v28, 4  ;;  %v2679_v7 = vsel %vm49_vm0, 0.0, %v2678_v12 }
 0x67a   :  { %v3570_v15 = vsel %vm205_vm1, %v5384_v49, %v3520_v33  ;;  %v2695_v49 = vsel %vm49_vm0, %v2694_v53, %v5589_v18  ;;  %v3316_v33 = vsel %vm49_vm0, 0.0, %v3315_v41 }
 0x67b   :  { %v3571_v63 = vsel %vm207_vm2, %v3570_v15, %v3524_v34  ;;  %v2506_v34 = vsel %vm49_vm0, %v2505_v5, %v2488_v60  ;;  %v2701_v59 = vperm.slane %v2695_v49, %v3949_v11 }
 0x67c   :  { %v5766_v18 = vperm.slane %v2506_v34, %v3984_v25 }
 0x67d   :  { %v2706_v48 = vrot.slane %v2701_v59, 4 }
 0x67e   :  { %3163 = vrot.lane.b32.xlu1 %v3119_v39, %s3887_s18  ;;  %3346 = vrot.lane.b32.xlu2 %v5539_v35, %s3884_s15  ;;  %v3065_v35 = vperm.slane %v3057_v38, %v3984_v25  ;;  %v2523_v46 = vrot.slane %v5766_v18, 4  ;;  %v2508_v38 = vsel %vm49_vm0, %v2500_v37, %v2507_v4  ;;  %v2709_v39 = vsel %vm49_vm0, %v2701_v59, %v2708_v21 }
 0x67f   :  { %2743 = vrot.lane.b32.xlu0 %v5748_v9, %s3878_s9  ;;  %v2707_v47 = vsel %vm49_vm0, %v2706_v48, %v2689_v28  ;;  %v2717_v49 = vperm.slane %v2709_v39, %v3984_v25  ;;  %v5820_v48 = vperm.slane %v5581_v14, %v3984_v25 }
 0x680   :  { %v3132_v8 = vpop.permute.xlu2 %3131  ;;  %v2524_v0 = vsel %vm49_vm0, 0.0, %v2523_v46  ;;  %v5790_v37 = vperm.slane %v2707_v47, %v3984_v25  ;;  %v3072_v16 = vrot.slane %v3065_v35, 4  ;;  %v3089_v46 = vsel %vm49_vm0, %v5121_v30, %v3088_v17 }
 0x681   :  { %v5760_v52 = vsel %vm209_vm3, %v3175_v51, %v3132_v8  ;;  %v2478_v8 = vsel %vm49_vm0, 0.0, %v2477_v26  ;;  %v3097_v14 = vperm.slane %v3089_v46, %v3949_v11  ;;  %v2472_v47 = vperm.slane %v5770_v31, %v3984_v25 }
 0x682   :  { %v2724_v53 = vrot.slane %v5790_v37, 4  ;;  %v2483_v26 = vrot.slane %v5226_v50, 4 }
 0x684   :  { %v2725_v34 = vsel %vm49_vm0, 0.0, %v2724_v53 }
 0x686   :  { %3547 = vrot.lane.b32.xlu1 %v5573_v62, %s3884_s15  ;;  %3567 = vrot.lane.b32.xlu2 %v3517_v29, %s3891_s22  ;;  %v2516_v62 = vperm.slane %v2508_v38, %v3984_v25  ;;  %v3073_v29 = vsel %vm49_vm0, 0.0, %v3072_v16 }
 0x687   :  { %3143 = vrot.lane.b32.xlu0 %v3065_v35, %s3880_s11  ;;  %v3076_v35 = vrot.slane %v5178_v36, 4 }
 0x688   :  { %v2931_v6 = vpop.permute.xlu1 %2930  ;;  %v3355_v27 = vpop.permute.xlu2 %3354  ;;  %v2525_v9 = vrot.slane %v2516_v62, 4 }
 0x689   :  { %v2927_v54 = vpop.permute.xlu0 %2926  ;;  %v3077_v30 = vsel %vm49_vm0, %v5164_v61, %v3076_v35 }
 0x68a   :  { %v2977_v51 = vsel %vm205_vm1, %v5437_v42, %v2927_v54  ;;  %v3085_v41 = vperm.slane %v3077_v30, %v3949_v11 }
 0x68b   :  { %v2978_v13 = vsel %vm207_vm2, %v2977_v51, %v2931_v6  ;;  %v2875_v51 = vrot.slane %v5721_v43, 4  ;;  %v2495_v43 = vrot.slane %v5202_v20, 4 }
 0x68e   :  { %2562 = vrot.lane.b32.xlu1 %v2524_v0, %s3886_s17  ;;  %2566 = vrot.lane.b32.xlu2 %v2516_v62, %s3888_s19  ;;  %v2526_v62 = vsel %vm49_vm0, 0.0, %v2525_v9  ;;  %v3110_v0 = vrot.slane %v3097_v14, 4 }
 0x68f   :  { %3366 = vrot.lane.b32.xlu0 %v3316_v33, %s3891_s22  ;;  %v2726_v33 = vrot.slane %v2717_v49, 4 }
 0x690   :  { %v3532_v42 = vpop.permute.xlu1 %3531  ;;  %v5796_v22 = vpop.permute.xlu2 %3555  ;;  %v3111_v31 = vsel %vm49_vm0, %v3110_v0, %v3085_v41  ;;  %v2331_v0 = vperm.slane %v5133_v1, %v3984_v25 }
 0x691   :  { %v3528_v15 = vpop.permute.xlu0 %3527  ;;  %v2727_v53 = vsel %vm49_vm0, 0.0, %v2726_v33 }
 0x692   :  { %v3572_v60 = vsel %vm209_vm3, %v3571_v63, %v3528_v15  ;;  %v2496_v15 = vsel %vm49_vm0, %v5189_v58, %v2495_v43  ;;  %v2484_v58 = vsel %vm49_vm0, %v5217_v24, %v2483_v26  ;;  %v2479_v24 = vrot.slane %v2472_v47, 4 }
 0x693   :  { %v3573_v5 = vsel %vm211_vm4, %v3572_v60, %v3532_v42  ;;  %v3115_v42 = vperm.slane %v3111_v31, %v3984_v25  ;;  %v2504_v39 = vperm.slane %v2496_v15, %v3949_v11  ;;  %v2336_v33 = vrot.slane %v2331_v0, 4 }
 0x694   :  { %v2480_v35 = vsel %vm49_vm0, 0.0, %v2479_v24 }
 0x695   :  { %v3120_v20 = vrot.slane %v3115_v42, 4 }
 0x696   :  { %2763 = vrot.lane.b32.xlu1 %v2725_v34, %s3886_s17  ;;  %2767 = vrot.lane.b32.xlu2 %v2717_v49, %s3888_s19 }
 0x697   :  { %2546 = vrot.lane.b32.xlu0 %v2478_v8, %s3883_s14 }
 0x698   :  { %v2935_v45 = vpop.permute.xlu1 %2934  ;;  %v2939_v44 = vpop.permute.xlu2 %2938 }
 0x699   :  { %v2979_v59 = vsel %vm209_vm3, %v2978_v13, %v2935_v45  ;;  %v5810_v63 = vpop.permute.xlu0 %3330  ;;  %v2492_v45 = vperm.slane %v2484_v58, %v3949_v11  ;;  %v2581_v11 = vsel %vm205_vm1, %v5444_v56, %v5735_v10 }
 0x69a   :  { %v5814_v4 = vsel %vm211_vm4, %v2979_v59, %v2939_v44  ;;  %v2517_v44 = vrot.slane %v2504_v39, 4  ;;  %v3372_v1 = vsel %vm211_vm4, %v5712_v57, %v5810_v63 }
 0x69c   :  { %v2518_v59 = vsel %vm49_vm0, %v2517_v44, %v2492_v45 }
 0x69e   :  { %2970 = vrot.lane.b32.xlu1 %v5820_v48, %s3889_s20  ;;  %3147 = vrot.lane.b32.xlu2 %v3073_v29, %s3885_s16  ;;  %v2522_v29 = vperm.slane %v2518_v59, %v3984_v25 }
 0x69f   :  { %2747 = vrot.lane.b32.xlu0 %v2679_v7, %s3883_s14  ;;  %v2325_v7 = vperm.slane %v5151_v3, %v3984_v25 }
 0x6a0   :  { %v5830_v38 = vpop.permute.xlu1 %3350  ;;  %v3359_v28 = vpop.permute.xlu2 %3358 }
 0x6a1   :  { %v3378_v36 = vsel %vm223_vm10, %v5830_v38, %v3355_v27  ;;  %v2732_v6 = vpop.permute.xlu0 %2731  ;;  %v2876_v27 = vsel %vm49_vm0, 0.0, %v2875_v51 }
 0x6a2   :  { %v5838_v54 = vsel %vm225_vm11, %v3378_v36, %v3359_v28  ;;  %v2782_v60 = vsel %vm205_vm1, %v5548_v40, %v2732_v6  ;;  %v2673_v40 = vperm.slane %v5521_v19, %v3984_v25  ;;  %v2723_v36 = vperm.slane %v5623_v32, %v3984_v25 }
 0x6a3   :  { %v2527_v6 = vrot.slane %v2522_v29, 4  ;;  %v2337_v25 = vsel %vm49_vm0, 0.0, %v2336_v33  ;;  %vm6108_vm1 = vcmask 551936  }
 0x6a4   :  { %v2680_v32 = vrot.slane %v2673_v40, 4  ;;  %v2728_v63 = vrot.slane %v2723_v36, 4 }
 0x6a5   :  { %v2528_v41 = vsel %vm49_vm0, 0.0, %v2527_v6 }
 0x6a6   :  { %2550 = vrot.lane.b32.xlu1 %v2472_v47, %s3880_s11  ;;  %2570 = vrot.lane.b32.xlu2 %v2526_v62, %s3887_s18  ;;  %v2729_v58 = vsel %vm49_vm0, 0.0, %v2728_v63 }
 0x6a7   :  { %2950 = vrot.lane.b32.xlu0 %v2876_v27, %s3885_s16  ;;  %v2681_v27 = vsel %vm49_vm0, 0.0, %v2680_v32 }
 0x6a8   :  { %v5849_v61 = vpop.permute.xlu1 %3551  ;;  %v2539_v13 = vpop.permute.xlu2 %2538 }
 0x6a9   :  { %v5853_v21 = vpop.permute.xlu0 %3334 }
 0x6ae   :  { %2771 = vrot.lane.b32.xlu1 %v2727_v53, %s3887_s18  ;;  %2954 = vrot.lane.b32.xlu2 %v5659_v23, %s3884_s15  ;;  %v3121_v23 = vsel %vm49_vm0, 0.0, %v3120_v20 }
 0x6af   :  { %3167 = vrot.lane.b32.xlu0 %v3115_v42, %s3889_s20 }
 0x6b0   :  { %v2736_v49 = vpop.permute.xlu1 %2735  ;;  %v5867_v50 = vpop.permute.xlu2 %2958 }
 0x6b1   :  { %v2783_v8 = vsel %vm207_vm2, %v2782_v60, %v2736_v49  ;;  %v3536_v34 = vpop.permute.xlu0 %3535 }
 0x6b2   :  { %v5873_v16 = vsel %vm213_vm5, %v3573_v5, %v3536_v34 }
 0x6b6   :  { %3151 = vrot.lane.b32.xlu1 %v5672_v55, %s3884_s15  ;;  %3171 = vrot.lane.b32.xlu2 %v3121_v23, %s3891_s22  ;;  %v2923_v55 = vrot.slane %v5820_v48, 4  ;;  %v2334_v48 = vrot.slane %v2325_v7, 4 }
 0x6b7   :  { %2751 = vrot.lane.b32.xlu0 %v2673_v40, %s3880_s11 }
 0x6b8   :  { %v3339_v5 = vpop.permute.xlu1 %3338  ;;  %v5884_v17 = vpop.permute.xlu2 %3155  ;;  %v2924_v56 = vsel %vm49_vm0, 0.0, %v2923_v55  ;;  %v2335_v3 = vsel %vm49_vm0, 0.0, %v2334_v48  ;;  %vm6109_vm0 = vcmask 1043456  }
 0x6b9   :  { %v2535_v12 = vpop.permute.xlu0 %2534 }
 0x6ba   :  { %v2582_v19 = vsel %vm207_vm2, %v2581_v11, %v2535_v12  ;;  %vm6110_vm2 = vmmov %vm6109_vm0 }
 0x6bb   :  { %v2583_v46 = vsel %vm209_vm3, %v2582_v19, %v2539_v13 }
 0x6be   :  { %2554 = vrot.lane.b32.xlu1 %v2480_v35, %s3885_s16  ;;  %2574 = vrot.lane.b32.xlu2 %v2522_v29, %s3889_s20 }
 0x6bf   :  { %2974 = vrot.lane.b32.xlu0 %v2924_v56, %s3891_s22 }
 0x6c0   :  { %v3560_v10 = vpop.permute.xlu1 %3559  ;;  %v5900_v9 = vpop.permute.xlu2 %3362 }
 0x6c1   :  { %v3136_v28 = vpop.permute.xlu0 %3135  ;;  %v3380_v48 = vsel %vm227_vm12, %v5838_v54, %v5900_v9 }
 0x6c2   :  { %v3177_v14 = vsel %vm211_vm4, %v5760_v52, %v3136_v28 }
 0x6c6   :  { %2775 = vrot.lane.b32.xlu1 %v2723_v36, %s3889_s20  ;;  %2379 = vrot.lane.b32.xlu2 %v2335_v3, %s3887_s18 }
 0x6c7   :  { %2375 = vrot.lane.b32.xlu0 %v2325_v7, %s3888_s19 }
 0x6c8   :  { %v2943_v30 = vpop.permute.xlu1 %2942  ;;  %v2543_v47 = vpop.permute.xlu2 %2542 }
 0x6c9   :  { %v5912_v51 = vsel %vm213_vm5, %v5814_v4, %v2943_v30  ;;  %v5915_v52 = vsel %vm211_vm4, %v2583_v46, %v2543_v47  ;;  %v3540_v62 = vpop.permute.xlu0 %3539 }
 0x6ca   :  { %v3575_v29 = vsel %vm215_vm6, %v5873_v16, %v3540_v62 }
 0x6ce   :  { %2578 = vrot.lane.b32.xlu1 %v2528_v41, %s3891_s22  ;;  %2759 = vrot.lane.b32.xlu2 %v5790_v37, %s3884_s15  ;;  %v3373_v37 = vsel %vm213_vm5, %v3372_v1, %v5853_v21 }
 0x6cf   :  { %2755 = vrot.lane.b32.xlu0 %v2681_v27, %s3885_s16  ;;  %v3374_v26 = vsel %vm215_vm6, %v3373_v37, %v3339_v5 }
 0x6d0   :  { %v3140_v4 = vpop.permute.xlu1 %3139  ;;  %v2967_v13 = vpop.permute.xlu2 %2966 }
 0x6d1   :  { %v5926_v31 = vsel %vm213_vm5, %v3177_v14, %v3140_v4  ;;  %v2740_v43 = vpop.permute.xlu0 %2739 }
 0x6d2   :  { %v2784_v42 = vsel %vm209_vm3, %v2783_v8, %v2740_v43  ;;  %v3579_v8 = vsel %vm223_vm10, %v5849_v61, %v5796_v22  ;;  %vm6111_vm3 = vcmask 556036  }
 0x6d3   :  { %v3580_v34 = vsel %vm225_vm11, %v3579_v8, %v3560_v10  ;;  %vm6113_vm14 = vmmov %vm6111_vm3 }
 0x6d6   :  { %2383 = vrot.lane.b32.xlu1 %v2331_v0, %s3889_s20  ;;  %2387 = vrot.lane.b32.xlu2 %v2337_v25, %s3891_s22 }
 0x6d7   :  { %2558 = vrot.lane.b32.xlu0 %v5766_v18, %s3884_s15 }
 0x6d8   :  { %v3343_v15 = vpop.permute.xlu1 %3342  ;;  %v3347_v53 = vpop.permute.xlu2 %3346 }
 0x6d9   :  { %v3375_v20 = vsel %vm217_vm7, %v3374_v26, %v3343_v15  ;;  %v2963_v39 = vpop.permute.xlu0 %2962 }
 0x6da   :  { %v3376_v60 = vsel %vm219_vm8, %v3375_v20, %v3347_v53  ;;  %v2986_v57 = vsel %vm223_vm10, %v5867_v50, %v2963_v39 }
 0x6db   :  { %v3377_v49 = vsel %vm221_vm9, %v3376_v60, %v5830_v38  ;;  %v5947_v21 = vsel %vm225_vm11, %v2986_v57, %v2967_v13 }
 0x6dc   :  { %v3384_v18 = vrot.slane %v3377_v49, 4 }
 0x6de   :  { %3388 = vst [vmem:[#allocation2 + $0x70] sm:$0xf0] %v3384_v18 }
 0x6df   :  { %2779 = vrot.lane.b32.xlu0 %v2729_v58, %s3891_s22 }
 0x6e0   :  { %v3564_v23 = vpop.permute.xlu1 %3563  ;;  %v3568_v45 = vpop.permute.xlu2 %3567 }
 0x6e1   :  { %v3581_v44 = vsel %vm227_vm12, %v3580_v34, %v3564_v23  ;;  %v3160_v38 = vpop.permute.xlu0 %3159 }
 0x6e2   :  { %v3582_v40 = vsel %vm229_vm13, %v3581_v44, %v3568_v45 }
 0x6e3   :  { %3584 = vst.msk [vmem:[#allocation2 + $0x98] sm:$0xf] %vm6108_vm1, %v3582_v40 }
 0x6e8   :  { %v2947_v24 = vpop.permute.xlu1 %2946  ;;  %v5959_v11 = vpop.permute.xlu2 %2566 }
 0x6e9   :  { %v3544_v59 = vpop.permute.xlu0 %3543  ;;  %v2982_v0 = vsel %vm215_vm6, %v5912_v51, %v2947_v24 }
 0x6ea   :  { %v3605_v5 = vld [vmem:[#allocation2 + $0x98] sm:$0xf]  ;;  %v3576_v55 = vsel %vm217_vm7, %v3575_v29, %v3544_v59 }
 0x6eb   :  { %3836 = vmatpush.msk.msra.mxu3 %vm6109_vm0, %v3605_v5 }
 0x6f0   :  { %v3164_v22 = vpop.permute.xlu1 %3163  ;;  %v2768_v46 = vpop.permute.xlu2 %2767 }
 0x6f1   :  { %v2744_v12 = vpop.permute.xlu0 %2743 }
 0x6f2   :  { %v5962_v19 = vsel %vm211_vm4, %v2784_v42, %v2744_v12  ;;  %v3183_v42 = vsel %vm223_vm10, %v5884_v17, %v3160_v38  ;;  %vm6112_vm4 = vmmov %vm6108_vm1 }
 0x6f3   :  { %v3184_v1 = vsel %vm225_vm11, %v3183_v42, %v3164_v22  ;;  %vm6114_vm1 = vmmov %vm6111_vm3  ;;  %v3589_v42 = vld [vmem:[#allocation2 + $0x18] sm:$0xff] }
 0x6f8   :  { %v3548_v35 = vpop.permute.xlu1 %3547  ;;  %v3148_v3 = vpop.permute.xlu2 %3147 }
 0x6f9   :  { %v3577_v7 = vsel %vm219_vm8, %v3576_v55, %v3548_v35  ;;  %v3144_v56 = vpop.permute.xlu0 %3143  ;;  %v3893_v35 = vmov 0  }
 0x6fa   :  { %v3578_v10 = vsel %vm221_vm9, %v3577_v7, %v5849_v61  ;;  %3860 = vset.pattern.permute.xlu0 %v3893_v35  ;;  %3862 = vset.pattern.permute.xlu2 %v3893_v35 }
 0x6fb   :  { %3583 = vst [vmem:[#allocation2 + $0x90] sm:$0xf] %v3578_v10 }
 0x700   :  { %v5970_v28 = vpop.permute.xlu1 %2562  ;;  %v2571_v62 = vpop.permute.xlu2 %2570 }
 0x701   :  { %v3367_v14 = vpop.permute.xlu0 %3366 }
 0x702   :  { %v3381_v16 = vsel %vm229_vm13, %v3380_v48, %v3367_v14  ;;  %v3604_v36 = vld [vmem:[#allocation2 + $0x90] sm:$0xf] }
 0x703   :  { %v3385_v6 = vrot.slane %v3381_v16, 4  ;;  %3834 = vmatpush.msk.msra.mxu2 %vm6110_vm2, %v3604_v36 }
 0x705   :  { %3389 = vst.msk [vmem:[#allocation2 + $0x78] sm:$0xf0] %vm6111_vm3, %v3385_v6 }
 0x708   :  { %v5978_v30 = vpop.permute.xlu1 %2763  ;;  %v2955_v32 = vpop.permute.xlu2 %2954 }
 0x709   :  { %v5982_v61 = vsel %vm223_vm10, %v5978_v30, %v2768_v46  ;;  %v5984_v47 = vpop.permute.xlu0 %2546  ;;  %v3894_v46 = vmov 1  }
 0x70a   :  { %3861 = vset.pattern.permute.xlu1 %v3894_v46  ;;  %v2585_v14 = vsel %vm213_vm5, %v5915_v52, %v5984_v47 }
 0x710   :  { %v2971_v54 = vpop.permute.xlu1 %2970  ;;  %v3172_v37 = vpop.permute.xlu2 %3171 }
 0x711   :  { %v2748_v9 = vpop.permute.xlu0 %2747  ;;  %v2988_v58 = vsel %vm227_vm12, %v5947_v21, %v2971_v54  ;;  %v3585_v21 = vld [vmem:[%s6090_s1] sm:$0xff] }
 0x712   :  { %v2786_v59 = vsel %vm213_vm5, %v5962_v19, %v2748_v9  ;;  %3833 = vmatmul.msk.f32.vlgmr.msra.gmra.mxu1 %vm3606_vm15, %v3585_v21  ;;  %3831 = vmatmul.msk.f32.vlgmr.msra.gmra.mxu0 %vm3606_vm15, %v3585_v21  ;;  %vm6116_vm5 = vmmov %vm6112_vm4 }
 0x718   :  { %v5986_v41 = vpop.permute.xlu1 %2550  ;;  %v2575_v63 = vpop.permute.xlu2 %2574 }
 0x719   :  { %v2951_v27 = vpop.permute.xlu0 %2950  ;;  %v2586_v16 = vsel %vm215_vm6, %v2585_v14, %v5986_v41 }
 0x71a   :  { %v2983_v4 = vsel %vm217_vm7, %v2982_v0, %v2951_v27 }
 0x71b   :  { %v2984_v13 = vsel %vm219_vm8, %v2983_v4, %v2955_v32 }
 0x71c   :  { %v2985_v43 = vsel %vm221_vm9, %v2984_v13, %v5867_v50  ;;  %v3179_v50 = vsel %vm215_vm6, %v5926_v31, %v3144_v56 }
 0x71d   :  { %v2992_v33 = vrot.slane %v2985_v43, 4  ;;  %v3180_v20 = vsel %vm217_vm7, %v3179_v50, %v3148_v3  ;;  %v3588_v43 = vld [vmem:[#allocation2 + $0x10] sm:$0xff] }
 0x71f   :  { %2996 = vst [vmem:[#allocation2 + $0x50] sm:$0xf0] %v2992_v33 }
 0x720   :  { %v5996_v25 = vpop.permute.xlu1 %2771  ;;  %v2380_v45 = vpop.permute.xlu2 %2379 }
 0x721   :  { %v3168_v26 = vpop.permute.xlu0 %3167  ;;  %v2792_v41 = vsel %vm225_vm11, %v5982_v61, %v5996_v25  ;;  %v3703_v61 = vlaneseq }
 0x722   :  { %v3185_v51 = vsel %vm227_vm12, %v3184_v1, %v3168_v26 }
 0x723   :  { %v3186_v15 = vsel %vm229_vm13, %v3185_v51, %v3172_v37  ;;  %v3704_v25 = vand.u32 127, %v3703_v61 }
 0x724   :  { %3188 = vst.msk [vmem:[#allocation2 + $0x78] sm:$0xf] %vm6112_vm4, %v3186_v15 }
 0x725   :  { %v3705_v1 = vadd.s32 128, %v3704_v25 }
 0x728   :  { %v3152_v53 = vpop.permute.xlu1 %3151  ;;  %v2760_v24 = vpop.permute.xlu2 %2759 }
 0x729   :  { %v3181_v39 = vsel %vm219_vm8, %v3180_v20, %v3152_v53  ;;  %v2752_v60 = vpop.permute.xlu0 %2751 }
 0x72a   :  { %v3182_v57 = vsel %vm221_vm9, %v3181_v39, %v5884_v17  ;;  %v2590_v17 = vsel %vm223_vm10, %v5970_v28, %v5959_v11  ;;  %v3708_v11 = vld [vmem:[%s6091_s2] sm:$0xff]  ;;  %v2787_v12 = vsel %vm215_vm6, %v2786_v59, %v2752_v60  ;;  %vm3707_vm6 = vcmp.lt.s32.totalorder %v3705_v1, 196 }
 0x72b   :  { %3187 = vst [vmem:[#allocation2 + $0x70] sm:$0xf] %v3182_v57  ;;  %v3601_v49 = vld [vmem:[#allocation2 + $0x78] sm:$0xff]  ;;  %v2591_v40 = vsel %vm225_vm11, %v2590_v17, %v2571_v62  ;;  %3711 = vperm.xlu0 %3860, %v3708_v11   ;;  %3727 = vperm.xlu1 %3861, %v3708_v11  }
 0x72c   :  { %3695 = vmatpush.msra.mxu3 %v3601_v49  ;;  %v2592_v5 = vsel %vm227_vm12, %v2591_v40, %v2575_v63 }
 0x730   :  { %v2555_v18 = vpop.permute.xlu1 %2554  ;;  %v2388_v62 = vpop.permute.xlu2 %2387 }
 0x731   :  { %v2975_v8 = vpop.permute.xlu0 %2974  ;;  %v2587_v6 = vsel %vm217_vm7, %v2586_v16, %v2555_v18 }
 0x732   :  { %v2989_v31 = vsel %vm229_vm13, %v2988_v58, %v2975_v8  ;;  %v3600_v34 = vld [vmem:[#allocation2 + $0x70] sm:$0xff]  ;;  %v3895_v8 = vmov 392.0  }
 0x733   :  { %v2993_v23 = vrot.slane %v2989_v31, 4  ;;  %3675 = vmatpush.msra.mxu2 %v3600_v34  ;;  %3863 = vset.pattern.permute.xlu1 %v3893_v35  ;;  %3864 = vrcp.f32 %v3895_v8 }
 0x735   :  { %2997 = vst.msk [vmem:[#allocation2 + $0x58] sm:$0xf0] %vm6113_vm14, %v2993_v23 }
 0x738   :  { %v2776_v44 = vpop.permute.xlu1 %2775 }
 0x739   :  { %v2376_v38 = vpop.permute.xlu0 %2375  ;;  %v2793_v0 = vsel %vm227_vm12, %v2792_v41, %v2776_v44  ;;  %v3865_v31 = vpop.eup %3864 }
 0x73a   :  { %v2399_v48 = vsel %vm223_vm10, %v5275_v2, %v2376_v38  ;;  %vm6115_vm10 = vmmov %vm6112_vm4  ;;  %v3741_v34 = vmul.f32 392.0, %v3865_v31 }
 0x73b   :  { %v2400_v3 = vsel %vm225_vm11, %v2399_v48, %v2380_v45 }
 0x73c   :  { %v3742_v23 = vsub.f32 1.0, %v3741_v34 }
 0x73e   :  { %v3743_v45 = vmul.f32 %v3865_v31, %v3742_v23 }
 0x740   :  { %v2579_v22 = vpop.permute.xlu1 %2578  ;;  %v3744_v44 = vadd.f32 %v3865_v31, %v3743_v45 }
 0x741   :  { %v2593_v29 = vsel %vm229_vm13, %v2592_v5, %v2579_v22  ;;  %v2756_v55 = vpop.permute.xlu0 %2755 }
 0x742   :  { %v2597_v19 = vrot.slane %v2593_v29, 4  ;;  %v2788_v7 = vsel %vm217_vm7, %v2787_v12, %v2756_v55  ;;  %vm3745_vm7 = vweird.f32 %v3865_v31 }
 0x743   :  { %v2789_v56 = vsel %vm219_vm8, %v2788_v7, %v2760_v24  ;;  %v3746_v17 = vsel %vm3745_vm7, %v3865_v31, %v3744_v44 }
 0x744   :  { %2601 = vst.msk [vmem:[#allocation2 + $0x38] sm:$0xf0] %vm6114_vm1, %v2597_v19  ;;  %v2790_v10 = vsel %vm221_vm9, %v2789_v56, %v5978_v30 }
 0x745   :  { %2795 = vst [vmem:[#allocation2 + $0x50] sm:$0xf] %v2790_v10 }
 0x748   :  { %v2384_v36 = vpop.permute.xlu1 %2383 }
 0x749   :  { %v2401_v54 = vsel %vm227_vm12, %v2400_v3, %v2384_v36  ;;  %v2559_v30 = vpop.permute.xlu0 %2558 }
 0x74a   :  { %v2402_v9 = vsel %vm229_vm13, %v2401_v54, %v2388_v62  ;;  %v2588_v2 = vsel %vm219_vm8, %v2587_v6, %v2559_v30 }
 0x74b   :  { %2404 = vst.msk [vmem:[#allocation2 + $0x38] sm:$0xf] %vm6115_vm10, %v2402_v9  ;;  %v2589_v52 = vsel %vm221_vm9, %v2588_v2, %v5970_v28  ;;  %v3773_v2 = vld [vmem:[%s6092_s3] sm:$0xff] }
 0x74c   :  { %v2596_v47 = vrot.slane %v2589_v52, 4  ;;  %v3596_v32 = vld [vmem:[#allocation2 + $0x50] sm:$0xff] }
 0x74d   :  { %3676 = vmatpush.msra.mxu2 %v3596_v32  ;;  %v3786_v32 = vld [vmem:[%s6093_s4] sm:$0xff] }
 0x74e   :  { %2600 = vst [vmem:[#allocation2 + $0x30] sm:$0xf0] %v2596_v47 }
 0x751   :  { %v2780_v27 = vpop.permute.xlu0 %2779 }
 0x752   :  { %v2794_v4 = vsel %vm229_vm13, %v2793_v0, %v2780_v27  ;;  %v3593_v33 = vld [vmem:[#allocation2 + $0x38] sm:$0xff] }
 0x753   :  { %2796 = vst.msk [vmem:[#allocation2 + $0x58] sm:$0xf] %vm6116_vm5, %v2794_v4 }
 0x755   :  { %v3592_v13 = vld [vmem:[#allocation2 + $0x30] sm:$0xff] }
 0x756   :  { %3677 = vmatpush.msra.mxu2 %v3592_v13 }
 0x758   :  { %3678 = vmatpush.msra.mxu2 %v3588_v43 }
 0x759   :  { %3835 = vmatmul.msk.f32.vlgmr.msra.gmra.mxu2 %vm3606_vm15, %v3585_v21 }
 0x75a   :  { %v3597_v28 = vld [vmem:[#allocation2 + $0x58] sm:$0xff] }
 0x75b   :  { %3696 = vmatpush.msra.mxu3 %v3597_v28 }
 0x75d   :  { %3697 = vmatpush.msra.mxu3 %v3593_v33 }
 0x75f   :  { %3698 = vmatpush.msra.mxu3 %v3589_v42 }
 0x760   :  { %3837 = vmatmul.msk.f32.vlgmr.msra.gmra.mxu3 %vm3606_vm15, %v3585_v21 }
 0x78f   :  { %v3660_v26 = vpop.f32.mrf.mxu1  ;;  %v3640_v15 = vpop.f32.mrf.mxu0 }
 0x79d   :  { %v3712_v37 = vpop.permute.xlu0 %3711  ;;  %v3728_v39 = vpop.permute.xlu1 %3727 }
 0x79e   :  { %v3715_v51 = vadd.f32 %v3712_v37, %v3660_v26  ;;  %v6057_v50 = vadd.f32 %v3712_v37, %v3640_v15 }
 0x7a0   :  { %v6060_v53 = vsel %vm3707_vm6, %v3715_v51, 0.0 }
 0x7a1   :  { %v3720_v20 = vadd.f32 %v6060_v53, %v6057_v50 }
 0x7a3   :  { %3721 = vadd.xlane.f32.xlu2 %v3720_v20 }
 0x7dc   :  { %v3680_v60 = vpop.f32.mrf.mxu2 }
 0x7dd   :  { %v3730_v57 = vadd.f32 %v3728_v39, %v3680_v60 }
 0x7e3   :  { %v3700_v63 = vpop.f32.mrf.mxu3 }
 0x7e4   :  { %v3731_v49 = vadd.f32 %v3728_v39, %v3700_v63 }
 0x7e6   :  { %v3733_v18 = vsel %vm3707_vm6, %v3731_v49, 0.0 }
 0x7e7   :  { %v3736_v58 = vadd.f32 %v3733_v18, %v3730_v57 }
 0x7e9   :  { %3737 = vadd.xlane.f32.xlu1 %v3736_v58 }
 0x816   :  { %v3722_v38 = vpop.xlane.xlu2 %3721 }
 0x85c   :  { %v3738_v40 = vpop.xlane.xlu1 %3737 }
 0x85d   :  { %v3739_v24 = vadd.f32 %v3738_v40, %v3722_v38 }
 0x85f   :  { %v3747_v21 = vmul.f32 %v3746_v17, %v3739_v24 }
 0x861   :  { %v3762_v59 = vsub.f32 %v3730_v57, %v3747_v21  ;;  %v3763_v5 = vsub.f32 %v3733_v18, %v3747_v21  ;;  %v3750_v22 = vsub.f32 %v6057_v50, %v3747_v21  ;;  %v3751_v11 = vsub.f32 %v6060_v53, %v3747_v21 }
 0x863   :  { %v3765_v12 = vsel %vm3707_vm6, %v3763_v5, 0.0  ;;  %v3766_v29 = vmul.f32 %v3762_v59, %v3762_v59  ;;  %v3753_v55 = vsel %vm3707_vm6, %v3751_v11, 0.0  ;;  %v3754_v35 = vmul.f32 %v3750_v22, %v3750_v22 }
 0x864   :  { %v3767_v46 = vmul.f32 %v3765_v12, %v3765_v12  ;;  %v3755_v19 = vmul.f32 %v3753_v55, %v3753_v55 }
 0x866   :  { %v3768_v7 = vadd.f32 %v3767_v46, %v3766_v29  ;;  %v3756_v56 = vadd.f32 %v3755_v19, %v3754_v35 }
 0x868   :  { %3769 = vadd.xlane.f32.xlu2 %v3768_v7  ;;  %3757 = vadd.xlane.f32.xlu0 %v3756_v56 }
 0x8db   :  { %v3770_v10 = vpop.xlane.xlu2 %3769  ;;  %v3758_v48 = vpop.xlane.xlu0 %3757 }
 0x8dc   :  { %v3771_v14 = vadd.f32 %v3770_v10, %v3758_v48 }
 0x8de   :  { %v3772_v16 = vmul.f32 %v3771_v14, %v3746_v17 }
 0x8e0   :  { %v3774_v36 = vadd.f32 1e-05, %v3772_v16 }
 0x8e2   :  { %3866 = vrsqrt.f32 %v3774_v36  ;;  %vm3781_vm9 = vweird.f32 %v3774_v36 }
 0x8e8   :  { %v3867_v3 = vpop.eup %3866 }
 0x8e9   :  { %v3776_v6 = vmul.f32 %v3867_v3, %v3774_v36  ;;  %vm3782_vm8 = vweird.f32 %v3867_v3 }
 0x8ea   :  { %vm3783_vm11 = vmor %vm3781_vm9, %vm3782_vm8 }
 0x8eb   :  { %v3777_v62 = vmul.f32 %v3867_v3, %v3776_v6 }
 0x8ed   :  { %v3778_v54 = vmul.f32 0.5, %v3777_v62 }
 0x8ef   :  { %v3779_v30 = vsub.f32 1.5, %v3778_v54 }
 0x8f1   :  { %v3780_v9 = vmul.f32 %v3867_v3, %v3779_v30 }
 0x8f3   :  { %v3784_v52 = vsel %vm3783_vm11, %v3867_v3, %v3780_v9 }
 0x8f4   :  { %v3785_v47 = vmul.f32 %v3784_v52, %v3773_v2 }
 0x8f6   :  { %3791 = vperm.xlu2 %3862, %v3785_v47   ;;  %v3787_v41 = vmul.f32 %v3785_v47, %v3747_v21 }
 0x8f8   :  { %v3788_v0 = vsub.f32 %v3786_v32, %v3787_v41 }
 0x8fa   :  { %3798 = vperm.xlu1 %3863, %v3788_v0  }
 0x950   :  { %v3792_v27 = vpop.permute.xlu2 %3791 }
 0x951   :  { %v3794_v4 = vmul.f32 %v3792_v27, %v6057_v50  ;;  %v3795_v13 = vmul.f32 %v3792_v27, %v6060_v53  ;;  %v3809_v43 = vmul.f32 %v3792_v27, %v3730_v57  ;;  %v3810_v28 = vmul.f32 %v3792_v27, %v3733_v18 }
 0x96c   :  { %v3799_v33 = vpop.permute.xlu1 %3798 }
 0x96d   :  { %v3801_v42 = vadd.f32 %v3799_v33, %v3794_v4  ;;  %v3802_v61 = vadd.f32 %v3799_v33, %v3795_v13  ;;  %v3811_v25 = vadd.f32 %v3809_v43, %v3799_v33  ;;  %v3812_v1 = vadd.f32 %v3810_v28, %v3799_v33 }
 0x96f   :  { %v3803_v37 = vmax.f32 %v3801_v42, 0.0  ;;  %v3804_v26 = vmax.f32 %v3802_v61, 0.0  ;;  %v3813_v51 = vmax.f32 %v3811_v25, 0.0  ;;  %v3814_v15 = vmax.f32 %v3812_v1, 0.0 }
 0x971   :  { %3805 = vst [vmem:[%s6094_s5] sm:$0xff] %v3803_v37 }
 0x972   :  { %3806 = vst [vmem:[%s6094_s5 + $0x8] sm:$0xff] %v3804_v26 }
 0x973   :  { %3838 = vst [vmem:[%s6094_s5 + $0x10] sm:$0xff] %v3813_v51 }
 0x974   :  { %3839 = vst [vmem:[%s6094_s5 + $0x18] sm:$0xff] %v3814_v15 }

</bundles_post_ra>
